<compile_context>
chip_gen: v6e
topology: v6e:2x2x1
jax: 0.10.0
libtpu: 0.0.40
codegen_flags: <defaults>
</compile_context>

<pallas_src>
import jax
import jax.numpy as jnp
from jax.experimental import pallas as pl
from jax.experimental.pallas import tpu as pltpu

# ----------------------------- tiny BERT config -----------------------------
B = 4          # batch
S = 8          # sequence length
H = 32         # bert_hidden_dim
NH = 4         # attention heads
HD = H // NH   # head dim
FFN = 64       # intermediate size
VOCAB = 50
TYPES = 2
MAXPOS = 16
N_LAYERS = 2
LN_EPS = 1e-12


# ------------------------------ Pallas kernel -------------------------------
def _layernorm(x, gamma, beta):
    mu = jnp.mean(x, axis=-1, keepdims=True)
    var = jnp.mean(jnp.square(x - mu), axis=-1, keepdims=True)
    return (x - mu) * jax.lax.rsqrt(var + LN_EPS) * gamma + beta


def fused_bert_cls_kernel(x_ref, bias_ref, label_ref,
                          wqkv_ref, bqkv_ref, wo_ref, bo_ref,
                          ln1g_ref, ln1b_ref,
                          wf1_ref, bf1_ref, wf2_ref, bf2_ref,
                          ln2g_ref, ln2b_ref,
                          clsw_ref, clsb_ref,
                          logits_ref, loss_ref):
    """Whole BertCls eval forward (post-embedding) in one kernel invocation."""
    x = x_ref[...]                      # (B*S, H) f32
    bias = bias_ref[...]                # (B, 1, S) f32, additive mask bias

    for l in range(N_LAYERS):           # static unroll over layers
        xb = x.astype(jnp.bfloat16)
        # fused QKV projection: one (B*S,H)@(H,3H) matmul (scale folded in Wq)
        qkv = jnp.dot(xb, wqkv_ref[l],
                      preferred_element_type=jnp.float32) + bqkv_ref[l]   # (B*S,3H)

        ctx_heads = []
        for h in range(NH):             # static unroll; score/ctx batched over B
            qh = qkv[:, h * HD:(h + 1) * HD].reshape(B, S, HD).astype(jnp.bfloat16)
            kh = qkv[:, H + h * HD:H + (h + 1) * HD].reshape(B, S, HD).astype(jnp.bfloat16)
            vh = qkv[:, 2 * H + h * HD:2 * H + (h + 1) * HD].reshape(B, S, HD).astype(jnp.bfloat16)

            sc = jnp.einsum('bqd,bkd->bqk', qh, kh,
                            preferred_element_type=jnp.float32) + bias     # (B,S,S)
            sc = sc - jnp.max(sc, axis=-1, keepdims=True)
            p = jnp.exp(sc)
            p = p * pl.reciprocal(jnp.sum(p, axis=-1, keepdims=True), approx=True)

            ctx_h = jnp.einsum('bqk,bkd->bqd', p.astype(jnp.bfloat16), vh,
                               preferred_element_type=jnp.float32)         # (B,S,HD)
            ctx_heads.append(ctx_h.reshape(B * S, HD))

        ctx = jnp.concatenate(ctx_heads, axis=-1).astype(jnp.bfloat16)     # (B*S,H)
        attn = jnp.dot(ctx, wo_ref[l],
                       preferred_element_type=jnp.float32) + bo_ref[l]
        h1 = _layernorm(x + attn, ln1g_ref[l], ln1b_ref[l])

        ff = jnp.dot(h1.astype(jnp.bfloat16), wf1_ref[l],
                     preferred_element_type=jnp.float32) + bf1_ref[l]
        ff = jax.nn.gelu(ff, approximate=True)   # tanh GELU (EUP-friendly)
        ff = jnp.dot(ff.astype(jnp.bfloat16), wf2_ref[l],
                     preferred_element_type=jnp.float32) + bf2_ref[l]
        x = _layernorm(h1 + ff, ln2g_ref[l], ln2b_ref[l])

    # cls_logits = bert_outputs[:, 0, :]
    cls = x.reshape(B, S, H)[:, 0, :]                                      # (B, H)

    # _classification: Linear(H -> 1) (done as mul + lane-reduce, no 1-lane matmul)
    logit = jnp.sum(cls * clsw_ref[...], axis=-1, keepdims=True) + clsb_ref[...]  # (B,1)

    # BCEWithLogits (stable) + masked_fill(label == -1, 0) + mean
    y = label_ref[...]                                                     # (B,1)
    losses = jnp.maximum(logit, 0.0) - logit * y + jnp.log1p(jnp.exp(-jnp.abs(logit)))
    losses = jnp.where(y == -1.0, 0.0, losses)
    loss = jnp.mean(losses)

    # lane-dense 128-wide output slabs (avoid masked partial stores)
    logits_ref[...] = jnp.broadcast_to(logit, (B, 128))
    loss_ref[...] = jnp.broadcast_to(loss.reshape(1, 1), (1, 128))


# ------------------------------ Pallas wrapper -------------------------------
def fused_forward(x2d, bias, labels_f, params):
    vmem = pl.BlockSpec(memory_space=pltpu.MemorySpace.VMEM)
    args = [x2d, bias, labels_f,
            params['wqkv'], params['bqkv'], params['wo'], params['bo'],
            params['ln1_g'], params['ln1_b'],
            params['wf1'], params['bf1'], params['wf2'], params['bf2'],
            params['ln2_g'], params['ln2_b'],
            params['cls_w'], params['cls_b']]
    logits_pad, loss_pad = pl.pallas_call(
        fused_bert_cls_kernel,
        out_shape=(jax.ShapeDtypeStruct((B, 128), jnp.float32),
                   jax.ShapeDtypeStruct((1, 128), jnp.float32)),
        in_specs=[vmem] * len(args),
        out_specs=(vmem, vmem),
    )(*args)
    return logits_pad[:, 0], loss_pad[0, 0]


# ------------------------------- parameters ---------------------------------
def init_params(key):
    keys = iter(jax.random.split(key, 64))

    def nrm(shape):
        return jax.random.normal(next(keys), shape, dtype=jnp.float32) * 0.02

    scale = 1.0 / (HD ** 0.5)

    wqkv_l, bqkv_l, wo_l, bo_l = [], [], [], []
    ln1g_l, ln1b_l, ln2g_l, ln2b_l = [], [], [], []
    wf1_l, bf1_l, wf2_l, bf2_l = [], [], [], []
    for _ in range(N_LAYERS):
        wq, wk, wv, wo = nrm((H, H)), nrm((H, H)), nrm((H, H)), nrm((H, H))
        bq, bk, bv = nrm((H,)), nrm((H,)), nrm((H,))
        # fold 1/sqrt(HD) into Wq / bq; fuse QKV into one (H, 3H) matrix
        wqkv_l.append(jnp.concatenate([wq * scale, wk, wv], axis=1))        # (H, 3H)
        bqkv_l.append(jnp.concatenate([bq * scale, bk, bv]).reshape(1, 3 * H))
        wo_l.append(wo)                                                     # (H, H)
        bo_l.append(nrm((1, H)))
        ln1g_l.append(jnp.ones((1, H), jnp.float32))
        ln1b_l.append(jnp.zeros((1, H), jnp.float32))
        wf1_l.append(nrm((H, FFN)))
        bf1_l.append(nrm((1, FFN)))
        wf2_l.append(nrm((FFN, H)))
        bf2_l.append(nrm((1, H)))
        ln2g_l.append(jnp.ones((1, H), jnp.float32))
        ln2b_l.append(jnp.zeros((1, H), jnp.float32))

    params = {
        'word_emb': nrm((VOCAB, H)),
        'pos_emb': nrm((MAXPOS, H)),
        'type_emb': nrm((TYPES, H)),
        'emb_ln_g': jnp.ones((H,), jnp.float32),
        'emb_ln_b': jnp.zeros((H,), jnp.float32),
        'cls_w': nrm((1, H)),                       # _classification Linear(H, 1)
        'cls_b': jnp.zeros((1, 1), jnp.float32),
        # stacked per-layer weights, MXU operands stored in bf16
        'wqkv': jnp.stack(wqkv_l).astype(jnp.bfloat16),   # (L, H, 3H)
        'bqkv': jnp.stack(bqkv_l),                        # (L, 1, 3H) f32
        'wo': jnp.stack(wo_l).astype(jnp.bfloat16),       # (L, H, H)
        'bo': jnp.stack(bo_l),
        'ln1_g': jnp.stack(ln1g_l),
        'ln1_b': jnp.stack(ln1b_l),
        'wf1': jnp.stack(wf1_l).astype(jnp.bfloat16),     # (L, H, FFN)
        'bf1': jnp.stack(bf1_l),
        'wf2': jnp.stack(wf2_l).astype(jnp.bfloat16),     # (L, FFN, H)
        'bf2': jnp.stack(bf2_l),
        'ln2_g': jnp.stack(ln2g_l),
        'ln2_b': jnp.stack(ln2b_l),
    }
    return params


def _ln_host(x, g, b):
    mu = x.mean(-1, keepdims=True)
    var = ((x - mu) ** 2).mean(-1, keepdims=True)
    return (x - mu) / jnp.sqrt(var + LN_EPS) * g + b


# -------------------------------- forward -----------------------------------
def bert_cls_forward(params, anno_sent, segment_ids, attention_mask, label):
    """Eval-mode BertCls.forward for batch_data['original']['res_sel'].

    Returns (logits, (res_sel_loss, contrastive_loss, ins_loss, del_loss, srch_loss)).
    """
    # --- glue: embeddings (gather) + embedding layernorm (plain JAX) ---
    x = (params['word_emb'][anno_sent]
         + params['pos_emb'][None, :S, :]
         + params['type_emb'][segment_ids])
    x = _ln_host(x, params['emb_ln_g'], params['emb_ln_b']).astype(jnp.float32)
    x2d = x.reshape(B * S, H)

    # additive attention bias, precomputed once (HF convention: -10000*(1-mask))
    bias = (attention_mask.astype(jnp.float32) - 1.0).reshape(B, 1, S) * 10000.0
    labels_f = label.astype(jnp.float32).reshape(B, 1)

    # --- single fused Pallas call: encoder stack + [CLS] + head + loss ---
    logits, res_sel_loss = fused_forward(x2d, bias, labels_f, params)

    # eval path: no contrastive / insertion / deletion / search losses
    contrastive_loss = jnp.zeros((), jnp.float32)
    zero1 = jnp.zeros((1,), jnp.float32)
    return logits, (res_sel_loss, contrastive_loss, zero1, zero1, zero1)


# ---------------------------------- main -------------------------------------
if __name__ == "__main__":
    key = jax.random.PRNGKey(0)
    pkey, dkey = jax.random.split(key)
    params = init_params(pkey)

    k1, k2 = jax.random.split(dkey)
    anno_sent = jax.random.randint(k1, (B, S), 0, VOCAB, dtype=jnp.int32)
    segment_ids = jax.random.randint(k2, (B, S), 0, TYPES, dtype=jnp.int32)
    attention_mask = jnp.ones((B, S), jnp.int32).at[:, S - 2:].set(0)  # pad last 2
    label = jnp.array([1, 0, -1, 1], dtype=jnp.int32)                  # -1 = masked

    logits, losses = bert_cls_forward(params, anno_sent, segment_ids,
                                      attention_mask, label)
    jax.block_until_ready((logits, losses))
    print("KERNEL_OK")
</pallas_src>

<mosaic_0001>
module attributes {stable_mosaic.version = 11 : i64} {
  func.func @fused_bert_cls_kernel(%arg0: memref<32x32xf32, #tpu.memory_space<vmem>>, %arg1: memref<4x1x8xf32, #tpu.memory_space<vmem>>, %arg2: memref<4x1xf32, #tpu.memory_space<vmem>>, %arg3: memref<2x32x96xbf16, #tpu.memory_space<vmem>>, %arg4: memref<2x1x96xf32, #tpu.memory_space<vmem>>, %arg5: memref<2x32x32xbf16, #tpu.memory_space<vmem>>, %arg6: memref<2x1x32xf32, #tpu.memory_space<vmem>>, %arg7: memref<2x1x32xf32, #tpu.memory_space<vmem>>, %arg8: memref<2x1x32xf32, #tpu.memory_space<vmem>>, %arg9: memref<2x32x64xbf16, #tpu.memory_space<vmem>>, %arg10: memref<2x1x64xf32, #tpu.memory_space<vmem>>, %arg11: memref<2x64x32xbf16, #tpu.memory_space<vmem>>, %arg12: memref<2x1x32xf32, #tpu.memory_space<vmem>>, %arg13: memref<2x1x32xf32, #tpu.memory_space<vmem>>, %arg14: memref<2x1x32xf32, #tpu.memory_space<vmem>>, %arg15: memref<1x32xf32, #tpu.memory_space<vmem>>, %arg16: memref<1x1xf32, #tpu.memory_space<vmem>>, %arg17: memref<4x128xf32, #tpu.memory_space<vmem>>, %arg18: memref<1x128xf32, #tpu.memory_space<vmem>>) attributes {dimension_semantics = [], scalar_prefetch = 0 : i64, scratch_operands = 0 : i64, tpu.core_type = #tpu.core_type<tc>} {
    %c0 = arith.constant 0 : index
    %c0_0 = arith.constant 0 : index
    %0 = vector.load %arg0[%c0, %c0_0] : memref<32x32xf32, #tpu.memory_space<vmem>>, vector<32x32xf32>
    %c0_1 = arith.constant 0 : index
    %c0_2 = arith.constant 0 : index
    %c0_3 = arith.constant 0 : index
    %1 = vector.load %arg1[%c0_1, %c0_2, %c0_3] : memref<4x1x8xf32, #tpu.memory_space<vmem>>, vector<4x1x8xf32>
    %2 = arith.truncf %0 : vector<32x32xf32> to vector<32x32xbf16>
    %c0_4 = arith.constant 0 : index
    %c0_5 = arith.constant 0 : index
    %c0_6 = arith.constant 0 : index
    %3 = vector.load %arg3[%c0_4, %c0_5, %c0_6] : memref<2x32x96xbf16, #tpu.memory_space<vmem>>, vector<1x32x96xbf16>
    %4 = vector.shape_cast %3 : vector<1x32x96xbf16> to vector<32x96xbf16>
    %cst = arith.constant dense<0.000000e+00> : vector<32x96xf32>
    %5 = tpu.matmul %2, %4, %cst {dimension_numbers = #tpu.dot_dimension_numbers<[1], [0], [0], [1], [0, 0, 1, 1], [], []>} : vector<32x32xbf16>, vector<32x96xbf16>, vector<32x96xf32> -> vector<32x96xf32>
    %c0_7 = arith.constant 0 : index
    %c0_8 = arith.constant 0 : index
    %c0_9 = arith.constant 0 : index
    %6 = vector.load %arg4[%c0_7, %c0_8, %c0_9] : memref<2x1x96xf32, #tpu.memory_space<vmem>>, vector<1x1x96xf32>
    %7 = vector.shape_cast %6 : vector<1x1x96xf32> to vector<1x96xf32>
    %8 = vector.broadcast %7 : vector<1x96xf32> to vector<32x96xf32>
    %9 = arith.addf %5, %8 : vector<32x96xf32>
    %10 = vector.extract_strided_slice %9 {offsets = [0, 0], sizes = [32, 8], strides = [1, 1]} : vector<32x96xf32> to vector<32x8xf32>
    %11 = vector.shape_cast %10 : vector<32x8xf32> to vector<4x8x8xf32>
    %12 = arith.truncf %11 : vector<4x8x8xf32> to vector<4x8x8xbf16>
    %13 = vector.extract_strided_slice %9 {offsets = [0, 32], sizes = [32, 8], strides = [1, 1]} : vector<32x96xf32> to vector<32x8xf32>
    %14 = vector.shape_cast %13 : vector<32x8xf32> to vector<4x8x8xf32>
    %15 = arith.truncf %14 : vector<4x8x8xf32> to vector<4x8x8xbf16>
    %16 = vector.extract_strided_slice %9 {offsets = [0, 64], sizes = [32, 8], strides = [1, 1]} : vector<32x96xf32> to vector<32x8xf32>
    %17 = vector.shape_cast %16 : vector<32x8xf32> to vector<4x8x8xf32>
    %18 = arith.truncf %17 : vector<4x8x8xf32> to vector<4x8x8xbf16>
    "tpu.trace_start"() <{level = 10 : i32, message = "bqd,bkd->bqk"}> : () -> ()
    %cst_10 = arith.constant dense<0.000000e+00> : vector<4x8x8xf32>
    %19 = tpu.matmul %12, %15, %cst_10 {dimension_numbers = #tpu.dot_dimension_numbers<[2], [2], [1], [1], [0, 0, 0, 1, 1, 1], [0], [0]>} : vector<4x8x8xbf16>, vector<4x8x8xbf16>, vector<4x8x8xf32> -> vector<4x8x8xf32>
    "tpu.trace_stop"() : () -> ()
    %20 = vector.broadcast %1 : vector<4x1x8xf32> to vector<4x8x8xf32>
    %21 = arith.addf %19, %20 : vector<4x8x8xf32>
    %cst_11 = arith.constant dense<0xFF800000> : vector<4x8xf32>
    %22 = vector.multi_reduction <maximumf>, %21, %cst_11 [2] : vector<4x8x8xf32> to vector<4x8xf32>
    %23 = vector.shape_cast %22 : vector<4x8xf32> to vector<4x8x1xf32>
    %24 = vector.broadcast %23 : vector<4x8x1xf32> to vector<4x8x8xf32>
    %25 = arith.subf %21, %24 : vector<4x8x8xf32>
    %26 = math.exp %25 : vector<4x8x8xf32>
    %cst_12 = arith.constant dense<0.000000e+00> : vector<4x8xf32>
    %27 = vector.multi_reduction <add>, %26, %cst_12 [2] : vector<4x8x8xf32> to vector<4x8xf32>
    %28 = vector.shape_cast %27 : vector<4x8xf32> to vector<4x8x1xf32>
    %29 = tpu.reciprocal %28 {approx = true} : vector<4x8x1xf32> -> vector<4x8x1xf32>
    %30 = vector.broadcast %29 : vector<4x8x1xf32> to vector<4x8x8xf32>
    %31 = arith.mulf %26, %30 : vector<4x8x8xf32>
    %32 = arith.truncf %31 : vector<4x8x8xf32> to vector<4x8x8xbf16>
    "tpu.trace_start"() <{level = 10 : i32, message = "bqk,bkd->bqd"}> : () -> ()
    %cst_13 = arith.constant dense<0.000000e+00> : vector<4x8x8xf32>
    %33 = tpu.matmul %32, %18, %cst_13 {dimension_numbers = #tpu.dot_dimension_numbers<[2], [1], [1], [2], [0, 0, 0, 1, 1, 2], [0], [0]>} : vector<4x8x8xbf16>, vector<4x8x8xbf16>, vector<4x8x8xf32> -> vector<4x8x8xf32>
    "tpu.trace_stop"() : () -> ()
    %34 = vector.shape_cast %33 : vector<4x8x8xf32> to vector<32x8xf32>
    %35 = vector.extract_strided_slice %9 {offsets = [0, 8], sizes = [32, 8], strides = [1, 1]} : vector<32x96xf32> to vector<32x8xf32>
    %36 = vector.shape_cast %35 : vector<32x8xf32> to vector<4x8x8xf32>
    %37 = arith.truncf %36 : vector<4x8x8xf32> to vector<4x8x8xbf16>
    %38 = vector.extract_strided_slice %9 {offsets = [0, 40], sizes = [32, 8], strides = [1, 1]} : vector<32x96xf32> to vector<32x8xf32>
    %39 = vector.shape_cast %38 : vector<32x8xf32> to vector<4x8x8xf32>
    %40 = arith.truncf %39 : vector<4x8x8xf32> to vector<4x8x8xbf16>
    %41 = vector.extract_strided_slice %9 {offsets = [0, 72], sizes = [32, 8], strides = [1, 1]} : vector<32x96xf32> to vector<32x8xf32>
    %42 = vector.shape_cast %41 : vector<32x8xf32> to vector<4x8x8xf32>
    %43 = arith.truncf %42 : vector<4x8x8xf32> to vector<4x8x8xbf16>
    "tpu.trace_start"() <{level = 10 : i32, message = "bqd,bkd->bqk"}> : () -> ()
    %cst_14 = arith.constant dense<0.000000e+00> : vector<4x8x8xf32>
    %44 = tpu.matmul %37, %40, %cst_14 {dimension_numbers = #tpu.dot_dimension_numbers<[2], [2], [1], [1], [0, 0, 0, 1, 1, 1], [0], [0]>} : vector<4x8x8xbf16>, vector<4x8x8xbf16>, vector<4x8x8xf32> -> vector<4x8x8xf32>
    "tpu.trace_stop"() : () -> ()
    %45 = vector.broadcast %1 : vector<4x1x8xf32> to vector<4x8x8xf32>
    %46 = arith.addf %44, %45 : vector<4x8x8xf32>
    %cst_15 = arith.constant dense<0xFF800000> : vector<4x8xf32>
    %47 = vector.multi_reduction <maximumf>, %46, %cst_15 [2] : vector<4x8x8xf32> to vector<4x8xf32>
    %48 = vector.shape_cast %47 : vector<4x8xf32> to vector<4x8x1xf32>
    %49 = vector.broadcast %48 : vector<4x8x1xf32> to vector<4x8x8xf32>
    %50 = arith.subf %46, %49 : vector<4x8x8xf32>
    %51 = math.exp %50 : vector<4x8x8xf32>
    %cst_16 = arith.constant dense<0.000000e+00> : vector<4x8xf32>
    %52 = vector.multi_reduction <add>, %51, %cst_16 [2] : vector<4x8x8xf32> to vector<4x8xf32>
    %53 = vector.shape_cast %52 : vector<4x8xf32> to vector<4x8x1xf32>
    %54 = tpu.reciprocal %53 {approx = true} : vector<4x8x1xf32> -> vector<4x8x1xf32>
    %55 = vector.broadcast %54 : vector<4x8x1xf32> to vector<4x8x8xf32>
    %56 = arith.mulf %51, %55 : vector<4x8x8xf32>
    %57 = arith.truncf %56 : vector<4x8x8xf32> to vector<4x8x8xbf16>
    "tpu.trace_start"() <{level = 10 : i32, message = "bqk,bkd->bqd"}> : () -> ()
    %cst_17 = arith.constant dense<0.000000e+00> : vector<4x8x8xf32>
    %58 = tpu.matmul %57, %43, %cst_17 {dimension_numbers = #tpu.dot_dimension_numbers<[2], [1], [1], [2], [0, 0, 0, 1, 1, 2], [0], [0]>} : vector<4x8x8xbf16>, vector<4x8x8xbf16>, vector<4x8x8xf32> -> vector<4x8x8xf32>
    "tpu.trace_stop"() : () -> ()
    %59 = vector.shape_cast %58 : vector<4x8x8xf32> to vector<32x8xf32>
    %60 = vector.extract_strided_slice %9 {offsets = [0, 16], sizes = [32, 8], strides = [1, 1]} : vector<32x96xf32> to vector<32x8xf32>
    %61 = vector.shape_cast %60 : vector<32x8xf32> to vector<4x8x8xf32>
    %62 = arith.truncf %61 : vector<4x8x8xf32> to vector<4x8x8xbf16>
    %63 = vector.extract_strided_slice %9 {offsets = [0, 48], sizes = [32, 8], strides = [1, 1]} : vector<32x96xf32> to vector<32x8xf32>
    %64 = vector.shape_cast %63 : vector<32x8xf32> to vector<4x8x8xf32>
    %65 = arith.truncf %64 : vector<4x8x8xf32> to vector<4x8x8xbf16>
    %66 = vector.extract_strided_slice %9 {offsets = [0, 80], sizes = [32, 8], strides = [1, 1]} : vector<32x96xf32> to vector<32x8xf32>
    %67 = vector.shape_cast %66 : vector<32x8xf32> to vector<4x8x8xf32>
    %68 = arith.truncf %67 : vector<4x8x8xf32> to vector<4x8x8xbf16>
    "tpu.trace_start"() <{level = 10 : i32, message = "bqd,bkd->bqk"}> : () -> ()
    %cst_18 = arith.constant dense<0.000000e+00> : vector<4x8x8xf32>
    %69 = tpu.matmul %62, %65, %cst_18 {dimension_numbers = #tpu.dot_dimension_numbers<[2], [2], [1], [1], [0, 0, 0, 1, 1, 1], [0], [0]>} : vector<4x8x8xbf16>, vector<4x8x8xbf16>, vector<4x8x8xf32> -> vector<4x8x8xf32>
    "tpu.trace_stop"() : () -> ()
    %70 = vector.broadcast %1 : vector<4x1x8xf32> to vector<4x8x8xf32>
    %71 = arith.addf %69, %70 : vector<4x8x8xf32>
    %cst_19 = arith.constant dense<0xFF800000> : vector<4x8xf32>
    %72 = vector.multi_reduction <maximumf>, %71, %cst_19 [2] : vector<4x8x8xf32> to vector<4x8xf32>
    %73 = vector.shape_cast %72 : vector<4x8xf32> to vector<4x8x1xf32>
    %74 = vector.broadcast %73 : vector<4x8x1xf32> to vector<4x8x8xf32>
    %75 = arith.subf %71, %74 : vector<4x8x8xf32>
    %76 = math.exp %75 : vector<4x8x8xf32>
    %cst_20 = arith.constant dense<0.000000e+00> : vector<4x8xf32>
    %77 = vector.multi_reduction <add>, %76, %cst_20 [2] : vector<4x8x8xf32> to vector<4x8xf32>
    %78 = vector.shape_cast %77 : vector<4x8xf32> to vector<4x8x1xf32>
    %79 = tpu.reciprocal %78 {approx = true} : vector<4x8x1xf32> -> vector<4x8x1xf32>
    %80 = vector.broadcast %79 : vector<4x8x1xf32> to vector<4x8x8xf32>
    %81 = arith.mulf %76, %80 : vector<4x8x8xf32>
    %82 = arith.truncf %81 : vector<4x8x8xf32> to vector<4x8x8xbf16>
    "tpu.trace_start"() <{level = 10 : i32, message = "bqk,bkd->bqd"}> : () -> ()
    %cst_21 = arith.constant dense<0.000000e+00> : vector<4x8x8xf32>
    %83 = tpu.matmul %82, %68, %cst_21 {dimension_numbers = #tpu.dot_dimension_numbers<[2], [1], [1], [2], [0, 0, 0, 1, 1, 2], [0], [0]>} : vector<4x8x8xbf16>, vector<4x8x8xbf16>, vector<4x8x8xf32> -> vector<4x8x8xf32>
    "tpu.trace_stop"() : () -> ()
    %84 = vector.shape_cast %83 : vector<4x8x8xf32> to vector<32x8xf32>
    %85 = vector.extract_strided_slice %9 {offsets = [0, 24], sizes = [32, 8], strides = [1, 1]} : vector<32x96xf32> to vector<32x8xf32>
    %86 = vector.shape_cast %85 : vector<32x8xf32> to vector<4x8x8xf32>
    %87 = arith.truncf %86 : vector<4x8x8xf32> to vector<4x8x8xbf16>
    %88 = vector.extract_strided_slice %9 {offsets = [0, 56], sizes = [32, 8], strides = [1, 1]} : vector<32x96xf32> to vector<32x8xf32>
    %89 = vector.shape_cast %88 : vector<32x8xf32> to vector<4x8x8xf32>
    %90 = arith.truncf %89 : vector<4x8x8xf32> to vector<4x8x8xbf16>
    %91 = vector.extract_strided_slice %9 {offsets = [0, 88], sizes = [32, 8], strides = [1, 1]} : vector<32x96xf32> to vector<32x8xf32>
    %92 = vector.shape_cast %91 : vector<32x8xf32> to vector<4x8x8xf32>
    %93 = arith.truncf %92 : vector<4x8x8xf32> to vector<4x8x8xbf16>
    "tpu.trace_start"() <{level = 10 : i32, message = "bqd,bkd->bqk"}> : () -> ()
    %cst_22 = arith.constant dense<0.000000e+00> : vector<4x8x8xf32>
    %94 = tpu.matmul %87, %90, %cst_22 {dimension_numbers = #tpu.dot_dimension_numbers<[2], [2], [1], [1], [0, 0, 0, 1, 1, 1], [0], [0]>} : vector<4x8x8xbf16>, vector<4x8x8xbf16>, vector<4x8x8xf32> -> vector<4x8x8xf32>
    "tpu.trace_stop"() : () -> ()
    %95 = vector.broadcast %1 : vector<4x1x8xf32> to vector<4x8x8xf32>
    %96 = arith.addf %94, %95 : vector<4x8x8xf32>
    %cst_23 = arith.constant dense<0xFF800000> : vector<4x8xf32>
    %97 = vector.multi_reduction <maximumf>, %96, %cst_23 [2] : vector<4x8x8xf32> to vector<4x8xf32>
    %98 = vector.shape_cast %97 : vector<4x8xf32> to vector<4x8x1xf32>
    %99 = vector.broadcast %98 : vector<4x8x1xf32> to vector<4x8x8xf32>
    %100 = arith.subf %96, %99 : vector<4x8x8xf32>
    %101 = math.exp %100 : vector<4x8x8xf32>
    %cst_24 = arith.constant dense<0.000000e+00> : vector<4x8xf32>
    %102 = vector.multi_reduction <add>, %101, %cst_24 [2] : vector<4x8x8xf32> to vector<4x8xf32>
    %103 = vector.shape_cast %102 : vector<4x8xf32> to vector<4x8x1xf32>
    %104 = tpu.reciprocal %103 {approx = true} : vector<4x8x1xf32> -> vector<4x8x1xf32>
    %105 = vector.broadcast %104 : vector<4x8x1xf32> to vector<4x8x8xf32>
    %106 = arith.mulf %101, %105 : vector<4x8x8xf32>
    %107 = arith.truncf %106 : vector<4x8x8xf32> to vector<4x8x8xbf16>
    "tpu.trace_start"() <{level = 10 : i32, message = "bqk,bkd->bqd"}> : () -> ()
    %cst_25 = arith.constant dense<0.000000e+00> : vector<4x8x8xf32>
    %108 = tpu.matmul %107, %93, %cst_25 {dimension_numbers = #tpu.dot_dimension_numbers<[2], [1], [1], [2], [0, 0, 0, 1, 1, 2], [0], [0]>} : vector<4x8x8xbf16>, vector<4x8x8xbf16>, vector<4x8x8xf32> -> vector<4x8x8xf32>
    "tpu.trace_stop"() : () -> ()
    %109 = vector.shape_cast %108 : vector<4x8x8xf32> to vector<32x8xf32>
    %110 = tpu.concatenate %34, %59, %84, %109 in 1 : vector<32x8xf32>, vector<32x8xf32>, vector<32x8xf32>, vector<32x8xf32> -> vector<32x32xf32>
    %111 = arith.truncf %110 : vector<32x32xf32> to vector<32x32xbf16>
    %c0_26 = arith.constant 0 : index
    %c0_27 = arith.constant 0 : index
    %c0_28 = arith.constant 0 : index
    %112 = vector.load %arg5[%c0_26, %c0_27, %c0_28] : memref<2x32x32xbf16, #tpu.memory_space<vmem>>, vector<1x32x32xbf16>
    %113 = vector.shape_cast %112 : vector<1x32x32xbf16> to vector<32x32xbf16>
    %cst_29 = arith.constant dense<0.000000e+00> : vector<32x32xf32>
    %114 = tpu.matmul %111, %113, %cst_29 {dimension_numbers = #tpu.dot_dimension_numbers<[1], [0], [0], [1], [0, 0, 1, 1], [], []>} : vector<32x32xbf16>, vector<32x32xbf16>, vector<32x32xf32> -> vector<32x32xf32>
    %c0_30 = arith.constant 0 : index
    %c0_31 = arith.constant 0 : index
    %c0_32 = arith.constant 0 : index
    %115 = vector.load %arg6[%c0_30, %c0_31, %c0_32] : memref<2x1x32xf32, #tpu.memory_space<vmem>>, vector<1x1x32xf32>
    %116 = vector.shape_cast %115 : vector<1x1x32xf32> to vector<1x32xf32>
    %117 = vector.broadcast %116 : vector<1x32xf32> to vector<32x32xf32>
    %118 = arith.addf %114, %117 : vector<32x32xf32>
    %119 = arith.addf %0, %118 : vector<32x32xf32>
    %c0_33 = arith.constant 0 : index
    %c0_34 = arith.constant 0 : index
    %c0_35 = arith.constant 0 : index
    %120 = vector.load %arg7[%c0_33, %c0_34, %c0_35] : memref<2x1x32xf32, #tpu.memory_space<vmem>>, vector<1x1x32xf32>
    %121 = vector.shape_cast %120 : vector<1x1x32xf32> to vector<1x32xf32>
    %c0_36 = arith.constant 0 : index
    %c0_37 = arith.constant 0 : index
    %c0_38 = arith.constant 0 : index
    %122 = vector.load %arg8[%c0_36, %c0_37, %c0_38] : memref<2x1x32xf32, #tpu.memory_space<vmem>>, vector<1x1x32xf32>
    %123 = vector.shape_cast %122 : vector<1x1x32xf32> to vector<1x32xf32>
    %cst_39 = arith.constant dense<0.000000e+00> : vector<32xf32>
    %124 = vector.multi_reduction <add>, %119, %cst_39 [1] : vector<32x32xf32> to vector<32xf32>
    %125 = vector.shape_cast %124 : vector<32xf32> to vector<32x1xf32>
    %cst_40 = arith.constant 3.200000e+01 : f32
    %126 = vector.broadcast %cst_40 : f32 to vector<32x1xf32>
    %127 = arith.divf %125, %126 : vector<32x1xf32>
    %128 = vector.broadcast %127 : vector<32x1xf32> to vector<32x32xf32>
    %129 = arith.subf %119, %128 : vector<32x32xf32>
    %130 = arith.mulf %129, %129 : vector<32x32xf32>
    %cst_41 = arith.constant dense<0.000000e+00> : vector<32xf32>
    %131 = vector.multi_reduction <add>, %130, %cst_41 [1] : vector<32x32xf32> to vector<32xf32>
    %132 = vector.shape_cast %131 : vector<32xf32> to vector<32x1xf32>
    %cst_42 = arith.constant 3.200000e+01 : f32
    %133 = vector.broadcast %cst_42 : f32 to vector<32x1xf32>
    %134 = arith.divf %132, %133 : vector<32x1xf32>
    %135 = vector.broadcast %127 : vector<32x1xf32> to vector<32x32xf32>
    %136 = arith.subf %119, %135 : vector<32x32xf32>
    %cst_43 = arith.constant 9.99999996E-13 : f32
    %137 = vector.broadcast %cst_43 : f32 to vector<32x1xf32>
    %138 = arith.addf %134, %137 : vector<32x1xf32>
    %139 = math.rsqrt %138 : vector<32x1xf32>
    %140 = vector.broadcast %139 : vector<32x1xf32> to vector<32x32xf32>
    %141 = arith.mulf %136, %140 : vector<32x32xf32>
    %142 = vector.broadcast %121 : vector<1x32xf32> to vector<32x32xf32>
    %143 = arith.mulf %141, %142 : vector<32x32xf32>
    %144 = vector.broadcast %123 : vector<1x32xf32> to vector<32x32xf32>
    %145 = arith.addf %143, %144 : vector<32x32xf32>
    %146 = arith.truncf %145 : vector<32x32xf32> to vector<32x32xbf16>
    %c0_44 = arith.constant 0 : index
    %c0_45 = arith.constant 0 : index
    %c0_46 = arith.constant 0 : index
    %147 = vector.load %arg9[%c0_44, %c0_45, %c0_46] : memref<2x32x64xbf16, #tpu.memory_space<vmem>>, vector<1x32x64xbf16>
    %148 = vector.shape_cast %147 : vector<1x32x64xbf16> to vector<32x64xbf16>
    %cst_47 = arith.constant dense<0.000000e+00> : vector<32x64xf32>
    %149 = tpu.matmul %146, %148, %cst_47 {dimension_numbers = #tpu.dot_dimension_numbers<[1], [0], [0], [1], [0, 0, 1, 1], [], []>} : vector<32x32xbf16>, vector<32x64xbf16>, vector<32x64xf32> -> vector<32x64xf32>
    %c0_48 = arith.constant 0 : index
    %c0_49 = arith.constant 0 : index
    %c0_50 = arith.constant 0 : index
    %150 = vector.load %arg10[%c0_48, %c0_49, %c0_50] : memref<2x1x64xf32, #tpu.memory_space<vmem>>, vector<1x1x64xf32>
    %151 = vector.shape_cast %150 : vector<1x1x64xf32> to vector<1x64xf32>
    %152 = vector.broadcast %151 : vector<1x64xf32> to vector<32x64xf32>
    %153 = arith.addf %149, %152 : vector<32x64xf32>
    %154 = arith.mulf %153, %153 : vector<32x64xf32>
    %155 = arith.mulf %153, %154 : vector<32x64xf32>
    %cst_51 = arith.constant 4.471500e-02 : f32
    %156 = vector.broadcast %cst_51 : f32 to vector<32x64xf32>
    %157 = arith.mulf %156, %155 : vector<32x64xf32>
    %158 = arith.addf %153, %157 : vector<32x64xf32>
    %cst_52 = arith.constant 0.797884583 : f32
    %159 = vector.broadcast %cst_52 : f32 to vector<32x64xf32>
    %160 = arith.mulf %159, %158 : vector<32x64xf32>
    %161 = math.tanh %160 : vector<32x64xf32>
    %cst_53 = arith.constant 1.000000e+00 : f32
    %162 = vector.broadcast %cst_53 : f32 to vector<32x64xf32>
    %163 = arith.addf %162, %161 : vector<32x64xf32>
    %cst_54 = arith.constant 5.000000e-01 : f32
    %164 = vector.broadcast %cst_54 : f32 to vector<32x64xf32>
    %165 = arith.mulf %164, %163 : vector<32x64xf32>
    %166 = arith.mulf %153, %165 : vector<32x64xf32>
    %167 = arith.truncf %166 : vector<32x64xf32> to vector<32x64xbf16>
    %c0_55 = arith.constant 0 : index
    %c0_56 = arith.constant 0 : index
    %c0_57 = arith.constant 0 : index
    %168 = vector.load %arg11[%c0_55, %c0_56, %c0_57] : memref<2x64x32xbf16, #tpu.memory_space<vmem>>, vector<1x64x32xbf16>
    %169 = vector.shape_cast %168 : vector<1x64x32xbf16> to vector<64x32xbf16>
    %cst_58 = arith.constant dense<0.000000e+00> : vector<32x32xf32>
    %170 = tpu.matmul %167, %169, %cst_58 {dimension_numbers = #tpu.dot_dimension_numbers<[1], [0], [0], [1], [0, 0, 1, 1], [], []>} : vector<32x64xbf16>, vector<64x32xbf16>, vector<32x32xf32> -> vector<32x32xf32>
    %c0_59 = arith.constant 0 : index
    %c0_60 = arith.constant 0 : index
    %c0_61 = arith.constant 0 : index
    %171 = vector.load %arg12[%c0_59, %c0_60, %c0_61] : memref<2x1x32xf32, #tpu.memory_space<vmem>>, vector<1x1x32xf32>
    %172 = vector.shape_cast %171 : vector<1x1x32xf32> to vector<1x32xf32>
    %173 = vector.broadcast %172 : vector<1x32xf32> to vector<32x32xf32>
    %174 = arith.addf %170, %173 : vector<32x32xf32>
    %175 = arith.addf %145, %174 : vector<32x32xf32>
    %c0_62 = arith.constant 0 : index
    %c0_63 = arith.constant 0 : index
    %c0_64 = arith.constant 0 : index
    %176 = vector.load %arg13[%c0_62, %c0_63, %c0_64] : memref<2x1x32xf32, #tpu.memory_space<vmem>>, vector<1x1x32xf32>
    %177 = vector.shape_cast %176 : vector<1x1x32xf32> to vector<1x32xf32>
    %c0_65 = arith.constant 0 : index
    %c0_66 = arith.constant 0 : index
    %c0_67 = arith.constant 0 : index
    %178 = vector.load %arg14[%c0_65, %c0_66, %c0_67] : memref<2x1x32xf32, #tpu.memory_space<vmem>>, vector<1x1x32xf32>
    %179 = vector.shape_cast %178 : vector<1x1x32xf32> to vector<1x32xf32>
    %cst_68 = arith.constant dense<0.000000e+00> : vector<32xf32>
    %180 = vector.multi_reduction <add>, %175, %cst_68 [1] : vector<32x32xf32> to vector<32xf32>
    %181 = vector.shape_cast %180 : vector<32xf32> to vector<32x1xf32>
    %cst_69 = arith.constant 3.200000e+01 : f32
    %182 = vector.broadcast %cst_69 : f32 to vector<32x1xf32>
    %183 = arith.divf %181, %182 : vector<32x1xf32>
    %184 = vector.broadcast %183 : vector<32x1xf32> to vector<32x32xf32>
    %185 = arith.subf %175, %184 : vector<32x32xf32>
    %186 = arith.mulf %185, %185 : vector<32x32xf32>
    %cst_70 = arith.constant dense<0.000000e+00> : vector<32xf32>
    %187 = vector.multi_reduction <add>, %186, %cst_70 [1] : vector<32x32xf32> to vector<32xf32>
    %188 = vector.shape_cast %187 : vector<32xf32> to vector<32x1xf32>
    %cst_71 = arith.constant 3.200000e+01 : f32
    %189 = vector.broadcast %cst_71 : f32 to vector<32x1xf32>
    %190 = arith.divf %188, %189 : vector<32x1xf32>
    %191 = vector.broadcast %183 : vector<32x1xf32> to vector<32x32xf32>
    %192 = arith.subf %175, %191 : vector<32x32xf32>
    %cst_72 = arith.constant 9.99999996E-13 : f32
    %193 = vector.broadcast %cst_72 : f32 to vector<32x1xf32>
    %194 = arith.addf %190, %193 : vector<32x1xf32>
    %195 = math.rsqrt %194 : vector<32x1xf32>
    %196 = vector.broadcast %195 : vector<32x1xf32> to vector<32x32xf32>
    %197 = arith.mulf %192, %196 : vector<32x32xf32>
    %198 = vector.broadcast %177 : vector<1x32xf32> to vector<32x32xf32>
    %199 = arith.mulf %197, %198 : vector<32x32xf32>
    %200 = vector.broadcast %179 : vector<1x32xf32> to vector<32x32xf32>
    %201 = arith.addf %199, %200 : vector<32x32xf32>
    %202 = arith.truncf %201 : vector<32x32xf32> to vector<32x32xbf16>
    %c1 = arith.constant 1 : index
    %c0_73 = arith.constant 0 : index
    %c0_74 = arith.constant 0 : index
    %203 = vector.load %arg3[%c1, %c0_73, %c0_74] : memref<2x32x96xbf16, #tpu.memory_space<vmem>>, vector<1x32x96xbf16>
    %204 = vector.shape_cast %203 : vector<1x32x96xbf16> to vector<32x96xbf16>
    %cst_75 = arith.constant dense<0.000000e+00> : vector<32x96xf32>
    %205 = tpu.matmul %202, %204, %cst_75 {dimension_numbers = #tpu.dot_dimension_numbers<[1], [0], [0], [1], [0, 0, 1, 1], [], []>} : vector<32x32xbf16>, vector<32x96xbf16>, vector<32x96xf32> -> vector<32x96xf32>
    %c1_76 = arith.constant 1 : index
    %c0_77 = arith.constant 0 : index
    %c0_78 = arith.constant 0 : index
    %206 = vector.load %arg4[%c1_76, %c0_77, %c0_78] : memref<2x1x96xf32, #tpu.memory_space<vmem>>, vector<1x1x96xf32>
    %207 = vector.shape_cast %206 : vector<1x1x96xf32> to vector<1x96xf32>
    %208 = vector.broadcast %207 : vector<1x96xf32> to vector<32x96xf32>
    %209 = arith.addf %205, %208 : vector<32x96xf32>
    %210 = vector.extract_strided_slice %209 {offsets = [0, 0], sizes = [32, 8], strides = [1, 1]} : vector<32x96xf32> to vector<32x8xf32>
    %211 = vector.shape_cast %210 : vector<32x8xf32> to vector<4x8x8xf32>
    %212 = arith.truncf %211 : vector<4x8x8xf32> to vector<4x8x8xbf16>
    %213 = vector.extract_strided_slice %209 {offsets = [0, 32], sizes = [32, 8], strides = [1, 1]} : vector<32x96xf32> to vector<32x8xf32>
    %214 = vector.shape_cast %213 : vector<32x8xf32> to vector<4x8x8xf32>
    %215 = arith.truncf %214 : vector<4x8x8xf32> to vector<4x8x8xbf16>
    %216 = vector.extract_strided_slice %209 {offsets = [0, 64], sizes = [32, 8], strides = [1, 1]} : vector<32x96xf32> to vector<32x8xf32>
    %217 = vector.shape_cast %216 : vector<32x8xf32> to vector<4x8x8xf32>
    %218 = arith.truncf %217 : vector<4x8x8xf32> to vector<4x8x8xbf16>
    "tpu.trace_start"() <{level = 10 : i32, message = "bqd,bkd->bqk"}> : () -> ()
    %cst_79 = arith.constant dense<0.000000e+00> : vector<4x8x8xf32>
    %219 = tpu.matmul %212, %215, %cst_79 {dimension_numbers = #tpu.dot_dimension_numbers<[2], [2], [1], [1], [0, 0, 0, 1, 1, 1], [0], [0]>} : vector<4x8x8xbf16>, vector<4x8x8xbf16>, vector<4x8x8xf32> -> vector<4x8x8xf32>
    "tpu.trace_stop"() : () -> ()
    %220 = vector.broadcast %1 : vector<4x1x8xf32> to vector<4x8x8xf32>
    %221 = arith.addf %219, %220 : vector<4x8x8xf32>
    %cst_80 = arith.constant dense<0xFF800000> : vector<4x8xf32>
    %222 = vector.multi_reduction <maximumf>, %221, %cst_80 [2] : vector<4x8x8xf32> to vector<4x8xf32>
    %223 = vector.shape_cast %222 : vector<4x8xf32> to vector<4x8x1xf32>
    %224 = vector.broadcast %223 : vector<4x8x1xf32> to vector<4x8x8xf32>
    %225 = arith.subf %221, %224 : vector<4x8x8xf32>
    %226 = math.exp %225 : vector<4x8x8xf32>
    %cst_81 = arith.constant dense<0.000000e+00> : vector<4x8xf32>
    %227 = vector.multi_reduction <add>, %226, %cst_81 [2] : vector<4x8x8xf32> to vector<4x8xf32>
    %228 = vector.shape_cast %227 : vector<4x8xf32> to vector<4x8x1xf32>
    %229 = tpu.reciprocal %228 {approx = true} : vector<4x8x1xf32> -> vector<4x8x1xf32>
    %230 = vector.broadcast %229 : vector<4x8x1xf32> to vector<4x8x8xf32>
    %231 = arith.mulf %226, %230 : vector<4x8x8xf32>
    %232 = arith.truncf %231 : vector<4x8x8xf32> to vector<4x8x8xbf16>
    "tpu.trace_start"() <{level = 10 : i32, message = "bqk,bkd->bqd"}> : () -> ()
    %cst_82 = arith.constant dense<0.000000e+00> : vector<4x8x8xf32>
    %233 = tpu.matmul %232, %218, %cst_82 {dimension_numbers = #tpu.dot_dimension_numbers<[2], [1], [1], [2], [0, 0, 0, 1, 1, 2], [0], [0]>} : vector<4x8x8xbf16>, vector<4x8x8xbf16>, vector<4x8x8xf32> -> vector<4x8x8xf32>
    "tpu.trace_stop"() : () -> ()
    %234 = vector.shape_cast %233 : vector<4x8x8xf32> to vector<32x8xf32>
    %235 = vector.extract_strided_slice %209 {offsets = [0, 8], sizes = [32, 8], strides = [1, 1]} : vector<32x96xf32> to vector<32x8xf32>
    %236 = vector.shape_cast %235 : vector<32x8xf32> to vector<4x8x8xf32>
    %237 = arith.truncf %236 : vector<4x8x8xf32> to vector<4x8x8xbf16>
    %238 = vector.extract_strided_slice %209 {offsets = [0, 40], sizes = [32, 8], strides = [1, 1]} : vector<32x96xf32> to vector<32x8xf32>
    %239 = vector.shape_cast %238 : vector<32x8xf32> to vector<4x8x8xf32>
    %240 = arith.truncf %239 : vector<4x8x8xf32> to vector<4x8x8xbf16>
    %241 = vector.extract_strided_slice %209 {offsets = [0, 72], sizes = [32, 8], strides = [1, 1]} : vector<32x96xf32> to vector<32x8xf32>
    %242 = vector.shape_cast %241 : vector<32x8xf32> to vector<4x8x8xf32>
    %243 = arith.truncf %242 : vector<4x8x8xf32> to vector<4x8x8xbf16>
    "tpu.trace_start"() <{level = 10 : i32, message = "bqd,bkd->bqk"}> : () -> ()
    %cst_83 = arith.constant dense<0.000000e+00> : vector<4x8x8xf32>
    %244 = tpu.matmul %237, %240, %cst_83 {dimension_numbers = #tpu.dot_dimension_numbers<[2], [2], [1], [1], [0, 0, 0, 1, 1, 1], [0], [0]>} : vector<4x8x8xbf16>, vector<4x8x8xbf16>, vector<4x8x8xf32> -> vector<4x8x8xf32>
    "tpu.trace_stop"() : () -> ()
    %245 = vector.broadcast %1 : vector<4x1x8xf32> to vector<4x8x8xf32>
    %246 = arith.addf %244, %245 : vector<4x8x8xf32>
    %cst_84 = arith.constant dense<0xFF800000> : vector<4x8xf32>
    %247 = vector.multi_reduction <maximumf>, %246, %cst_84 [2] : vector<4x8x8xf32> to vector<4x8xf32>
    %248 = vector.shape_cast %247 : vector<4x8xf32> to vector<4x8x1xf32>
    %249 = vector.broadcast %248 : vector<4x8x1xf32> to vector<4x8x8xf32>
    %250 = arith.subf %246, %249 : vector<4x8x8xf32>
    %251 = math.exp %250 : vector<4x8x8xf32>
    %cst_85 = arith.constant dense<0.000000e+00> : vector<4x8xf32>
    %252 = vector.multi_reduction <add>, %251, %cst_85 [2] : vector<4x8x8xf32> to vector<4x8xf32>
    %253 = vector.shape_cast %252 : vector<4x8xf32> to vector<4x8x1xf32>
    %254 = tpu.reciprocal %253 {approx = true} : vector<4x8x1xf32> -> vector<4x8x1xf32>
    %255 = vector.broadcast %254 : vector<4x8x1xf32> to vector<4x8x8xf32>
    %256 = arith.mulf %251, %255 : vector<4x8x8xf32>
    %257 = arith.truncf %256 : vector<4x8x8xf32> to vector<4x8x8xbf16>
    "tpu.trace_start"() <{level = 10 : i32, message = "bqk,bkd->bqd"}> : () -> ()
    %cst_86 = arith.constant dense<0.000000e+00> : vector<4x8x8xf32>
    %258 = tpu.matmul %257, %243, %cst_86 {dimension_numbers = #tpu.dot_dimension_numbers<[2], [1], [1], [2], [0, 0, 0, 1, 1, 2], [0], [0]>} : vector<4x8x8xbf16>, vector<4x8x8xbf16>, vector<4x8x8xf32> -> vector<4x8x8xf32>
    "tpu.trace_stop"() : () -> ()
    %259 = vector.shape_cast %258 : vector<4x8x8xf32> to vector<32x8xf32>
    %260 = vector.extract_strided_slice %209 {offsets = [0, 16], sizes = [32, 8], strides = [1, 1]} : vector<32x96xf32> to vector<32x8xf32>
    %261 = vector.shape_cast %260 : vector<32x8xf32> to vector<4x8x8xf32>
    %262 = arith.truncf %261 : vector<4x8x8xf32> to vector<4x8x8xbf16>
    %263 = vector.extract_strided_slice %209 {offsets = [0, 48], sizes = [32, 8], strides = [1, 1]} : vector<32x96xf32> to vector<32x8xf32>
    %264 = vector.shape_cast %263 : vector<32x8xf32> to vector<4x8x8xf32>
    %265 = arith.truncf %264 : vector<4x8x8xf32> to vector<4x8x8xbf16>
    %266 = vector.extract_strided_slice %209 {offsets = [0, 80], sizes = [32, 8], strides = [1, 1]} : vector<32x96xf32> to vector<32x8xf32>
    %267 = vector.shape_cast %266 : vector<32x8xf32> to vector<4x8x8xf32>
    %268 = arith.truncf %267 : vector<4x8x8xf32> to vector<4x8x8xbf16>
    "tpu.trace_start"() <{level = 10 : i32, message = "bqd,bkd->bqk"}> : () -> ()
    %cst_87 = arith.constant dense<0.000000e+00> : vector<4x8x8xf32>
    %269 = tpu.matmul %262, %265, %cst_87 {dimension_numbers = #tpu.dot_dimension_numbers<[2], [2], [1], [1], [0, 0, 0, 1, 1, 1], [0], [0]>} : vector<4x8x8xbf16>, vector<4x8x8xbf16>, vector<4x8x8xf32> -> vector<4x8x8xf32>
    "tpu.trace_stop"() : () -> ()
    %270 = vector.broadcast %1 : vector<4x1x8xf32> to vector<4x8x8xf32>
    %271 = arith.addf %269, %270 : vector<4x8x8xf32>
    %cst_88 = arith.constant dense<0xFF800000> : vector<4x8xf32>
    %272 = vector.multi_reduction <maximumf>, %271, %cst_88 [2] : vector<4x8x8xf32> to vector<4x8xf32>
    %273 = vector.shape_cast %272 : vector<4x8xf32> to vector<4x8x1xf32>
    %274 = vector.broadcast %273 : vector<4x8x1xf32> to vector<4x8x8xf32>
    %275 = arith.subf %271, %274 : vector<4x8x8xf32>
    %276 = math.exp %275 : vector<4x8x8xf32>
    %cst_89 = arith.constant dense<0.000000e+00> : vector<4x8xf32>
    %277 = vector.multi_reduction <add>, %276, %cst_89 [2] : vector<4x8x8xf32> to vector<4x8xf32>
    %278 = vector.shape_cast %277 : vector<4x8xf32> to vector<4x8x1xf32>
    %279 = tpu.reciprocal %278 {approx = true} : vector<4x8x1xf32> -> vector<4x8x1xf32>
    %280 = vector.broadcast %279 : vector<4x8x1xf32> to vector<4x8x8xf32>
    %281 = arith.mulf %276, %280 : vector<4x8x8xf32>
    %282 = arith.truncf %281 : vector<4x8x8xf32> to vector<4x8x8xbf16>
    "tpu.trace_start"() <{level = 10 : i32, message = "bqk,bkd->bqd"}> : () -> ()
    %cst_90 = arith.constant dense<0.000000e+00> : vector<4x8x8xf32>
    %283 = tpu.matmul %282, %268, %cst_90 {dimension_numbers = #tpu.dot_dimension_numbers<[2], [1], [1], [2], [0, 0, 0, 1, 1, 2], [0], [0]>} : vector<4x8x8xbf16>, vector<4x8x8xbf16>, vector<4x8x8xf32> -> vector<4x8x8xf32>
    "tpu.trace_stop"() : () -> ()
    %284 = vector.shape_cast %283 : vector<4x8x8xf32> to vector<32x8xf32>
    %285 = vector.extract_strided_slice %209 {offsets = [0, 24], sizes = [32, 8], strides = [1, 1]} : vector<32x96xf32> to vector<32x8xf32>
    %286 = vector.shape_cast %285 : vector<32x8xf32> to vector<4x8x8xf32>
    %287 = arith.truncf %286 : vector<4x8x8xf32> to vector<4x8x8xbf16>
    %288 = vector.extract_strided_slice %209 {offsets = [0, 56], sizes = [32, 8], strides = [1, 1]} : vector<32x96xf32> to vector<32x8xf32>
    %289 = vector.shape_cast %288 : vector<32x8xf32> to vector<4x8x8xf32>
    %290 = arith.truncf %289 : vector<4x8x8xf32> to vector<4x8x8xbf16>
    %291 = vector.extract_strided_slice %209 {offsets = [0, 88], sizes = [32, 8], strides = [1, 1]} : vector<32x96xf32> to vector<32x8xf32>
    %292 = vector.shape_cast %291 : vector<32x8xf32> to vector<4x8x8xf32>
    %293 = arith.truncf %292 : vector<4x8x8xf32> to vector<4x8x8xbf16>
    "tpu.trace_start"() <{level = 10 : i32, message = "bqd,bkd->bqk"}> : () -> ()
    %cst_91 = arith.constant dense<0.000000e+00> : vector<4x8x8xf32>
    %294 = tpu.matmul %287, %290, %cst_91 {dimension_numbers = #tpu.dot_dimension_numbers<[2], [2], [1], [1], [0, 0, 0, 1, 1, 1], [0], [0]>} : vector<4x8x8xbf16>, vector<4x8x8xbf16>, vector<4x8x8xf32> -> vector<4x8x8xf32>
    "tpu.trace_stop"() : () -> ()
    %295 = vector.broadcast %1 : vector<4x1x8xf32> to vector<4x8x8xf32>
    %296 = arith.addf %294, %295 : vector<4x8x8xf32>
    %cst_92 = arith.constant dense<0xFF800000> : vector<4x8xf32>
    %297 = vector.multi_reduction <maximumf>, %296, %cst_92 [2] : vector<4x8x8xf32> to vector<4x8xf32>
    %298 = vector.shape_cast %297 : vector<4x8xf32> to vector<4x8x1xf32>
    %299 = vector.broadcast %298 : vector<4x8x1xf32> to vector<4x8x8xf32>
    %300 = arith.subf %296, %299 : vector<4x8x8xf32>
    %301 = math.exp %300 : vector<4x8x8xf32>
    %cst_93 = arith.constant dense<0.000000e+00> : vector<4x8xf32>
    %302 = vector.multi_reduction <add>, %301, %cst_93 [2] : vector<4x8x8xf32> to vector<4x8xf32>
    %303 = vector.shape_cast %302 : vector<4x8xf32> to vector<4x8x1xf32>
    %304 = tpu.reciprocal %303 {approx = true} : vector<4x8x1xf32> -> vector<4x8x1xf32>
    %305 = vector.broadcast %304 : vector<4x8x1xf32> to vector<4x8x8xf32>
    %306 = arith.mulf %301, %305 : vector<4x8x8xf32>
    %307 = arith.truncf %306 : vector<4x8x8xf32> to vector<4x8x8xbf16>
    "tpu.trace_start"() <{level = 10 : i32, message = "bqk,bkd->bqd"}> : () -> ()
    %cst_94 = arith.constant dense<0.000000e+00> : vector<4x8x8xf32>
    %308 = tpu.matmul %307, %293, %cst_94 {dimension_numbers = #tpu.dot_dimension_numbers<[2], [1], [1], [2], [0, 0, 0, 1, 1, 2], [0], [0]>} : vector<4x8x8xbf16>, vector<4x8x8xbf16>, vector<4x8x8xf32> -> vector<4x8x8xf32>
    "tpu.trace_stop"() : () -> ()
    %309 = vector.shape_cast %308 : vector<4x8x8xf32> to vector<32x8xf32>
    %310 = tpu.concatenate %234, %259, %284, %309 in 1 : vector<32x8xf32>, vector<32x8xf32>, vector<32x8xf32>, vector<32x8xf32> -> vector<32x32xf32>
    %311 = arith.truncf %310 : vector<32x32xf32> to vector<32x32xbf16>
    %c1_95 = arith.constant 1 : index
    %c0_96 = arith.constant 0 : index
    %c0_97 = arith.constant 0 : index
    %312 = vector.load %arg5[%c1_95, %c0_96, %c0_97] : memref<2x32x32xbf16, #tpu.memory_space<vmem>>, vector<1x32x32xbf16>
    %313 = vector.shape_cast %312 : vector<1x32x32xbf16> to vector<32x32xbf16>
    %cst_98 = arith.constant dense<0.000000e+00> : vector<32x32xf32>
    %314 = tpu.matmul %311, %313, %cst_98 {dimension_numbers = #tpu.dot_dimension_numbers<[1], [0], [0], [1], [0, 0, 1, 1], [], []>} : vector<32x32xbf16>, vector<32x32xbf16>, vector<32x32xf32> -> vector<32x32xf32>
    %c1_99 = arith.constant 1 : index
    %c0_100 = arith.constant 0 : index
    %c0_101 = arith.constant 0 : index
    %315 = vector.load %arg6[%c1_99, %c0_100, %c0_101] : memref<2x1x32xf32, #tpu.memory_space<vmem>>, vector<1x1x32xf32>
    %316 = vector.shape_cast %315 : vector<1x1x32xf32> to vector<1x32xf32>
    %317 = vector.broadcast %316 : vector<1x32xf32> to vector<32x32xf32>
    %318 = arith.addf %314, %317 : vector<32x32xf32>
    %319 = arith.addf %201, %318 : vector<32x32xf32>
    %c1_102 = arith.constant 1 : index
    %c0_103 = arith.constant 0 : index
    %c0_104 = arith.constant 0 : index
    %320 = vector.load %arg7[%c1_102, %c0_103, %c0_104] : memref<2x1x32xf32, #tpu.memory_space<vmem>>, vector<1x1x32xf32>
    %321 = vector.shape_cast %320 : vector<1x1x32xf32> to vector<1x32xf32>
    %c1_105 = arith.constant 1 : index
    %c0_106 = arith.constant 0 : index
    %c0_107 = arith.constant 0 : index
    %322 = vector.load %arg8[%c1_105, %c0_106, %c0_107] : memref<2x1x32xf32, #tpu.memory_space<vmem>>, vector<1x1x32xf32>
    %323 = vector.shape_cast %322 : vector<1x1x32xf32> to vector<1x32xf32>
    %cst_108 = arith.constant dense<0.000000e+00> : vector<32xf32>
    %324 = vector.multi_reduction <add>, %319, %cst_108 [1] : vector<32x32xf32> to vector<32xf32>
    %325 = vector.shape_cast %324 : vector<32xf32> to vector<32x1xf32>
    %cst_109 = arith.constant 3.200000e+01 : f32
    %326 = vector.broadcast %cst_109 : f32 to vector<32x1xf32>
    %327 = arith.divf %325, %326 : vector<32x1xf32>
    %328 = vector.broadcast %327 : vector<32x1xf32> to vector<32x32xf32>
    %329 = arith.subf %319, %328 : vector<32x32xf32>
    %330 = arith.mulf %329, %329 : vector<32x32xf32>
    %cst_110 = arith.constant dense<0.000000e+00> : vector<32xf32>
    %331 = vector.multi_reduction <add>, %330, %cst_110 [1] : vector<32x32xf32> to vector<32xf32>
    %332 = vector.shape_cast %331 : vector<32xf32> to vector<32x1xf32>
    %cst_111 = arith.constant 3.200000e+01 : f32
    %333 = vector.broadcast %cst_111 : f32 to vector<32x1xf32>
    %334 = arith.divf %332, %333 : vector<32x1xf32>
    %335 = vector.broadcast %327 : vector<32x1xf32> to vector<32x32xf32>
    %336 = arith.subf %319, %335 : vector<32x32xf32>
    %cst_112 = arith.constant 9.99999996E-13 : f32
    %337 = vector.broadcast %cst_112 : f32 to vector<32x1xf32>
    %338 = arith.addf %334, %337 : vector<32x1xf32>
    %339 = math.rsqrt %338 : vector<32x1xf32>
    %340 = vector.broadcast %339 : vector<32x1xf32> to vector<32x32xf32>
    %341 = arith.mulf %336, %340 : vector<32x32xf32>
    %342 = vector.broadcast %321 : vector<1x32xf32> to vector<32x32xf32>
    %343 = arith.mulf %341, %342 : vector<32x32xf32>
    %344 = vector.broadcast %323 : vector<1x32xf32> to vector<32x32xf32>
    %345 = arith.addf %343, %344 : vector<32x32xf32>
    %346 = arith.truncf %345 : vector<32x32xf32> to vector<32x32xbf16>
    %c1_113 = arith.constant 1 : index
    %c0_114 = arith.constant 0 : index
    %c0_115 = arith.constant 0 : index
    %347 = vector.load %arg9[%c1_113, %c0_114, %c0_115] : memref<2x32x64xbf16, #tpu.memory_space<vmem>>, vector<1x32x64xbf16>
    %348 = vector.shape_cast %347 : vector<1x32x64xbf16> to vector<32x64xbf16>
    %cst_116 = arith.constant dense<0.000000e+00> : vector<32x64xf32>
    %349 = tpu.matmul %346, %348, %cst_116 {dimension_numbers = #tpu.dot_dimension_numbers<[1], [0], [0], [1], [0, 0, 1, 1], [], []>} : vector<32x32xbf16>, vector<32x64xbf16>, vector<32x64xf32> -> vector<32x64xf32>
    %c1_117 = arith.constant 1 : index
    %c0_118 = arith.constant 0 : index
    %c0_119 = arith.constant 0 : index
    %350 = vector.load %arg10[%c1_117, %c0_118, %c0_119] : memref<2x1x64xf32, #tpu.memory_space<vmem>>, vector<1x1x64xf32>
    %351 = vector.shape_cast %350 : vector<1x1x64xf32> to vector<1x64xf32>
    %352 = vector.broadcast %351 : vector<1x64xf32> to vector<32x64xf32>
    %353 = arith.addf %349, %352 : vector<32x64xf32>
    %354 = arith.mulf %353, %353 : vector<32x64xf32>
    %355 = arith.mulf %353, %354 : vector<32x64xf32>
    %cst_120 = arith.constant 4.471500e-02 : f32
    %356 = vector.broadcast %cst_120 : f32 to vector<32x64xf32>
    %357 = arith.mulf %356, %355 : vector<32x64xf32>
    %358 = arith.addf %353, %357 : vector<32x64xf32>
    %cst_121 = arith.constant 0.797884583 : f32
    %359 = vector.broadcast %cst_121 : f32 to vector<32x64xf32>
    %360 = arith.mulf %359, %358 : vector<32x64xf32>
    %361 = math.tanh %360 : vector<32x64xf32>
    %cst_122 = arith.constant 1.000000e+00 : f32
    %362 = vector.broadcast %cst_122 : f32 to vector<32x64xf32>
    %363 = arith.addf %362, %361 : vector<32x64xf32>
    %cst_123 = arith.constant 5.000000e-01 : f32
    %364 = vector.broadcast %cst_123 : f32 to vector<32x64xf32>
    %365 = arith.mulf %364, %363 : vector<32x64xf32>
    %366 = arith.mulf %353, %365 : vector<32x64xf32>
    %367 = arith.truncf %366 : vector<32x64xf32> to vector<32x64xbf16>
    %c1_124 = arith.constant 1 : index
    %c0_125 = arith.constant 0 : index
    %c0_126 = arith.constant 0 : index
    %368 = vector.load %arg11[%c1_124, %c0_125, %c0_126] : memref<2x64x32xbf16, #tpu.memory_space<vmem>>, vector<1x64x32xbf16>
    %369 = vector.shape_cast %368 : vector<1x64x32xbf16> to vector<64x32xbf16>
    %cst_127 = arith.constant dense<0.000000e+00> : vector<32x32xf32>
    %370 = tpu.matmul %367, %369, %cst_127 {dimension_numbers = #tpu.dot_dimension_numbers<[1], [0], [0], [1], [0, 0, 1, 1], [], []>} : vector<32x64xbf16>, vector<64x32xbf16>, vector<32x32xf32> -> vector<32x32xf32>
    %c1_128 = arith.constant 1 : index
    %c0_129 = arith.constant 0 : index
    %c0_130 = arith.constant 0 : index
    %371 = vector.load %arg12[%c1_128, %c0_129, %c0_130] : memref<2x1x32xf32, #tpu.memory_space<vmem>>, vector<1x1x32xf32>
    %372 = vector.shape_cast %371 : vector<1x1x32xf32> to vector<1x32xf32>
    %373 = vector.broadcast %372 : vector<1x32xf32> to vector<32x32xf32>
    %374 = arith.addf %370, %373 : vector<32x32xf32>
    %375 = arith.addf %345, %374 : vector<32x32xf32>
    %c1_131 = arith.constant 1 : index
    %c0_132 = arith.constant 0 : index
    %c0_133 = arith.constant 0 : index
    %376 = vector.load %arg13[%c1_131, %c0_132, %c0_133] : memref<2x1x32xf32, #tpu.memory_space<vmem>>, vector<1x1x32xf32>
    %377 = vector.shape_cast %376 : vector<1x1x32xf32> to vector<1x32xf32>
    %c1_134 = arith.constant 1 : index
    %c0_135 = arith.constant 0 : index
    %c0_136 = arith.constant 0 : index
    %378 = vector.load %arg14[%c1_134, %c0_135, %c0_136] : memref<2x1x32xf32, #tpu.memory_space<vmem>>, vector<1x1x32xf32>
    %379 = vector.shape_cast %378 : vector<1x1x32xf32> to vector<1x32xf32>
    %cst_137 = arith.constant dense<0.000000e+00> : vector<32xf32>
    %380 = vector.multi_reduction <add>, %375, %cst_137 [1] : vector<32x32xf32> to vector<32xf32>
    %381 = vector.shape_cast %380 : vector<32xf32> to vector<32x1xf32>
    %cst_138 = arith.constant 3.200000e+01 : f32
    %382 = vector.broadcast %cst_138 : f32 to vector<32x1xf32>
    %383 = arith.divf %381, %382 : vector<32x1xf32>
    %384 = vector.broadcast %383 : vector<32x1xf32> to vector<32x32xf32>
    %385 = arith.subf %375, %384 : vector<32x32xf32>
    %386 = arith.mulf %385, %385 : vector<32x32xf32>
    %cst_139 = arith.constant dense<0.000000e+00> : vector<32xf32>
    %387 = vector.multi_reduction <add>, %386, %cst_139 [1] : vector<32x32xf32> to vector<32xf32>
    %388 = vector.shape_cast %387 : vector<32xf32> to vector<32x1xf32>
    %cst_140 = arith.constant 3.200000e+01 : f32
    %389 = vector.broadcast %cst_140 : f32 to vector<32x1xf32>
    %390 = arith.divf %388, %389 : vector<32x1xf32>
    %391 = vector.broadcast %383 : vector<32x1xf32> to vector<32x32xf32>
    %392 = arith.subf %375, %391 : vector<32x32xf32>
    %cst_141 = arith.constant 9.99999996E-13 : f32
    %393 = vector.broadcast %cst_141 : f32 to vector<32x1xf32>
    %394 = arith.addf %390, %393 : vector<32x1xf32>
    %395 = math.rsqrt %394 : vector<32x1xf32>
    %396 = vector.broadcast %395 : vector<32x1xf32> to vector<32x32xf32>
    %397 = arith.mulf %392, %396 : vector<32x32xf32>
    %398 = vector.broadcast %377 : vector<1x32xf32> to vector<32x32xf32>
    %399 = arith.mulf %397, %398 : vector<32x32xf32>
    %400 = vector.broadcast %379 : vector<1x32xf32> to vector<32x32xf32>
    %401 = arith.addf %399, %400 : vector<32x32xf32>
    %402 = vector.shape_cast %401 : vector<32x32xf32> to vector<4x8x32xf32>
    %403 = vector.extract_strided_slice %402 {offsets = [0, 0, 0], sizes = [4, 1, 32], strides = [1, 1, 1]} : vector<4x8x32xf32> to vector<4x1x32xf32>
    %404 = vector.shape_cast %403 : vector<4x1x32xf32> to vector<4x32xf32>
    %c0_142 = arith.constant 0 : index
    %c0_143 = arith.constant 0 : index
    %405 = vector.load %arg15[%c0_142, %c0_143] : memref<1x32xf32, #tpu.memory_space<vmem>>, vector<1x32xf32>
    %406 = vector.broadcast %405 : vector<1x32xf32> to vector<4x32xf32>
    %407 = arith.mulf %404, %406 : vector<4x32xf32>
    %cst_144 = arith.constant dense<0.000000e+00> : vector<4xf32>
    %408 = vector.multi_reduction <add>, %407, %cst_144 [1] : vector<4x32xf32> to vector<4xf32>
    %409 = vector.shape_cast %408 : vector<4xf32> to vector<4x1xf32>
    %c0_145 = arith.constant 0 : index
    %c0_146 = arith.constant 0 : index
    %410 = vector.load %arg16[%c0_145, %c0_146] : memref<1x1xf32, #tpu.memory_space<vmem>>, vector<1x1xf32>
    %411 = vector.broadcast %410 : vector<1x1xf32> to vector<4x1xf32>
    %412 = arith.addf %409, %411 : vector<4x1xf32>
    %c0_147 = arith.constant 0 : index
    %c0_148 = arith.constant 0 : index
    %413 = vector.load %arg2[%c0_147, %c0_148] : memref<4x1xf32, #tpu.memory_space<vmem>>, vector<4x1xf32>
    %cst_149 = arith.constant 0.000000e+00 : f32
    %414 = vector.broadcast %cst_149 : f32 to vector<4x1xf32>
    %415 = arith.maximumf %412, %414 : vector<4x1xf32>
    %416 = arith.mulf %412, %413 : vector<4x1xf32>
    %417 = arith.subf %415, %416 : vector<4x1xf32>
    %418 = math.absf %412 : vector<4x1xf32>
    %cst_150 = arith.constant 0.000000e+00 : f32
    %419 = vector.broadcast %cst_150 : f32 to vector<4x1xf32>
    %420 = arith.subf %419, %418 : vector<4x1xf32>
    %421 = math.exp %420 : vector<4x1xf32>
    %422 = math.log1p %421 : vector<4x1xf32>
    %423 = arith.addf %417, %422 : vector<4x1xf32>
    %cst_151 = arith.constant -1.000000e+00 : f32
    %424 = vector.broadcast %cst_151 : f32 to vector<4x1xf32>
    %425 = arith.cmpf oeq, %413, %424 : vector<4x1xf32>
    %cst_152 = arith.constant 0.000000e+00 : f32
    %426 = vector.broadcast %cst_152 : f32 to vector<4x1xf32>
    %427 = arith.select %425, %426, %423 : vector<4x1xi1>, vector<4x1xf32>
    %428 = vector.shape_cast %427 : vector<4x1xf32> to vector<1x4x1xf32>
    %cst_153 = arith.constant dense<0.000000e+00> : vector<1xf32>
    %429 = vector.multi_reduction <add>, %428, %cst_153 [1, 2] : vector<1x4x1xf32> to vector<1xf32>
    %430 = vector.shape_cast %429 : vector<1xf32> to vector<1x1x1xf32>
    %431 = vector.extract %430[0, 0, 0] : f32 from vector<1x1x1xf32>
    %cst_154 = arith.constant 4.000000e+00 : f32
    %432 = arith.divf %431, %cst_154 : f32
    %433 = vector.shape_cast %412 : vector<4x1xf32> to vector<4x1xf32>
    %434 = vector.broadcast %433 : vector<4x1xf32> to vector<4x128xf32>
    %c0_155 = arith.constant 0 : index
    %c0_156 = arith.constant 0 : index
    %435 = vector.load %arg17[%c0_155, %c0_156] : memref<4x128xf32, #tpu.memory_space<vmem>>, vector<4x128xf32>
    tpu.vector_store %arg17[%c0_155, %c0_156], %434 {strides = array<i32>} : memref<4x128xf32, #tpu.memory_space<vmem>>, vector<4x128xf32>,
    %436 = vector.broadcast %432 : f32 to vector<1x1xf32>
    %437 = vector.shape_cast %436 : vector<1x1xf32> to vector<1x1xf32>
    %438 = vector.broadcast %437 : vector<1x1xf32> to vector<1x128xf32>
    %c0_157 = arith.constant 0 : index
    %c0_158 = arith.constant 0 : index
    %439 = vector.load %arg18[%c0_157, %c0_158] : memref<1x128xf32, #tpu.memory_space<vmem>>, vector<1x128xf32>
    tpu.vector_store %arg18[%c0_157, %c0_158], %438 {strides = array<i32>} : memref<1x128xf32, #tpu.memory_space<vmem>>, vector<1x128xf32>,
    return
  }
}

</mosaic_0001>

<bundles_post_ra>
// kernel: tpu_custom_call.1
= control target key start
LH: loop header
LB: loop body
LE: loop exit
PB: predicated region body
PF: predicated region fallthrough
CT: control target
= control target key end

     0   :  { %s7197_s0 = inlined_call_operand.vmem [shape: f32[32,32], index: 0, kind: input, shape index: {}]   ;;  %s7198_s1 = inlined_call_operand.vmem [shape: f32[4,1,8], index: 1, kind: input, shape index: {}]   ;;  %s7199_s2 = inlined_call_operand.vmem [shape: f32[4,1], index: 2, kind: input, shape index: {}]   ;;  %s7200_s3 = inlined_call_operand.vmem [shape: bf16[2,32,96], index: 3, kind: input, shape index: {}]   ;;  %s7201_s4 = inlined_call_operand.vmem [shape: f32[2,1,96], index: 4, kind: input, shape index: {}]   ;;  %s7202_s5 = inlined_call_operand.vmem [shape: bf16[2,32,32], index: 5, kind: input, shape index: {}]   ;;  %s7203_s6 = inlined_call_operand.vmem [shape: f32[2,1,32], index: 6, kind: input, shape index: {}]   ;;  %s7204_s7 = inlined_call_operand.vmem [shape: f32[2,1,32], index: 7, kind: input, shape index: {}]   ;;  %s7205_s8 = inlined_call_operand.vmem [shape: f32[2,1,32], index: 8, kind: input, shape index: {}]   ;;  %s7206_s9 = inlined_call_operand.hbm [shape: bf16[2,32,64], index: 9, kind: input, shape index: {}]   ;;  %s7207_s10 = inlined_call_operand.vmem [shape: f32[2,1,64], index: 10, kind: input, shape index: {}]   ;;  %s7208_s11 = inlined_call_operand.vmem [shape: bf16[2,64,32], index: 11, kind: input, shape index: {}]   ;;  %s7209_s12 = inlined_call_operand.vmem [shape: f32[2,1,32], index: 12, kind: input, shape index: {}]   ;;  %s7210_s13 = inlined_call_operand.vmem [shape: f32[2,1,32], index: 13, kind: input, shape index: {}]   ;;  %s7211_s14 = inlined_call_operand.vmem [shape: f32[2,1,32], index: 14, kind: input, shape index: {}]   ;;  %s7212_s15 = inlined_call_operand.vmem [shape: f32[1,32], index: 15, kind: input, shape index: {}]   ;;  %s7213_s16 = inlined_call_operand.<no memory space> [shape: f32[1,1], index: 16, kind: input, shape index: {}]   ;;  %s7214_s17 = inlined_call_operand.hbm [shape: f32[4,128], index: 17, kind: output, shape index: {0}]   ;;  %s7215_s18 = inlined_call_operand.hbm [shape: f32[1,128], index: 18, kind: output, shape index: {1}]  }
   0x1   :  { %7230 = sst [smem:[#allocation12_spill]] %s7197_s0  ;;  %v24_v0 = vstv %s7213_s16 }
   0x2   :  { %7231 = sst [smem:[#allocation13_spill]] %s7198_s1  ;;  %25 = vst [vmem:[#allocation2] sm:$0x1] %v24_v0 }
   0x3   :  { %7232 = sst [smem:[#allocation14_spill]] %s7199_s2 }
   0x4   :  { %26 = vsyncpa [#allocation4], 0 }
   0x5   :  { %27 = vsyncpa [#allocation5], 0 }
   0x6   :  { %28 = vsyncpa [#allocation8], 0  ;;  %s6057_s29 = smov [#allocation3]  }
   0x7   :  { %s52_s30 = sshll.u32 %s6057_s29, 4  ;;  %s53_s30 = int_to_ptr.vmem [resolvable:$true] %s52_s30 }
   0x8   :  { %s5999_s0 = scalar_lea.vmem %s53_s30, 512  ;;  %p6004_p1 = scmp.lt.s32.totalorder %s53_s30, %s53_s30 }
   0x9   :  { %p6000_p0 = scmp.ne.s32.totalorder %s53_s30, %s5999_s0  ;;  %p6005_p2 = scmp.lt.s32.totalorder %s5999_s0, %s5999_s0 }
   0xb   :  { %p6006_p3 = por %p6005_p2, %p6004_p1 }
   0xd   :  { %p6007_p4 = pnand %p6006_p3, %p6000_p0 }
   0xf   :  { %6010 = shalt.err (!%p6007_p4)
}
  0x10   :  { %s6058_s19 = smov 64   ;;  %s6059_s1 = smov 4  }
  0x11   :  { %58 = dma.hbm_to_vmem [thread:$0]  %s7206_s9, 512, %s53_s30, [#allocation4], %s6058_s19, %s6058_s19, %s6059_s1  }
  0x12   :  { %6051 = dma.done.wait [#allocation4], 512  }
  0x13   :  { %6052 = vsyncadd [#allocation4], 4294966784  ;;  %v5783_v1 = vld [vmem:[%s7200_s3 + $0x8] sm:$0xff]   ;;  %v5784_v2 = vld [vmem:[%s7200_s3] sm:$0xff]   ;;  %s7233_s26 = sld [smem:[#allocation12_spill]]  ;;  %vm110_vm0 = vcmask 261120  }
  0x14   :  { %5242 = vmatprep.subr.bf16.mxu1 %v5783_v1  ;;  %v6060_v9 = vmov 0.0   ;;  %v4932_v10 = vld [vmem:[%s7201_s4] ss:$0 sm:$0xff]  ;;  %vm6061_vm1 = vmmov 0   ;;  %s6062_s16 = smov 96   ;;  %vm197_vm2 = vcmask 64512  }
  0x15   :  { %5243 = vmatpush3.bf16.msra.mxu1 %v5783_v1  ;;  %5256 = vmatprep.subr.bf16.mxu0 %v6060_v9  ;;  %s7234_s2 = sld [smem:[#allocation13_spill]]  ;;  %vm444_vm3 = vcmask 1043456   ;;  %s6063_s29 = smov 88   ;;  %vm2004_vm4 = vcmask 130048   ;;  %vm2009_vm5 = vcmask 195584   ;;  %vm2330_vm6 = vcmask 523264  }
  0x16   :  { %5244 = vmatprep.subr.bf16.mxu1 %v5784_v2  ;;  %5258 = vmatprep.mubr.msk.bf16.mxu0 %vm6061_vm1, %v6060_v9  ;;  %s6064_s30 = smov 120   ;;  %s6065_s0 = smov 56   ;;  %vm4840_vm7 = vcmask 1041409   ;;  %vm4843_vm8 = vcmask 1042434   ;;  %vm4846_vm9 = vcmask 1043459   ;;  %vm4849_vm10 = vcmask 257024  }
  0x17   :  { %s6066_s1 = smov 80   ;;  %s6067_s20 = smov 112   ;;  %vm4881_vm13 = vcmask 3072  }
  0x18   :  { %s6068_s21 = smov 48   ;;  %s7228_s22 = smov 72  }
  0x19   :  { %v77_v3 = vld [vmem:[%s7233_s26] sm:$0xff]  ;;  %v78_v4 = vld [vmem:[%s7233_s26 + $0x8] sm:$0xff]  ;;  %v79_v5 = vld [vmem:[%s7233_s26 + $0x10] sm:$0xff]  ;;  %5245 = vmatpush3.bf16.msra.mxu1 %v5784_v2  ;;  %s7226_s23 = smov 104   ;;  %s7222_s24 = smov 40  }
  0x1a   :  { %v85_v6 = vpack.c.bf16 %v78_v4, %v77_v3  ;;  %v80_v7 = vld [vmem:[%s7233_s26 + $0x18] sm:$0xff]  ;;  %5250 = vmatprep.subr.bf16.mxu1 %v6060_v9  ;;  %s7220_s25 = smov 8   ;;  %s7218_s27 = smov 16  }
  0x1b   :  { %v86_v8 = vpack.c.bf16 %v80_v7, %v79_v5  ;;  %v6253_v31 = vld [vmem:[%s7234_s2] ss:$0 sm:$0xff]  ;;  %v6259_v35 = vld [vmem:[%s7234_s2 + $0x1] ss:$0 sm:$0xff]  ;;  %v6266_v42 = vld [vmem:[%s7234_s2 + $0x2] ss:$0 sm:$0xff] }
  0x1c   :  { %5246 = vmatprep.mubr.msk.bf16.mxu1 %vm110_vm0, %v85_v6  ;;  %v6273_v49 = vld [vmem:[%s7234_s2 + $0x3] ss:$0 sm:$0xff]  ;;  %s7240_s9 = smov 24  }
  0x1d   :  { %5247 = vmatmul.mubr.msk.bf16.vlgmr.msra.gmra.mxu1 %vm110_vm0, %v86_v8 }
  0x1e   :  { %5252 = vmatprep.mubr.msk.bf16.mxu1 %vm6061_vm1, %v6060_v9 }
  0xdd   :  { %v5248_v11 = vpop.f32.mrf.mxu1 }
  0xde   :  { %v160_v12 = vadd.f32 %v5248_v11, %v4932_v10 }
  0xdf   :  { %v151_v13 = vpop.f32.mrf.mxu1 }
  0xe0   :  { %v6210_v14 = vpack.c.bf16 %v160_v12, %v160_v12  ;;  %v152_v15 = vadd.f32 %v4932_v10, %v151_v13 }
  0xe1   :  { %v5249_v16 = vpop.f32.mrf.mxu1 }
  0xe2   :  { %v6212_v17 = vpack.c.bf16 %v152_v15, %v152_v15  ;;  %v163_v18 = vadd.f32 %v5249_v16, %v4932_v10  ;;  %294 = vrot.lane.b32.xlu1 %v6210_v14, %s6062_s16 }
  0xe3   :  { %v154_v19 = vpop.f32.mrf.mxu1 }
  0xe4   :  { %v6216_v20 = vpack.c.bf16 %v163_v18, %v163_v18  ;;  %v155_v21 = vadd.f32 %v4932_v10, %v154_v19  ;;  %195 = vrot.lane.b32.xlu0 %v6212_v17, %s6062_s16 }
  0xe6   :  { %v6220_v22 = vpack.c.bf16 %v155_v21, %v155_v21  ;;  %343 = vrot.lane.b32.xlu1 %v6216_v20, %s6062_s16 }
  0xe8   :  { %245 = vrot.lane.b32.xlu0 %v6220_v22, %s6062_s16 }
 0x154   :  { %v295_v25 = vpop.permute.xlu1 %294 }
 0x155   :  { %v300_v28 = vsel %vm197_vm2, %v295_v25, 0 }
 0x156   :  { %v196_v23 = vpop.permute.xlu0 %195 }
 0x157   :  { %v202_v24 = vsel %vm197_vm2, %v196_v23, 0 }
 0x158   :  { %5251 = vmatpush3.bf16.xpose.msra.mxu1 %v202_v24  ;;  %v344_v29 = vpop.permute.xlu1 %343 }
 0x159   :  { %5262 = vmatprep.subr.bf16.mxu1 %v6060_v9  ;;  %v349_v30 = vsel %vm197_vm2, %v344_v29, 0 }
 0x15a   :  { %v246_v26 = vpop.permute.xlu0 %245 }
 0x15b   :  { %v251_v27 = vsel %vm197_vm2, %v246_v26, 0 }
 0x15c   :  { %5257 = vmatpush3.bf16.xpose.msra.mxu0 %v251_v27 }
 0x15d   :  { %5268 = vmatprep.subr.bf16.mxu0 %v6060_v9 }
 0x15f   :  { %5253 = vmatmul.mubr.msk.bf16.vlgmr.msra.gmra.mxu1 %vm197_vm2, %v6212_v17 }
 0x160   :  { %5263 = vmatpush3.bf16.xpose.msra.mxu1 %v300_v28  ;;  %5264 = vmatprep.mubr.msk.bf16.mxu1 %vm6061_vm1, %v6060_v9 }
 0x161   :  { %5274 = vmatprep.subr.bf16.mxu1 %v6060_v9 }
 0x163   :  { %5259 = vmatmul.mubr.msk.bf16.vlgmr.msra.gmra.mxu0 %vm197_vm2, %v6220_v22 }
 0x164   :  { %5269 = vmatpush3.bf16.xpose.msra.mxu0 %v349_v30  ;;  %5270 = vmatprep.mubr.msk.bf16.mxu0 %vm6061_vm1, %v6060_v9 }
 0x165   :  { %5280 = vmatprep.subr.bf16.mxu0 %v6060_v9 }
 0x167   :  { %5265 = vmatmul.mubr.msk.bf16.vlgmr.msra.gmra.mxu1 %vm197_vm2, %v6210_v14 }
 0x168   :  { %5276 = vmatprep.mubr.msk.bf16.mxu1 %vm6061_vm1, %v6060_v9 }
 0x16b   :  { %5271 = vmatmul.mubr.msk.bf16.vlgmr.msra.gmra.mxu0 %vm197_vm2, %v6216_v20 }
 0x16c   :  { %5282 = vmatprep.mubr.msk.bf16.mxu0 %vm6061_vm1, %v6060_v9 }
 0x21f   :  { %v238_v32 = vpop.f32.mrf.mxu1 }
 0x220   :  { %v239_v33 = vadd.f32 %v6253_v31, %v238_v32 }
 0x221   :  { %v5254_v34 = vpop.f32.mrf.mxu1 }
 0x222   :  { %v391_v36 = vsel %vm197_vm2, %v239_v33, -inf }
 0x223   :  { %392 = vmax.xlane.f32.xlu0 %v391_v36  ;;  %v241_v37 = vpop.f32.mrf.mxu1  ;;  %v287_v38 = vpop.f32.mrf.mxu0 }
 0x224   :  { %v288_v39 = vadd.f32 %v6259_v35, %v287_v38 }
 0x225   :  { %v5255_v40 = vpop.f32.mrf.mxu1  ;;  %v5260_v41 = vpop.f32.mrf.mxu0 }
 0x226   :  { %v394_v43 = vsel %vm197_vm2, %v288_v39, -inf }
 0x227   :  { %v336_v44 = vpop.f32.mrf.mxu1  ;;  %395 = vmax.xlane.f32.xlu1 %v394_v43  ;;  %v290_v45 = vpop.f32.mrf.mxu0 }
 0x228   :  { %v337_v46 = vadd.f32 %v6266_v42, %v336_v44 }
 0x229   :  { %v5261_v47 = vpop.f32.mrf.mxu0  ;;  %v5266_v48 = vpop.f32.mrf.mxu1 }
 0x22a   :  { %v397_v50 = vsel %vm197_vm2, %v337_v46, -inf }
 0x22b   :  { %398 = vmax.xlane.f32.xlu0 %v397_v50  ;;  %v339_v51 = vpop.f32.mrf.mxu1  ;;  %v385_v52 = vpop.f32.mrf.mxu0 }
 0x22c   :  { %v386_v53 = vadd.f32 %v6273_v49, %v385_v52 }
 0x22d   :  { %v5267_v54 = vpop.f32.mrf.mxu1  ;;  %v5272_v55 = vpop.f32.mrf.mxu0 }
 0x22e   :  { %v400_v56 = vsel %vm197_vm2, %v386_v53, -inf }
 0x22f   :  { %401 = vmax.xlane.f32.xlu0 %v400_v56  ;;  %v388_v57 = vpop.f32.mrf.mxu0 }
 0x231   :  { %v5273_v58 = vpop.f32.mrf.mxu0 }
 0x238   :  { %439 = vrot.lane.b32.xlu1 %v6212_v17, %s6058_s19 }
 0x2ac   :  { %v393_v59 = vpop.xlane.xlu0 %392 }
 0x2ad   :  { %v403_v60 = vsub.f32 %v239_v33, %v393_v59 }
 0x2af   :  { %v407_v61 = vmul.f32 1.442695, %v403_v60 }
 0x2b0   :  { %v396_v62 = vpop.xlane.xlu1 %395 }
 0x2b1   :  { %5803 = vpow2.f32 %v407_v61  ;;  %v404_v63 = vsub.f32 %v288_v39, %v396_v62 }
 0x2b3   :  { %v409_v0 = vmul.f32 1.442695, %v404_v63 }
 0x2b4   :  { %v440_v1 = vpop.permute.xlu1 %439  ;;  %v399_v7 = vpop.xlane.xlu0 %398 }
 0x2b5   :  { %5805 = vpow2.f32 %v409_v0  ;;  %v446_v2 = vsel %vm444_vm3, %v440_v1, 0  ;;  %v405_v10 = vsub.f32 %v337_v46, %v399_v7 }
 0x2b6   :  { %5275 = vmatpush3.bf16.msra.mxu1 %v446_v2 }
 0x2b7   :  { %5286 = vmatprep.subr.bf16.mxu1 %v6060_v9  ;;  %v411_v12 = vmul.f32 1.442695, %v405_v10 }
 0x2b8   :  { %v402_v8 = vpop.xlane.xlu0 %401 }
 0x2b9   :  { %v406_v11 = vsub.f32 %v386_v53, %v402_v8  ;;  %5807 = vpow2.f32 %v411_v12 }
 0x2bb   :  { %v413_v13 = vmul.f32 1.442695, %v406_v11 }
 0x2bd   :  { %5809 = vpow2.f32 %v413_v13 }
 0x2be   :  { %v5804_v3 = vpop.eup %5803 }
 0x2bf   :  { %v415_v4 = vsel %vm197_vm2, %v5804_v3, 0.0 }
 0x2c0   :  { %416 = vadd.xlane.f32.xlu1 %v415_v4 }
 0x2c2   :  { %v5806_v5 = vpop.eup %5805 }
 0x2c3   :  { %v418_v6 = vsel %vm197_vm2, %v5806_v5, 0.0 }
 0x2c4   :  { %419 = vadd.xlane.f32.xlu0 %v418_v6 }
 0x2c6   :  { %v5808_v15 = vpop.eup %5807 }
 0x2c7   :  { %v421_v18 = vsel %vm197_vm2, %v5808_v15, 0.0 }
 0x2ca   :  { %v5810_v16 = vpop.eup %5809 }
 0x2cb   :  { %v424_v19 = vsel %vm197_vm2, %v5810_v16, 0.0 }
 0x2d1   :  { %536 = vrot.lane.b32.xlu1 %v6210_v14, %s6058_s19 }
 0x2d5   :  { %584 = vrot.lane.b32.xlu1 %v6216_v20, %s6058_s19 }
 0x2da   :  { %488 = vrot.lane.b32.xlu0 %v6220_v22, %s6058_s19 }
 0x2f9   :  { %422 = vadd.xlane.f32.xlu1 %v421_v18  ;;  %425 = vadd.xlane.f32.xlu0 %v424_v19 }
 0x30a   :  { %684 = vrot.lane.b32.xlu1 %v6220_v22, %s6063_s29 }
 0x30e   :  { %682 = vrot.lane.b32.xlu1 %v6220_v22, %s6064_s30 }
 0x30f   :  { %634 = vrot.lane.b32.xlu0 %v6212_v17, %s6063_s29 }
 0x312   :  { %784 = vrot.lane.b32.xlu1 %v6216_v20, %s6063_s29 }
 0x313   :  { %632 = vrot.lane.b32.xlu0 %v6212_v17, %s6064_s30 }
 0x316   :  { %782 = vrot.lane.b32.xlu1 %v6216_v20, %s6064_s30 }
 0x317   :  { %734 = vrot.lane.b32.xlu0 %v6210_v14, %s6063_s29 }
 0x31b   :  { %732 = vrot.lane.b32.xlu0 %v6210_v14, %s6064_s30 }
 0x349   :  { %v417_v21 = vpop.xlane.xlu1 %416 }
 0x34a   :  { %5811 = vrcp.f32 %v417_v21 }
 0x34d   :  { %v420_v23 = vpop.xlane.xlu0 %419  ;;  %v537_v27 = vpop.permute.xlu1 %536 }
 0x34e   :  { %5813 = vrcp.f32 %v420_v23  ;;  %v542_v32 = vsel %vm444_vm3, %v537_v27, 0 }
 0x351   :  { %v489_v24 = vpop.permute.xlu0 %488  ;;  %v585_v34 = vpop.permute.xlu1 %584 }
 0x352   :  { %v494_v25 = vsel %vm444_vm3, %v489_v24, 0  ;;  %v590_v37 = vsel %vm444_vm3, %v585_v34, 0 }
 0x353   :  { %5281 = vmatpush3.bf16.msra.mxu0 %v494_v25 }
 0x354   :  { %5292 = vmatprep.subr.bf16.mxu0 %v6060_v9 }
 0x357   :  { %v5812_v26 = vpop.eup %5811 }
 0x358   :  { %v431_v28 = vmul.f32 %v5812_v26, %v5804_v3 }
 0x35a   :  { %v435_v29 = vpack.c.bf16 %v431_v28, %v431_v28 }
 0x35b   :  { %v5814_v30 = vpop.eup %5813 }
 0x35c   :  { %5277 = vmatmul.mubr.msk.bf16.vlgmr.msra.gmra.mxu1 %vm197_vm2, %v435_v29  ;;  %v432_v33 = vmul.f32 %v5814_v30, %v5806_v5 }
 0x35d   :  { %5287 = vmatpush3.bf16.msra.mxu1 %v542_v32  ;;  %5288 = vmatprep.mubr.msk.bf16.mxu1 %vm6061_vm1, %v6060_v9 }
 0x35e   :  { %v436_v36 = vpack.c.bf16 %v432_v33, %v432_v33  ;;  %5298 = vmatprep.subr.bf16.mxu1 %v6060_v9 }
 0x360   :  { %5283 = vmatmul.mubr.msk.bf16.vlgmr.msra.gmra.mxu0 %vm197_vm2, %v436_v36 }
 0x361   :  { %5293 = vmatpush3.bf16.msra.mxu0 %v590_v37  ;;  %5294 = vmatprep.mubr.msk.bf16.mxu0 %vm6061_vm1, %v6060_v9 }
 0x362   :  { %5304 = vmatprep.subr.bf16.mxu0 %v6060_v9 }
 0x382   :  { %v423_v38 = vpop.xlane.xlu1 %422  ;;  %v426_v39 = vpop.xlane.xlu0 %425 }
 0x383   :  { %5815 = vrcp.f32 %v423_v38 }
 0x384   :  { %5817 = vrcp.f32 %v426_v39 }
 0x386   :  { %v635_v40 = vpop.permute.xlu0 %634  ;;  %v685_v41 = vpop.permute.xlu1 %684 }
 0x387   :  { %v640_v51 = vsel %vm197_vm2, %v635_v40, 0  ;;  %v690_v53 = vsel %vm197_vm2, %v685_v41, 0 }
 0x38a   :  { %v633_v48 = vpop.permute.xlu0 %632  ;;  %v683_v52 = vpop.permute.xlu1 %682 }
 0x38e   :  { %v735_v54 = vpop.permute.xlu0 %734  ;;  %v785_v55 = vpop.permute.xlu1 %784 }
 0x38f   :  { %v740_v56 = vsel %vm197_vm2, %v735_v54, 0  ;;  %v790_v57 = vsel %vm197_vm2, %v785_v55, 0 }
 0x390   :  { %v5816_v43 = vpop.eup %5815 }
 0x391   :  { %v5818_v44 = vpop.eup %5817  ;;  %v433_v45 = vmul.f32 %v5816_v43, %v5808_v15 }
 0x392   :  { %v434_v46 = vmul.f32 %v5818_v44, %v5810_v16  ;;  %v733_v58 = vpop.permute.xlu0 %732  ;;  %v783_v59 = vpop.permute.xlu1 %782 }
 0x393   :  { %v437_v47 = vpack.c.bf16 %v433_v45, %v433_v45 }
 0x394   :  { %v438_v50 = vpack.c.bf16 %v434_v46, %v434_v46 }
 0x395   :  { %5289 = vmatmul.mubr.msk.bf16.vlgmr.msra.gmra.mxu1 %vm197_vm2, %v437_v47 }
 0x396   :  { %5295 = vmatmul.mubr.msk.bf16.vlgmr.msra.gmra.mxu0 %vm197_vm2, %v438_v50  ;;  %5299 = vmatpush3.bf16.xpose.msra.mxu1 %v640_v51 }
 0x397   :  { %5305 = vmatpush3.bf16.xpose.msra.mxu0 %v690_v53  ;;  %5300 = vmatprep.mubr.msk.bf16.mxu1 %vm6061_vm1, %v6060_v9 }
 0x398   :  { %5306 = vmatprep.mubr.msk.bf16.mxu0 %vm6061_vm1, %v6060_v9  ;;  %5310 = vmatprep.subr.bf16.mxu1 %v6060_v9 }
 0x399   :  { %5316 = vmatprep.subr.bf16.mxu0 %v6060_v9 }
 0x39d   :  { %5301 = vmatmul.mubr.msk.bf16.vlgmr.msra.gmra.mxu1 %vm197_vm2, %v633_v48 }
 0x39e   :  { %5307 = vmatmul.mubr.msk.bf16.vlgmr.msra.gmra.mxu0 %vm197_vm2, %v683_v52  ;;  %5311 = vmatpush3.bf16.xpose.msra.mxu1 %v740_v56 }
 0x39f   :  { %5317 = vmatpush3.bf16.xpose.msra.mxu0 %v790_v57  ;;  %5312 = vmatprep.mubr.msk.bf16.mxu1 %vm6061_vm1, %v6060_v9 }
 0x3a0   :  { %5318 = vmatprep.mubr.msk.bf16.mxu0 %vm6061_vm1, %v6060_v9  ;;  %5322 = vmatprep.subr.bf16.mxu1 %v6060_v9 }
 0x3a1   :  { %5328 = vmatprep.subr.bf16.mxu0 %v6060_v9 }
 0x3a5   :  { %5313 = vmatmul.mubr.msk.bf16.vlgmr.msra.gmra.mxu1 %vm197_vm2, %v733_v58 }
 0x3a6   :  { %5319 = vmatmul.mubr.msk.bf16.vlgmr.msra.gmra.mxu0 %vm197_vm2, %v783_v59  ;;  %5324 = vmatprep.mubr.msk.bf16.mxu1 %vm6061_vm1, %v6060_v9 }
 0x3a7   :  { %5330 = vmatprep.mubr.msk.bf16.mxu0 %vm6061_vm1, %v6060_v9 }
 0x41c   :  { %v6346_v60 = vpop.f32.mrf.mxu1 }
 0x41e   :  { %v5278_v61 = vpop.f32.mrf.mxu1 }
 0x420   :  { %v485_v62 = vpop.f32.mrf.mxu1  ;;  %v6348_v63 = vpop.f32.mrf.mxu0 }
 0x422   :  { %v5279_v0 = vpop.f32.mrf.mxu1  ;;  %v5284_v1 = vpop.f32.mrf.mxu0 }
 0x424   :  { %v533_v2 = vpop.f32.mrf.mxu0 }
 0x426   :  { %v5285_v3 = vpop.f32.mrf.mxu0 }
 0x455   :  { %v6350_v4 = vpop.f32.mrf.mxu1 }
 0x456   :  { %v6352_v5 = vpop.f32.mrf.mxu0 }
 0x457   :  { %v5290_v6 = vpop.f32.mrf.mxu1 }
 0x458   :  { %v5296_v7 = vpop.f32.mrf.mxu0 }
 0x459   :  { %v581_v8 = vpop.f32.mrf.mxu1 }
 0x45a   :  { %v629_v10 = vpop.f32.mrf.mxu0 }
 0x45b   :  { %v5291_v11 = vpop.f32.mrf.mxu1 }
 0x45c   :  { %v5297_v12 = vpop.f32.mrf.mxu0 }
 0x45d   :  { %v676_v13 = vpop.f32.mrf.mxu1 }
 0x45e   :  { %v677_v15 = vadd.f32 %v6253_v31, %v676_v13  ;;  %v726_v16 = vpop.f32.mrf.mxu0 }
 0x45f   :  { %v727_v18 = vadd.f32 %v6259_v35, %v726_v16  ;;  %v5302_v19 = vpop.f32.mrf.mxu1 }
 0x460   :  { %v5308_v21 = vpop.f32.mrf.mxu0  ;;  %v832_v23 = vsel %vm197_vm2, %v677_v15, -inf }
 0x461   :  { %v835_v24 = vsel %vm197_vm2, %v727_v18, -inf  ;;  %833 = vmax.xlane.f32.xlu0 %v832_v23  ;;  %v679_v25 = vpop.f32.mrf.mxu1 }
 0x462   :  { %836 = vmax.xlane.f32.xlu1 %v835_v24  ;;  %v729_v26 = vpop.f32.mrf.mxu0 }
 0x463   :  { %v5303_v27 = vpop.f32.mrf.mxu1 }
 0x464   :  { %v5309_v28 = vpop.f32.mrf.mxu0 }
 0x465   :  { %v776_v29 = vpop.f32.mrf.mxu1 }
 0x466   :  { %v777_v30 = vadd.f32 %v6266_v42, %v776_v29  ;;  %v826_v32 = vpop.f32.mrf.mxu0 }
 0x467   :  { %v5314_v33 = vpop.f32.mrf.mxu1  ;;  %v827_v34 = vadd.f32 %v6273_v49, %v826_v32 }
 0x468   :  { %v5320_v36 = vpop.f32.mrf.mxu0  ;;  %v838_v37 = vsel %vm197_vm2, %v777_v30, -inf }
 0x469   :  { %839 = vmax.xlane.f32.xlu0 %v838_v37  ;;  %v779_v38 = vpop.f32.mrf.mxu1  ;;  %v841_v43 = vsel %vm197_vm2, %v827_v34, -inf }
 0x46a   :  { %v829_v39 = vpop.f32.mrf.mxu0 }
 0x46b   :  { %v5315_v40 = vpop.f32.mrf.mxu1 }
 0x46c   :  { %v5321_v41 = vpop.f32.mrf.mxu0 }
 0x46d   :  { %842 = vmax.xlane.f32.xlu0 %v841_v43 }
 0x473   :  { %880 = vrot.lane.b32.xlu1 %v6212_v17, %s6065_s0 }
 0x4ea   :  { %v834_v44 = vpop.xlane.xlu0 %833 }
 0x4eb   :  { %v837_v45 = vpop.xlane.xlu1 %836  ;;  %v844_v46 = vsub.f32 %v677_v15, %v834_v44 }
 0x4ec   :  { %v845_v47 = vsub.f32 %v727_v18, %v837_v45 }
 0x4ed   :  { %v848_v48 = vmul.f32 1.442695, %v844_v46 }
 0x4ee   :  { %v850_v50 = vmul.f32 1.442695, %v845_v47 }
 0x4ef   :  { %5819 = vpow2.f32 %v848_v48  ;;  %v881_v51 = vpop.permute.xlu1 %880 }
 0x4f0   :  { %5821 = vpow2.f32 %v850_v50  ;;  %v886_v52 = vsel %vm444_vm3, %v881_v51, 0 }
 0x4f1   :  { %5323 = vmatpush3.bf16.msra.mxu1 %v886_v52 }
 0x4f2   :  { %5334 = vmatprep.subr.bf16.mxu1 %v6060_v9  ;;  %v840_v57 = vpop.xlane.xlu0 %839 }
 0x4f3   :  { %v846_v61 = vsub.f32 %v777_v30, %v840_v57 }
 0x4f5   :  { %v852_v0 = vmul.f32 1.442695, %v846_v61 }
 0x4f6   :  { %v843_v58 = vpop.xlane.xlu0 %842 }
 0x4f7   :  { %v847_v59 = vsub.f32 %v827_v34, %v843_v58 }
 0x4f9   :  { %v854_v62 = vmul.f32 1.442695, %v847_v59 }
 0x4fb   :  { %5823 = vpow2.f32 %v854_v62 }
 0x4fc   :  { %v5820_v53 = vpop.eup %5819  ;;  %5825 = vpow2.f32 %v852_v0 }
 0x4fd   :  { %v5822_v54 = vpop.eup %5821  ;;  %v856_v55 = vsel %vm197_vm2, %v5820_v53, 0.0 }
 0x4fe   :  { %v859_v56 = vsel %vm197_vm2, %v5822_v54, 0.0  ;;  %857 = vadd.xlane.f32.xlu1 %v856_v55 }
 0x4ff   :  { %860 = vadd.xlane.f32.xlu0 %v859_v56 }
 0x508   :  { %v5824_v1 = vpop.eup %5823 }
 0x509   :  { %v5826_v2 = vpop.eup %5825  ;;  %v865_v3 = vsel %vm197_vm2, %v5824_v1, 0.0 }
 0x50a   :  { %v862_v6 = vsel %vm197_vm2, %v5826_v2, 0.0 }
 0x50f   :  { %976 = vrot.lane.b32.xlu1 %v6210_v14, %s6065_s0 }
 0x513   :  { %1024 = vrot.lane.b32.xlu1 %v6216_v20, %s6065_s0 }
 0x515   :  { %928 = vrot.lane.b32.xlu0 %v6220_v22, %s6065_s0 }
 0x534   :  { %866 = vadd.xlane.f32.xlu0 %v865_v3 }
 0x537   :  { %863 = vadd.xlane.f32.xlu1 %v862_v6 }
 0x548   :  { %1124 = vrot.lane.b32.xlu1 %v6220_v22, %s6066_s1 }
 0x54a   :  { %1074 = vrot.lane.b32.xlu0 %v6212_v17, %s6066_s1 }
 0x54c   :  { %1122 = vrot.lane.b32.xlu1 %v6220_v22, %s6067_s20 }
 0x54e   :  { %1072 = vrot.lane.b32.xlu0 %v6212_v17, %s6067_s20 }
 0x550   :  { %1224 = vrot.lane.b32.xlu1 %v6216_v20, %s6066_s1 }
 0x552   :  { %1174 = vrot.lane.b32.xlu0 %v6210_v14, %s6066_s1 }
 0x554   :  { %1222 = vrot.lane.b32.xlu1 %v6216_v20, %s6067_s20 }
 0x556   :  { %1172 = vrot.lane.b32.xlu0 %v6210_v14, %s6067_s20 }
 0x587   :  { %v858_v7 = vpop.xlane.xlu1 %857 }
 0x588   :  { %5827 = vrcp.f32 %v858_v7  ;;  %v861_v8 = vpop.xlane.xlu0 %860 }
 0x589   :  { %5829 = vrcp.f32 %v861_v8 }
 0x58b   :  { %v977_v12 = vpop.permute.xlu1 %976 }
 0x58c   :  { %v929_v10 = vpop.permute.xlu0 %928  ;;  %v982_v24 = vsel %vm444_vm3, %v977_v12, 0 }
 0x58d   :  { %v934_v11 = vsel %vm444_vm3, %v929_v10, 0 }
 0x58e   :  { %5329 = vmatpush3.bf16.msra.mxu0 %v934_v11 }
 0x58f   :  { %5340 = vmatprep.subr.bf16.mxu0 %v6060_v9  ;;  %v1025_v19 = vpop.permute.xlu1 %1024 }
 0x590   :  { %v1030_v25 = vsel %vm444_vm3, %v1025_v19, 0 }
 0x595   :  { %v5828_v13 = vpop.eup %5827 }
 0x596   :  { %v5830_v15 = vpop.eup %5829  ;;  %v872_v16 = vmul.f32 %v5828_v13, %v5820_v53 }
 0x597   :  { %v873_v18 = vmul.f32 %v5830_v15, %v5822_v54 }
 0x598   :  { %v876_v21 = vpack.c.bf16 %v872_v16, %v872_v16 }
 0x599   :  { %v877_v23 = vpack.c.bf16 %v873_v18, %v873_v18 }
 0x59a   :  { %5325 = vmatmul.mubr.msk.bf16.vlgmr.msra.gmra.mxu1 %vm197_vm2, %v876_v21 }
 0x59b   :  { %5331 = vmatmul.mubr.msk.bf16.vlgmr.msra.gmra.mxu0 %vm197_vm2, %v877_v23  ;;  %5335 = vmatpush3.bf16.msra.mxu1 %v982_v24 }
 0x59c   :  { %5341 = vmatpush3.bf16.msra.mxu0 %v1030_v25  ;;  %5342 = vmatprep.mubr.msk.bf16.mxu0 %vm6061_vm1, %v6060_v9 }
 0x59d   :  { %5352 = vmatprep.subr.bf16.mxu0 %v6060_v9  ;;  %5336 = vmatprep.mubr.msk.bf16.mxu1 %vm6061_vm1, %v6060_v9 }
 0x59e   :  { %5346 = vmatprep.subr.bf16.mxu1 %v6060_v9 }
 0x5bd   :  { %v867_v26 = vpop.xlane.xlu0 %866 }
 0x5be   :  { %5831 = vrcp.f32 %v867_v26 }
 0x5c0   :  { %v864_v27 = vpop.xlane.xlu1 %863 }
 0x5c1   :  { %5833 = vrcp.f32 %v864_v27  ;;  %v1075_v30 = vpop.permute.xlu0 %1074 }
 0x5c2   :  { %v1080_v41 = vsel %vm197_vm2, %v1075_v30, 0 }
 0x5c4   :  { %v1125_v28 = vpop.permute.xlu1 %1124 }
 0x5c5   :  { %v1130_v38 = vsel %vm197_vm2, %v1125_v28, 0  ;;  %v1073_v40 = vpop.permute.xlu0 %1072 }
 0x5c8   :  { %v1123_v36 = vpop.permute.xlu1 %1122 }
 0x5c9   :  { %v1175_v44 = vpop.permute.xlu0 %1174 }
 0x5ca   :  { %v1180_v46 = vsel %vm197_vm2, %v1175_v44, 0 }
 0x5cb   :  { %v5832_v29 = vpop.eup %5831 }
 0x5cc   :  { %v875_v32 = vmul.f32 %v5832_v29, %v5824_v1  ;;  %v1225_v43 = vpop.permute.xlu1 %1224 }
 0x5cd   :  { %v1230_v45 = vsel %vm197_vm2, %v1225_v43, 0  ;;  %v1173_v48 = vpop.permute.xlu0 %1172 }
 0x5ce   :  { %v5834_v33 = vpop.eup %5833  ;;  %v879_v34 = vpack.c.bf16 %v875_v32, %v875_v32 }
 0x5cf   :  { %v874_v37 = vmul.f32 %v5834_v33, %v5826_v2 }
 0x5d0   :  { %5343 = vmatmul.mubr.msk.bf16.vlgmr.msra.gmra.mxu0 %vm197_vm2, %v879_v34  ;;  %v1223_v47 = vpop.permute.xlu1 %1222 }
 0x5d1   :  { %5353 = vmatpush3.bf16.xpose.msra.mxu0 %v1130_v38  ;;  %v878_v39 = vpack.c.bf16 %v874_v37, %v874_v37  ;;  %5354 = vmatprep.mubr.msk.bf16.mxu0 %vm6061_vm1, %v6060_v9 }
 0x5d2   :  { %5364 = vmatprep.subr.bf16.mxu0 %v6060_v9 }
 0x5d3   :  { %5337 = vmatmul.mubr.msk.bf16.vlgmr.msra.gmra.mxu1 %vm197_vm2, %v878_v39 }
 0x5d4   :  { %5347 = vmatpush3.bf16.xpose.msra.mxu1 %v1080_v41  ;;  %5348 = vmatprep.mubr.msk.bf16.mxu1 %vm6061_vm1, %v6060_v9 }
 0x5d5   :  { %5358 = vmatprep.subr.bf16.mxu1 %v6060_v9 }
 0x5d8   :  { %5355 = vmatmul.mubr.msk.bf16.vlgmr.msra.gmra.mxu0 %vm197_vm2, %v1123_v36 }
 0x5d9   :  { %5365 = vmatpush3.bf16.xpose.msra.mxu0 %v1230_v45  ;;  %5366 = vmatprep.mubr.msk.bf16.mxu0 %vm6061_vm1, %v6060_v9 }
 0x5da   :  { %5376 = vmatprep.subr.bf16.mxu0 %v6060_v9 }
 0x5db   :  { %5349 = vmatmul.mubr.msk.bf16.vlgmr.msra.gmra.mxu1 %vm197_vm2, %v1073_v40 }
 0x5dc   :  { %5359 = vmatpush3.bf16.xpose.msra.mxu1 %v1180_v46  ;;  %5360 = vmatprep.mubr.msk.bf16.mxu1 %vm6061_vm1, %v6060_v9 }
 0x5dd   :  { %5370 = vmatprep.subr.bf16.mxu1 %v6060_v9 }
 0x5e0   :  { %5367 = vmatmul.mubr.msk.bf16.vlgmr.msra.gmra.mxu0 %vm197_vm2, %v1223_v47 }
 0x5e1   :  { %5378 = vmatprep.mubr.msk.bf16.mxu0 %vm6061_vm1, %v6060_v9 }
 0x5e3   :  { %5361 = vmatmul.mubr.msk.bf16.vlgmr.msra.gmra.mxu1 %vm197_vm2, %v1173_v48 }
 0x5e4   :  { %5372 = vmatprep.mubr.msk.bf16.mxu1 %vm6061_vm1, %v6060_v9 }
 0x65a   :  { %v6430_v50 = vpop.f32.mrf.mxu1 }
 0x65b   :  { %v6432_v51 = vpop.f32.mrf.mxu0 }
 0x65c   :  { %v5721_v52 = vpack.i.bf16 %v6432_v51, %v6430_v50  ;;  %v5326_v53 = vpop.f32.mrf.mxu1 }
 0x65d   :  { %v5332_v54 = vpop.f32.mrf.mxu0 }
 0x65e   :  { %v925_v55 = vpop.f32.mrf.mxu1 }
 0x65f   :  { %v973_v56 = vpop.f32.mrf.mxu0 }
 0x660   :  { %v5327_v57 = vpop.f32.mrf.mxu1 }
 0x661   :  { %v5333_v58 = vpop.f32.mrf.mxu0 }
 0x690   :  { %v6436_v59 = vpop.f32.mrf.mxu0 }
 0x692   :  { %v5344_v61 = vpop.f32.mrf.mxu0 }
 0x693   :  { %v6438_v62 = vpop.f32.mrf.mxu1 }
 0x694   :  { %v5726_v0 = vpack.i.bf16 %v6436_v59, %v6438_v62  ;;  %v1069_v1 = vpop.f32.mrf.mxu0 }
 0x695   :  { %v5338_v2 = vpop.f32.mrf.mxu1 }
 0x696   :  { %v5345_v3 = vpop.f32.mrf.mxu0 }
 0x697   :  { %v1021_v6 = vpop.f32.mrf.mxu1 }
 0x698   :  { %v1166_v7 = vpop.f32.mrf.mxu0 }
 0x699   :  { %v1167_v8 = vadd.f32 %v6259_v35, %v1166_v7  ;;  %v5339_v10 = vpop.f32.mrf.mxu1 }
 0x69a   :  { %v5356_v11 = vpop.f32.mrf.mxu0 }
 0x69b   :  { %v1275_v12 = vsel %vm197_vm2, %v1167_v8, -inf  ;;  %v1116_v13 = vpop.f32.mrf.mxu1 }
 0x69c   :  { %1276 = vmax.xlane.f32.xlu1 %v1275_v12  ;;  %v1117_v15 = vadd.f32 %v6253_v31, %v1116_v13  ;;  %v1169_v16 = vpop.f32.mrf.mxu0 }
 0x69d   :  { %v5350_v18 = vpop.f32.mrf.mxu1 }
 0x69e   :  { %v5357_v19 = vpop.f32.mrf.mxu0  ;;  %v1272_v21 = vsel %vm197_vm2, %v1117_v15, -inf }
 0x69f   :  { %1273 = vmax.xlane.f32.xlu0 %v1272_v21  ;;  %v1119_v23 = vpop.f32.mrf.mxu1 }
 0x6a0   :  { %v1266_v24 = vpop.f32.mrf.mxu0 }
 0x6a1   :  { %v5351_v25 = vpop.f32.mrf.mxu1  ;;  %v1267_v32 = vadd.f32 %v6273_v49, %v1266_v24 }
 0x6a2   :  { %v5368_v26 = vpop.f32.mrf.mxu0 }
 0x6a3   :  { %v1216_v27 = vpop.f32.mrf.mxu1  ;;  %v1281_v38 = vsel %vm197_vm2, %v1267_v32, -inf }
 0x6a4   :  { %v1217_v28 = vadd.f32 %v6266_v42, %v1216_v27  ;;  %v1269_v29 = vpop.f32.mrf.mxu0 }
 0x6a5   :  { %v5362_v30 = vpop.f32.mrf.mxu1 }
 0x6a6   :  { %v5369_v33 = vpop.f32.mrf.mxu0  ;;  %v1278_v34 = vsel %vm197_vm2, %v1217_v28, -inf }
 0x6a7   :  { %1279 = vmax.xlane.f32.xlu0 %v1278_v34  ;;  %v1219_v36 = vpop.f32.mrf.mxu1 }
 0x6a9   :  { %v5363_v37 = vpop.f32.mrf.mxu1 }
 0x6ab   :  { %1282 = vmax.xlane.f32.xlu0 %v1281_v38 }
 0x6ad   :  { %1320 = vrot.lane.b32.xlu1 %v6212_v17, %s6068_s21 }
 0x725   :  { %v1277_v39 = vpop.xlane.xlu1 %1276 }
 0x726   :  { %v1285_v40 = vsub.f32 %v1167_v8, %v1277_v39 }
 0x728   :  { %v1290_v41 = vmul.f32 1.442695, %v1285_v40  ;;  %v1274_v43 = vpop.xlane.xlu0 %1273 }
 0x729   :  { %v1321_v44 = vpop.permute.xlu1 %1320  ;;  %v1284_v45 = vsub.f32 %v1117_v15, %v1274_v43 }
 0x72a   :  { %5835 = vpow2.f32 %v1290_v41  ;;  %v1326_v46 = vsel %vm444_vm3, %v1321_v44, 0 }
 0x72b   :  { %v1288_v47 = vmul.f32 1.442695, %v1284_v45  ;;  %5371 = vmatpush3.bf16.msra.mxu1 %v1326_v46 }
 0x72c   :  { %5382 = vmatprep.subr.bf16.mxu1 %v6060_v9 }
 0x72d   :  { %5837 = vpow2.f32 %v1288_v47 }
 0x730   :  { %v1280_v56 = vpop.xlane.xlu0 %1279 }
 0x731   :  { %v1286_v1 = vsub.f32 %v1217_v28, %v1280_v56 }
 0x733   :  { %v1292_v2 = vmul.f32 1.442695, %v1286_v1 }
 0x734   :  { %v1283_v57 = vpop.xlane.xlu0 %1282 }
 0x735   :  { %v1287_v58 = vsub.f32 %v1267_v32, %v1283_v57 }
 0x737   :  { %v5836_v48 = vpop.eup %5835  ;;  %v1294_v61 = vmul.f32 1.442695, %v1287_v58 }
 0x738   :  { %v1299_v53 = vsel %vm197_vm2, %v5836_v48, 0.0 }
 0x739   :  { %1300 = vadd.xlane.f32.xlu0 %v1299_v53  ;;  %5839 = vpow2.f32 %v1294_v61 }
 0x73a   :  { %v5838_v54 = vpop.eup %5837  ;;  %5841 = vpow2.f32 %v1292_v2 }
 0x73b   :  { %v1296_v55 = vsel %vm197_vm2, %v5838_v54, 0.0 }
 0x73c   :  { %1297 = vadd.xlane.f32.xlu1 %v1296_v55 }
 0x746   :  { %v5840_v3 = vpop.eup %5839 }
 0x747   :  { %v1305_v6 = vsel %vm197_vm2, %v5840_v3, 0.0  ;;  %v5842_v7 = vpop.eup %5841 }
 0x748   :  { %v1302_v8 = vsel %vm197_vm2, %v5842_v7, 0.0 }
 0x74d   :  { %1416 = vrot.lane.b32.xlu1 %v6210_v14, %s6068_s21 }
 0x74f   :  { %1368 = vrot.lane.b32.xlu0 %v6220_v22, %s6068_s21 }
 0x751   :  { %1464 = vrot.lane.b32.xlu1 %v6216_v20, %s6068_s21 }
 0x76e   :  { %1306 = vadd.xlane.f32.xlu0 %v1305_v6 }
 0x775   :  { %1303 = vadd.xlane.f32.xlu1 %v1302_v8 }
 0x784   :  { %1514 = vrot.lane.b32.xlu0 %v6212_v17, %s7228_s22 }
 0x786   :  { %1564 = vrot.lane.b32.xlu1 %v6220_v22, %s7228_s22 }
 0x788   :  { %1512 = vrot.lane.b32.xlu0 %v6212_v17, %s7226_s23 }
 0x78a   :  { %1562 = vrot.lane.b32.xlu1 %v6220_v22, %s7226_s23 }
 0x78c   :  { %1614 = vrot.lane.b32.xlu0 %v6210_v14, %s7228_s22 }
 0x78e   :  { %1664 = vrot.lane.b32.xlu1 %v6216_v20, %s7228_s22  ;;  %s6076_s22 = smov [#allocation6]  }
 0x790   :  { %1612 = vrot.lane.b32.xlu0 %v6210_v14, %s7226_s23 }
 0x792   :  { %1662 = vrot.lane.b32.xlu1 %v6216_v20, %s7226_s23 }
 0x7c2   :  { %v1301_v10 = vpop.xlane.xlu0 %1300 }
 0x7c3   :  { %5843 = vrcp.f32 %v1301_v10 }
 0x7c5   :  { %v1298_v11 = vpop.xlane.xlu1 %1297 }
 0x7c6   :  { %5845 = vrcp.f32 %v1298_v11  ;;  %v1369_v12 = vpop.permute.xlu0 %1368 }
 0x7c7   :  { %v1374_v13 = vsel %vm444_vm3, %v1369_v12, 0 }
 0x7c8   :  { %5377 = vmatpush3.bf16.msra.mxu0 %v1374_v13 }
 0x7c9   :  { %5388 = vmatprep.subr.bf16.mxu0 %v6060_v9  ;;  %v1417_v15 = vpop.permute.xlu1 %1416 }
 0x7ca   :  { %v1422_v27 = vsel %vm444_vm3, %v1417_v15, 0 }
 0x7cd   :  { %v1465_v19 = vpop.permute.xlu1 %1464 }
 0x7ce   :  { %v1470_v25 = vsel %vm444_vm3, %v1465_v19, 0 }
 0x7d0   :  { %v5844_v16 = vpop.eup %5843 }
 0x7d1   :  { %v1313_v18 = vmul.f32 %v5844_v16, %v5836_v48 }
 0x7d3   :  { %v5846_v21 = vpop.eup %5845  ;;  %v1317_v23 = vpack.c.bf16 %v1313_v18, %v1313_v18 }
 0x7d4   :  { %v1312_v24 = vmul.f32 %v5846_v21, %v5838_v54 }
 0x7d5   :  { %5379 = vmatmul.mubr.msk.bf16.vlgmr.msra.gmra.mxu0 %vm197_vm2, %v1317_v23 }
 0x7d6   :  { %5389 = vmatpush3.bf16.msra.mxu0 %v1470_v25  ;;  %v1316_v26 = vpack.c.bf16 %v1312_v24, %v1312_v24  ;;  %5390 = vmatprep.mubr.msk.bf16.mxu0 %vm6061_vm1, %v6060_v9 }
 0x7d7   :  { %5400 = vmatprep.subr.bf16.mxu0 %v6060_v9 }
 0x7d8   :  { %5373 = vmatmul.mubr.msk.bf16.vlgmr.msra.gmra.mxu1 %vm197_vm2, %v1316_v26 }
 0x7d9   :  { %5383 = vmatpush3.bf16.msra.mxu1 %v1422_v27  ;;  %5384 = vmatprep.mubr.msk.bf16.mxu1 %vm6061_vm1, %v6060_v9 }
 0x7da   :  { %5394 = vmatprep.subr.bf16.mxu1 %v6060_v9 }
 0x7f7   :  { %v1307_v28 = vpop.xlane.xlu0 %1306 }
 0x7f8   :  { %5847 = vrcp.f32 %v1307_v28 }
 0x7fb   :  { %v1515_v37 = vpop.permute.xlu0 %1514 }
 0x7fc   :  { %v1520_v45 = vsel %vm197_vm2, %v1515_v37, 0 }
 0x7fe   :  { %v1304_v29 = vpop.xlane.xlu1 %1303 }
 0x7ff   :  { %5849 = vrcp.f32 %v1304_v29  ;;  %v1513_v44 = vpop.permute.xlu0 %1512 }
 0x802   :  { %v1565_v30 = vpop.permute.xlu1 %1564 }
 0x803   :  { %v1570_v38 = vsel %vm197_vm2, %v1565_v30, 0  ;;  %v1615_v47 = vpop.permute.xlu0 %1614 }
 0x804   :  { %v1620_v48 = vsel %vm197_vm2, %v1615_v47, 0 }
 0x805   :  { %v5848_v32 = vpop.eup %5847 }
 0x806   :  { %v1315_v33 = vmul.f32 %v5848_v32, %v5840_v3  ;;  %v1563_v36 = vpop.permute.xlu1 %1562 }
 0x807   :  { %v1613_v54 = vpop.permute.xlu0 %1612 }
 0x808   :  { %v1319_v34 = vpack.c.bf16 %v1315_v33, %v1315_v33 }
 0x80a   :  { %5391 = vmatmul.mubr.msk.bf16.vlgmr.msra.gmra.mxu0 %vm197_vm2, %v1319_v34  ;;  %v1665_v41 = vpop.permute.xlu1 %1664 }
 0x80b   :  { %5401 = vmatpush3.bf16.xpose.msra.mxu0 %v1570_v38  ;;  %5402 = vmatprep.mubr.msk.bf16.mxu0 %vm6061_vm1, %v6060_v9  ;;  %v1670_v46 = vsel %vm197_vm2, %v1665_v41, 0 }
 0x80c   :  { %v5850_v39 = vpop.eup %5849  ;;  %5412 = vmatprep.subr.bf16.mxu0 %v6060_v9 }
 0x80d   :  { %v1314_v40 = vmul.f32 %v5850_v39, %v5842_v7 }
 0x80e   :  { %v1663_v53 = vpop.permute.xlu1 %1662 }
 0x80f   :  { %v1318_v43 = vpack.c.bf16 %v1314_v40, %v1314_v40 }
 0x811   :  { %5385 = vmatmul.mubr.msk.bf16.vlgmr.msra.gmra.mxu1 %vm197_vm2, %v1318_v43 }
 0x812   :  { %5395 = vmatpush3.bf16.xpose.msra.mxu1 %v1520_v45  ;;  %5403 = vmatmul.mubr.msk.bf16.vlgmr.msra.gmra.mxu0 %vm197_vm2, %v1563_v36 }
 0x813   :  { %5413 = vmatpush3.bf16.xpose.msra.mxu0 %v1670_v46  ;;  %5396 = vmatprep.mubr.msk.bf16.mxu1 %vm6061_vm1, %v6060_v9 }
 0x814   :  { %5406 = vmatprep.subr.bf16.mxu1 %v6060_v9  ;;  %5414 = vmatprep.mubr.msk.bf16.mxu0 %vm6061_vm1, %v6060_v9 }
 0x815   :  { %5424 = vmatprep.subr.bf16.mxu0 %v6060_v9 }
 0x819   :  { %5397 = vmatmul.mubr.msk.bf16.vlgmr.msra.gmra.mxu1 %vm197_vm2, %v1513_v44 }
 0x81a   :  { %5407 = vmatpush3.bf16.xpose.msra.mxu1 %v1620_v48  ;;  %5415 = vmatmul.mubr.msk.bf16.vlgmr.msra.gmra.mxu0 %vm197_vm2, %v1663_v53 }
 0x81b   :  { %5408 = vmatprep.mubr.msk.bf16.mxu1 %vm6061_vm1, %v6060_v9  ;;  %5418 = vmatprep.subr.bf16.mxu1 %v6060_v9 }
 0x81c   :  { %5426 = vmatprep.mubr.msk.bf16.mxu0 %vm6061_vm1, %v6060_v9 }
 0x821   :  { %5409 = vmatmul.mubr.msk.bf16.vlgmr.msra.gmra.mxu1 %vm197_vm2, %v1613_v54 }
 0x822   :  { %5420 = vmatprep.mubr.msk.bf16.mxu1 %vm6061_vm1, %v6060_v9 }
 0x895   :  { %v6518_v55 = vpop.f32.mrf.mxu0 }
 0x897   :  { %v5380_v56 = vpop.f32.mrf.mxu0 }
 0x898   :  { %v6520_v57 = vpop.f32.mrf.mxu1 }
 0x899   :  { %v5731_v58 = vpack.i.bf16 %v6518_v55, %v6520_v57  ;;  %v1413_v61 = vpop.f32.mrf.mxu0 }
 0x89a   :  { %v5374_v1 = vpop.f32.mrf.mxu1 }
 0x89b   :  { %v5381_v2 = vpop.f32.mrf.mxu0 }
 0x89c   :  { %v1365_v3 = vpop.f32.mrf.mxu1 }
 0x89e   :  { %v5375_v6 = vpop.f32.mrf.mxu1 }
 0x8ca   :  { %v6524_v7 = vpop.f32.mrf.mxu0 }
 0x8cc   :  { %v5392_v8 = vpop.f32.mrf.mxu0 }
 0x8ce   :  { %v1509_v10 = vpop.f32.mrf.mxu0 }
 0x8d0   :  { %v5393_v11 = vpop.f32.mrf.mxu0 }
 0x8d1   :  { %v6526_v12 = vpop.f32.mrf.mxu1 }
 0x8d2   :  { %v5736_v13 = vpack.i.bf16 %v6524_v7, %v6526_v12  ;;  %v1606_v15 = vpop.f32.mrf.mxu0 }
 0x8d3   :  { %v1607_v16 = vadd.f32 %v6259_v35, %v1606_v15  ;;  %v5386_v18 = vpop.f32.mrf.mxu1 }
 0x8d4   :  { %v5404_v19 = vpop.f32.mrf.mxu0 }
 0x8d5   :  { %v1461_v21 = vpop.f32.mrf.mxu1  ;;  %v1715_v23 = vsel %vm197_vm2, %v1607_v16, -inf }
 0x8d6   :  { %1716 = vmax.xlane.f32.xlu1 %v1715_v23  ;;  %v1609_v24 = vpop.f32.mrf.mxu0 }
 0x8d7   :  { %v5387_v25 = vpop.f32.mrf.mxu1 }
 0x8d8   :  { %v5405_v26 = vpop.f32.mrf.mxu0 }
 0x8d9   :  { %v1556_v27 = vpop.f32.mrf.mxu1 }
 0x8da   :  { %v1557_v28 = vadd.f32 %v6253_v31, %v1556_v27  ;;  %v1706_v29 = vpop.f32.mrf.mxu0 }
 0x8db   :  { %v5398_v30 = vpop.f32.mrf.mxu1  ;;  %v1707_v41 = vadd.f32 %v6273_v49, %v1706_v29 }
 0x8dc   :  { %v5416_v32 = vpop.f32.mrf.mxu0  ;;  %v1712_v33 = vsel %vm197_vm2, %v1557_v28, -inf  ;;  %v5785_v30 = vld [vmem:[%s7202_s5 + $0x8] sm:$0xff]  }
 0x8dd   :  { %1713 = vmax.xlane.f32.xlu0 %v1712_v33  ;;  %v1559_v34 = vpop.f32.mrf.mxu1  ;;  %v1721_v45 = vsel %vm197_vm2, %v1707_v41, -inf }
 0x8de   :  { %v1709_v35 = vpop.f32.mrf.mxu0 }
 0x8df   :  { %v5399_v36 = vpop.f32.mrf.mxu1 }
 0x8e0   :  { %v5417_v37 = vpop.f32.mrf.mxu0  ;;  %v5786_v36 = vld [vmem:[%s7202_s5] sm:$0xff]  }
 0x8e1   :  { %v1656_v38 = vpop.f32.mrf.mxu1 }
 0x8e2   :  { %v1657_v39 = vadd.f32 %v6266_v42, %v1656_v38 }
 0x8e3   :  { %v5410_v40 = vpop.f32.mrf.mxu1 }
 0x8e4   :  { %v1718_v43 = vsel %vm197_vm2, %v1657_v39, -inf }
 0x8e5   :  { %1719 = vmax.xlane.f32.xlu0 %v1718_v43  ;;  %v1659_v31 = vpop.f32.mrf.mxu1 }
 0x8e7   :  { %1760 = vrot.lane.b32.xlu1 %v6212_v17, %s7222_s24  ;;  %v5411_v44 = vpop.f32.mrf.mxu1 }
 0x8e9   :  { %1722 = vmax.xlane.f32.xlu0 %v1721_v45 }
 0x95f   :  { %v1717_v46 = vpop.xlane.xlu1 %1716 }
 0x960   :  { %v1725_v47 = vsub.f32 %v1607_v16, %v1717_v46 }
 0x962   :  { %v1730_v48 = vmul.f32 1.442695, %v1725_v47 }
 0x963   :  { %v1761_v53 = vpop.permute.xlu1 %1760 }
 0x964   :  { %5851 = vpow2.f32 %v1730_v48  ;;  %v1766_v42 = vsel %vm444_vm3, %v1761_v53, 0 }
 0x965   :  { %5419 = vmatpush3.bf16.msra.mxu1 %v1766_v42 }
 0x966   :  { %v1714_v49 = vpop.xlane.xlu0 %1713  ;;  %5430 = vmatprep.subr.bf16.mxu1 %v6060_v9 }
 0x967   :  { %v1724_v54 = vsub.f32 %v1557_v28, %v1714_v49 }
 0x969   :  { %v1728_v56 = vmul.f32 1.442695, %v1724_v54 }
 0x96b   :  { %5853 = vpow2.f32 %v1728_v56 }
 0x96e   :  { %v1720_v61 = vpop.xlane.xlu0 %1719 }
 0x96f   :  { %v1726_v17 = vsub.f32 %v1657_v39, %v1720_v61 }
 0x971   :  { %v5852_v1 = vpop.eup %5851  ;;  %v1732_v2 = vmul.f32 1.442695, %v1726_v17 }
 0x972   :  { %v1739_v3 = vsel %vm197_vm2, %v5852_v1, 0.0  ;;  %v1723_v6 = vpop.xlane.xlu0 %1722 }
 0x973   :  { %5855 = vpow2.f32 %v1732_v2  ;;  %1740 = vadd.xlane.f32.xlu0 %v1739_v3  ;;  %v1727_v8 = vsub.f32 %v1707_v41, %v1723_v6 }
 0x975   :  { %v1734_v10 = vmul.f32 1.442695, %v1727_v8 }
 0x977   :  { %5857 = vpow2.f32 %v1734_v10 }
 0x978   :  { %v5854_v11 = vpop.eup %5853 }
 0x979   :  { %v1736_v15 = vsel %vm197_vm2, %v5854_v11, 0.0 }
 0x97a   :  { %1737 = vadd.xlane.f32.xlu1 %v1736_v15 }
 0x980   :  { %v5856_v16 = vpop.eup %5855 }
 0x981   :  { %v1742_v18 = vsel %vm197_vm2, %v5856_v16, 0.0 }
 0x982   :  { %1743 = vadd.xlane.f32.xlu1 %v1742_v18 }
 0x984   :  { %v5858_v19 = vpop.eup %5857 }
 0x985   :  { %v1745_v21 = vsel %vm197_vm2, %v5858_v19, 0.0 }
 0x986   :  { %1746 = vadd.xlane.f32.xlu0 %v1745_v21 }
 0x993   :  { %1856 = vrot.lane.b32.xlu1 %v6210_v14, %s7222_s24 }
 0x997   :  { %1904 = vrot.lane.b32.xlu1 %v6216_v20, %s7222_s24 }
 0x99b   :  { %5727 = vrot.lane.b32.xlu1 %v5726_v0, %s7220_s25 }
 0x99c   :  { %1808 = vrot.lane.b32.xlu0 %v6220_v22, %s7222_s24  ;;  %s7224_s24 = smov 24  }
 0x99f   :  { %5737 = vrot.lane.b32.xlu1 %v5736_v13, %s7218_s27 }
 0x9a0   :  { %5722 = vrot.lane.b32.xlu0 %v5721_v52, %s7220_s25 }
 0x9a4   :  { %5732 = vrot.lane.b32.xlu0 %v5731_v58, %s7218_s27 }
 0x9fc   :  { %v1741_v14 = vpop.xlane.xlu0 %1740 }
 0x9fd   :  { %5859 = vrcp.f32 %v1741_v14 }
 0xa03   :  { %v1738_v20 = vpop.xlane.xlu1 %1737 }
 0xa04   :  { %5861 = vrcp.f32 %v1738_v20 }
 0xa0a   :  { %v5860_v59 = vpop.eup %5859 }
 0xa0b   :  { %v1744_v22 = vpop.xlane.xlu1 %1743  ;;  %v1753_v13 = vmul.f32 %v5860_v59, %v5852_v1 }
 0xa0c   :  { %5863 = vrcp.f32 %v1744_v22 }
 0xa0d   :  { %v1757_v57 = vpack.c.bf16 %v1753_v13, %v1753_v13 }
 0xa0f   :  { %v1857_v62 = vpop.permute.xlu1 %1856  ;;  %v1747_v0 = vpop.xlane.xlu0 %1746 }
 0xa10   :  { %5865 = vrcp.f32 %v1747_v0  ;;  %v1862_v55 = vsel %vm444_vm3, %v1857_v62, 0 }
 0xa11   :  { %v5862_v7 = vpop.eup %5861 }
 0xa12   :  { %v1752_v12 = vmul.f32 %v5862_v7, %v5854_v11 }
 0xa13   :  { %v1809_v50 = vpop.permute.xlu0 %1808  ;;  %v1905_v23 = vpop.permute.xlu1 %1904 }
 0xa14   :  { %v1814_v51 = vsel %vm444_vm3, %v1809_v50, 0  ;;  %v1756_v52 = vpack.c.bf16 %v1752_v12, %v1752_v12  ;;  %v1910_v58 = vsel %vm444_vm3, %v1905_v23, 0 }
 0xa15   :  { %5425 = vmatpush3.bf16.msra.mxu0 %v1814_v51 }
 0xa16   :  { %5421 = vmatmul.mubr.msk.bf16.vlgmr.msra.gmra.mxu1 %vm197_vm2, %v1756_v52  ;;  %5436 = vmatprep.subr.bf16.mxu0 %v6060_v9 }
 0xa17   :  { %5431 = vmatpush3.bf16.msra.mxu1 %v1862_v55  ;;  %5432 = vmatprep.mubr.msk.bf16.mxu1 %vm6061_vm1, %v6060_v9  ;;  %v5723_v49 = vpop.permute.xlu0 %5722  ;;  %v5728_v2 = vpop.permute.xlu1 %5727 }
 0xa18   :  { %5427 = vmatmul.mubr.msk.bf16.vlgmr.msra.gmra.mxu0 %vm197_vm2, %v1757_v57  ;;  %5442 = vmatprep.subr.bf16.mxu1 %v5785_v30  ;;  %v5725_v56 = vunpack.i.h.bf16 %v5723_v49  ;;  %v5724_v61 = vunpack.i.l.bf16 %v5723_v49  ;;  %v5730_v20 = vunpack.i.h.bf16 %v5728_v2  ;;  %v5729_v22 = vunpack.i.l.bf16 %v5728_v2 }
 0xa19   :  { %v5864_v24 = vpop.eup %5863  ;;  %5437 = vmatpush3.bf16.msra.mxu0 %v1910_v58  ;;  %5438 = vmatprep.mubr.msk.bf16.mxu0 %vm6061_vm1, %v6060_v9 }
 0xa1a   :  { %v1754_v25 = vmul.f32 %v5864_v24, %v5856_v16  ;;  %v2001_v6 = vsel %vm197_vm2, %v6348_v63, %v5725_v56  ;;  %v2000_v8 = vsel %vm197_vm2, %v6346_v60, %v5724_v61  ;;  %v2003_v60 = vsel %vm197_vm2, %v6352_v5, %v5730_v20  ;;  %v4973_v5 = vld [vmem:[%s7203_s6] ss:$0 sm:$0xff] }
 0xa1b   :  { %v5733_v54 = vpop.permute.xlu0 %5732  ;;  %v5738_v14 = vpop.permute.xlu1 %5737  ;;  %v2002_v0 = vsel %vm197_vm2, %v6350_v4, %v5729_v22 }
 0xa1c   :  { %v1758_v27 = vpack.c.bf16 %v1754_v25, %v1754_v25  ;;  %v5735_v17 = vunpack.i.h.bf16 %v5733_v54  ;;  %v5734_v1 = vunpack.i.l.bf16 %v5733_v54  ;;  %v5740_v63 = vunpack.i.h.bf16 %v5738_v14  ;;  %v5983_v25 = vld [vmem:[%s7233_s26] sm:$0xff] }
 0xa1d   :  { %v5866_v26 = vpop.eup %5865  ;;  %v5739_v59 = vunpack.i.l.bf16 %v5738_v14 }
 0xa1e   :  { %5433 = vmatmul.mubr.msk.bf16.vlgmr.msra.gmra.mxu1 %vm197_vm2, %v1758_v27  ;;  %v1755_v28 = vmul.f32 %v5866_v26, %v5858_v19  ;;  %v2005_v15 = vsel %vm2004_vm4, %v2000_v8, %v5734_v1  ;;  %v2006_v16 = vsel %vm2004_vm4, %v2001_v6, %v5735_v17  ;;  %v2008_v50 = vsel %vm2004_vm4, %v2003_v60, %v5740_v63 }
 0xa1f   :  { %5443 = vmatpush3.bf16.msra.mxu1 %v5785_v30  ;;  %v2007_v13 = vsel %vm2004_vm4, %v2002_v0, %v5739_v59 }
 0xa20   :  { %v1759_v29 = vpack.c.bf16 %v1755_v28, %v1755_v28  ;;  %5444 = vmatprep.subr.bf16.mxu1 %v5786_v36 }
 0xa22   :  { %5439 = vmatmul.mubr.msk.bf16.vlgmr.msra.gmra.mxu0 %vm197_vm2, %v1759_v29 }
 0xa23   :  { %5445 = vmatpush3.bf16.msra.mxu1 %v5786_v36 }
 0xad6   :  { %v1802_v32 = vpop.f32.mrf.mxu1 }
 0xad8   :  { %v5422_v33 = vpop.f32.mrf.mxu1  ;;  %v1850_v34 = vpop.f32.mrf.mxu0 }
 0xad9   :  { %v5741_v35 = vpack.i.bf16 %v1850_v34, %v1802_v32  ;;  %v5984_v32 = vld [vmem:[%s7233_s26 + $0x10] sm:$0xff]  ;;  %v5985_v34 = vld [vmem:[%s7233_s26 + $0x8] sm:$0xff] }
 0xada   :  { %v1805_v37 = vpop.f32.mrf.mxu1  ;;  %v5428_v38 = vpop.f32.mrf.mxu0 }
 0xadb   :  { %5742 = vrot.lane.b32.xlu0 %v5741_v35, %s7224_s24  ;;  %v5986_v38 = vld [vmem:[%s7233_s26 + $0x18] sm:$0xff] }
 0xadc   :  { %v5423_v39 = vpop.f32.mrf.mxu1  ;;  %v1853_v40 = vpop.f32.mrf.mxu0 }
 0xade   :  { %v5429_v41 = vpop.f32.mrf.mxu0  ;;  %v1898_v43 = vpop.f32.mrf.mxu1 }
 0xae0   :  { %v5434_v31 = vpop.f32.mrf.mxu1 }
 0xae2   :  { %v1901_v44 = vpop.f32.mrf.mxu1  ;;  %v1946_v45 = vpop.f32.mrf.mxu0 }
 0xae3   :  { %v5746_v46 = vpack.i.bf16 %v1946_v45, %v1898_v43 }
 0xae4   :  { %v5435_v47 = vpop.f32.mrf.mxu1  ;;  %v5440_v48 = vpop.f32.mrf.mxu0 }
 0xae5   :  { %5747 = vrot.lane.b32.xlu1 %v5746_v46, %s7224_s24 }
 0xae6   :  { %v1949_v53 = vpop.f32.mrf.mxu0 }
 0xae8   :  { %v5441_v42 = vpop.f32.mrf.mxu0 }
 0xb4d   :  { %v5743_v3 = vpop.permute.xlu0 %5742 }
 0xb4e   :  { %v5745_v10 = vunpack.i.h.bf16 %v5743_v3  ;;  %v5744_v11 = vunpack.i.l.bf16 %v5743_v3 }
 0xb50   :  { %v2010_v18 = vsel %vm2009_vm5, %v2005_v15, %v5744_v11  ;;  %v2011_v19 = vsel %vm2009_vm5, %v2006_v16, %v5745_v10  ;;  %v5787_v10 = vld [vmem:[#allocation3 + $0x8] sm:$0xff]   ;;  %v5788_v11 = vld [vmem:[#allocation3] sm:$0xff]  }
 0xb51   :  { %v2014_v21 = vpack.c.bf16 %v2011_v19, %v2010_v18  ;;  %5450 = vmatprep.subr.bf16.mxu0 %v5787_v10 }
 0xb52   :  { %5451 = vmatpush3.bf16.msra.mxu0 %v5787_v10 }
 0xb53   :  { %5446 = vmatprep.mubr.msk.bf16.mxu1 %vm110_vm0, %v2014_v21  ;;  %5452 = vmatprep.subr.bf16.mxu0 %v5788_v11 }
 0xb56   :  { %5453 = vmatpush3.bf16.msra.mxu0 %v5788_v11 }
 0xb57   :  { %v5748_v62 = vpop.permute.xlu1 %5747 }
 0xb58   :  { %v5750_v7 = vunpack.i.h.bf16 %v5748_v62  ;;  %v5749_v12 = vunpack.i.l.bf16 %v5748_v62 }
 0xb5a   :  { %v2013_v51 = vsel %vm2009_vm5, %v2008_v50, %v5750_v7  ;;  %v2012_v52 = vsel %vm2009_vm5, %v2007_v13, %v5749_v12  ;;  %v4978_v12 = vld [vmem:[%s7204_s7] ss:$0 sm:$0xff] }
 0xb5b   :  { %v2015_v23 = vpack.c.bf16 %v2013_v51, %v2012_v52 }
 0xb5d   :  { %5447 = vmatmul.mubr.msk.bf16.vlgmr.msra.gmra.mxu1 %vm110_vm0, %v2015_v23 }
 0xc1d   :  { %v5448_v55 = vpop.f32.mrf.mxu1 }
 0xc1e   :  { %v2088_v4 = vadd.f32 %v5448_v55, %v4973_v5  ;;  %v4979_v55 = vld [vmem:[%s7205_s8] ss:$0 sm:$0xff] }
 0xc1f   :  { %v2079_v57 = vpop.f32.mrf.mxu1 }
 0xc20   :  { %v2080_v58 = vadd.f32 %v4973_v5, %v2079_v57  ;;  %v2096_v33 = vadd.f32 %v5984_v32, %v2088_v4  ;;  %v5789_v32 = vld [vmem:[%s7208_s11 + $0x18] sm:$0xff]  }
 0xc21   :  { %v5449_v24 = vpop.f32.mrf.mxu1  ;;  %5458 = vmatprep.subr.bf16.mxu1 %v5789_v32 }
 0xc22   :  { %v2094_v26 = vadd.f32 %v5983_v25, %v2080_v58  ;;  %v2091_v28 = vadd.f32 %v5449_v24, %v4973_v5  ;;  %v2106_v37 = vsel %vm110_vm0, %v2096_v33, 0.0  ;;  %5459 = vmatpush3.bf16.msra.mxu1 %v5789_v32 }
 0xc23   :  { %v2082_v27 = vpop.f32.mrf.mxu1 }
 0xc24   :  { %v2083_v29 = vadd.f32 %v4973_v5, %v2082_v27  ;;  %v2100_v30 = vsel %vm110_vm0, %v2094_v26, 0.0  ;;  %v2097_v39 = vadd.f32 %v5986_v38, %v2091_v28 }
 0xc25   :  { %2101 = vadd.xlane.f32.xlu0 %v2100_v30 }
 0xc26   :  { %v2095_v35 = vadd.f32 %v5985_v34, %v2083_v29  ;;  %v2109_v40 = vsel %vm110_vm0, %v2097_v39, 0.0  ;;  %v5791_v34 = vld [vmem:[%s7208_s11 + $0x8] sm:$0xff]  }
 0xc28   :  { %v2103_v36 = vsel %vm110_vm0, %v2095_v35, 0.0 }
 0xc29   :  { %2104 = vadd.xlane.f32.xlu1 %v2103_v36  ;;  %2107 = vadd.xlane.f32.xlu0 %v2106_v37  ;;  %v4980_v36 = vld [vmem:[%s7207_s10] ss:$0 sm:$0xff] }
 0xc2d   :  { %2110 = vadd.xlane.f32.xlu0 %v2109_v40 }
 0xcae   :  { %v2102_v41 = vpop.xlane.xlu0 %2101 }
 0xcaf   :  { %v2113_v43 = vmul.f32 0.03125, %v2102_v41 }
 0xcb1   :  { %v2117_v31 = vsub.f32 %v2094_v26, %v2113_v43 }
 0xcb2   :  { %v2105_v44 = vpop.xlane.xlu1 %2104  ;;  %v2108_v45 = vpop.xlane.xlu0 %2107 }
 0xcb3   :  { %v2114_v46 = vmul.f32 0.03125, %v2105_v44  ;;  %v2115_v47 = vmul.f32 0.03125, %v2108_v45  ;;  %v2121_v48 = vmul.f32 %v2117_v31, %v2117_v31 }
 0xcb5   :  { %v2118_v53 = vsub.f32 %v2095_v35, %v2114_v46  ;;  %v2119_v42 = vsub.f32 %v2096_v33, %v2115_v47  ;;  %v2125_v49 = vsel %vm110_vm0, %v2121_v48, 0.0  ;;  %v5790_v33 = vld [vmem:[%s7208_s11 + $0x10] sm:$0xff]   ;;  %v5792_v35 = vld [vmem:[%s7208_s11] sm:$0xff]  }
 0xcb6   :  { %2126 = vadd.xlane.f32.xlu1 %v2125_v49  ;;  %v2111_v54 = vpop.xlane.xlu0 %2110  ;;  %5460 = vmatprep.subr.bf16.mxu1 %v5790_v33 }
 0xcb7   :  { %v2116_v56 = vmul.f32 0.03125, %v2111_v54  ;;  %v2122_v61 = vmul.f32 %v2118_v53, %v2118_v53  ;;  %v2123_v17 = vmul.f32 %v2119_v42, %v2119_v42  ;;  %5461 = vmatpush3.bf16.msra.mxu1 %v5790_v33 }
 0xcb8   :  { %5462 = vmatprep.subr.bf16.mxu1 %v5791_v34 }
 0xcb9   :  { %v2120_v1 = vsub.f32 %v2097_v39, %v2116_v56  ;;  %v2128_v2 = vsel %vm110_vm0, %v2122_v61, 0.0  ;;  %v2131_v3 = vsel %vm110_vm0, %v2123_v17, 0.0 }
 0xcba   :  { %2129 = vadd.xlane.f32.xlu0 %v2128_v2  ;;  %2132 = vadd.xlane.f32.xlu1 %v2131_v3 }
 0xcbb   :  { %v2124_v6 = vmul.f32 %v2120_v1, %v2120_v1  ;;  %5463 = vmatpush3.bf16.msra.mxu1 %v5791_v34 }
 0xcbc   :  { %5464 = vmatprep.subr.bf16.mxu1 %v5792_v35 }
 0xcbd   :  { %v2134_v8 = vsel %vm110_vm0, %v2124_v6, 0.0 }
 0xcbe   :  { %2135 = vadd.xlane.f32.xlu0 %v2134_v8 }
 0xcbf   :  { %5465 = vmatpush3.bf16.msra.mxu1 %v5792_v35 }
 0xcc0   :  { %5484 = vmatprep.subr.bf16.mxu1 %v6060_v9 }
 0xd3f   :  { %v2127_v15 = vpop.xlane.xlu1 %2126 }
 0xd40   :  { %v2137_v16 = vmul.f32 0.03125, %v2127_v15 }
 0xd42   :  { %v2141_v18 = vadd.f32 1e-12, %v2137_v16 }
 0xd43   :  { %v2133_v19 = vpop.xlane.xlu1 %2132  ;;  %v2130_v21 = vpop.xlane.xlu0 %2129 }
 0xd44   :  { %5867 = vrsqrt.f32 %v2141_v18  ;;  %v2139_v14 = vmul.f32 0.03125, %v2133_v19  ;;  %v2138_v20 = vmul.f32 0.03125, %v2130_v21 }
 0xd46   :  { %v2143_v22 = vadd.f32 1e-12, %v2139_v14  ;;  %v2142_v63 = vadd.f32 1e-12, %v2138_v20 }
 0xd47   :  { %v2136_v59 = vpop.xlane.xlu0 %2135 }
 0xd48   :  { %5869 = vrsqrt.f32 %v2143_v22  ;;  %v2140_v62 = vmul.f32 0.03125, %v2136_v59 }
 0xd49   :  { %5871 = vrsqrt.f32 %v2142_v63 }
 0xd4a   :  { %v2144_v60 = vadd.f32 1e-12, %v2140_v62 }
 0xd4c   :  { %5873 = vrsqrt.f32 %v2144_v60 }
 0xd51   :  { %v5868_v0 = vpop.eup %5867 }
 0xd52   :  { %v2149_v7 = vmul.f32 %v5868_v0, %v2117_v31 }
 0xd54   :  { %v2159_v23 = vmul.f32 %v4978_v12, %v2149_v7 }
 0xd55   :  { %v5870_v13 = vpop.eup %5869 }
 0xd56   :  { %v5872_v50 = vpop.eup %5871  ;;  %v2151_v51 = vmul.f32 %v5870_v13, %v2119_v42  ;;  %v6635_v24 = vadd.f32 %v4979_v55, %v2159_v23 }
 0xd57   :  { %v2150_v52 = vmul.f32 %v5872_v50, %v2118_v53 }
 0xd58   :  { %v2161_v58 = vmul.f32 %v4978_v12, %v2151_v51 }
 0xd59   :  { %v5874_v5 = vpop.eup %5873  ;;  %v2160_v57 = vmul.f32 %v4978_v12, %v2150_v52 }
 0xd5a   :  { %v2152_v4 = vmul.f32 %v5874_v5, %v2120_v1  ;;  %v6641_v28 = vadd.f32 %v4979_v55, %v2161_v58  ;;  %v4985_v5 = vld [vmem:[%s7209_s12] ss:$0 sm:$0xff] }
 0xd5b   :  { %v6637_v25 = vadd.f32 %v4979_v55, %v2160_v57 }
 0xd5c   :  { %v2162_v26 = vmul.f32 %v4978_v12, %v2152_v4 }
 0xd5d   :  { %v2173_v27 = vpack.c.bf16 %v6637_v25, %v6635_v24 }
 0xd5e   :  { %v6643_v29 = vadd.f32 %v4979_v55, %v2162_v26 }
 0xd5f   :  { %5454 = vmatprep.mubr.msk.bf16.mxu0 %vm110_vm0, %v2173_v27 }
 0xd60   :  { %v2174_v30 = vpack.c.bf16 %v6643_v29, %v6641_v28 }
 0xd62   :  { %5455 = vmatmul.mubr.msk.bf16.vlgmr.msra.gmra.mxu0 %vm110_vm0, %v2174_v30 }
 0xe22   :  { %v5456_v37 = vpop.f32.mrf.mxu0 }
 0xe23   :  { %v2247_v38 = vadd.f32 %v5456_v37, %v4980_v36 }
 0xe24   :  { %v2238_v39 = vpop.f32.mrf.mxu0 }
 0xe25   :  { %v2255_v40 = vmul.f32 %v2247_v38, %v2247_v38  ;;  %v2239_v41 = vadd.f32 %v4980_v36, %v2238_v39 }
 0xe26   :  { %v5457_v43 = vpop.f32.mrf.mxu0 }
 0xe27   :  { %v2259_v31 = vmul.f32 %v2255_v40, %v2247_v38  ;;  %v2253_v44 = vmul.f32 %v2239_v41, %v2239_v41  ;;  %v2250_v45 = vadd.f32 %v5457_v43, %v4980_v36 }
 0xe28   :  { %v2241_v46 = vpop.f32.mrf.mxu0 }
 0xe29   :  { %v2263_v47 = vmul.f32 0.044715, %v2259_v31  ;;  %v2257_v48 = vmul.f32 %v2253_v44, %v2239_v41  ;;  %v2256_v53 = vmul.f32 %v2250_v45, %v2250_v45  ;;  %v2242_v42 = vadd.f32 %v4980_v36, %v2241_v46 }
 0xe2b   :  { %v2267_v49 = vadd.f32 %v2263_v47, %v2247_v38  ;;  %v2261_v54 = vmul.f32 0.044715, %v2257_v48  ;;  %v2260_v56 = vmul.f32 %v2256_v53, %v2250_v45  ;;  %v2254_v61 = vmul.f32 %v2242_v42, %v2242_v42 }
 0xe2d   :  { %v2271_v17 = vmul.f32 0.7978846, %v2267_v49  ;;  %v2265_v1 = vadd.f32 %v2261_v54, %v2239_v41  ;;  %v2264_v2 = vmul.f32 0.044715, %v2260_v56  ;;  %v2258_v3 = vmul.f32 %v2254_v61, %v2242_v42 }
 0xe2f   :  { %v2269_v6 = vmul.f32 0.7978846, %v2265_v1  ;;  %v2268_v8 = vadd.f32 %v2264_v2, %v2250_v45  ;;  %v2262_v10 = vmul.f32 0.044715, %v2258_v3  ;;  %5875 = vtanh.f32 %v2271_v17  ;;  %v5793_v2 = vld [vmem:[%s7200_s3 + $0x18] sm:$0xff]   ;;  %v5794_v3 = vld [vmem:[%s7200_s3 + $0x10] sm:$0xff]  }
 0xe30   :  { %5470 = vmatprep.subr.bf16.mxu0 %v5793_v2 }
 0xe31   :  { %5877 = vtanh.f32 %v2269_v6  ;;  %v2272_v11 = vmul.f32 0.7978846, %v2268_v8  ;;  %v2266_v15 = vadd.f32 %v2262_v10, %v2242_v42  ;;  %5471 = vmatpush3.bf16.msra.mxu0 %v5793_v2 }
 0xe32   :  { %5472 = vmatprep.subr.bf16.mxu0 %v5794_v3 }
 0xe33   :  { %5879 = vtanh.f32 %v2272_v11  ;;  %v2270_v16 = vmul.f32 0.7978846, %v2266_v15 }
 0xe35   :  { %5881 = vtanh.f32 %v2270_v16  ;;  %5473 = vmatpush3.bf16.msra.mxu0 %v5794_v3 }
 0xe36   :  { %5478 = vmatprep.subr.bf16.mxu0 %v6060_v9 }
 0xe3c   :  { %v5876_v18 = vpop.eup %5875 }
 0xe3d   :  { %v2279_v20 = vadd.f32 1.0, %v5876_v18 }
 0xe3e   :  { %v5878_v19 = vpop.eup %5877 }
 0xe3f   :  { %v2277_v21 = vadd.f32 1.0, %v5878_v19  ;;  %v2283_v0 = vmul.f32 0.5, %v2279_v20 }
 0xe40   :  { %v5880_v14 = vpop.eup %5879 }
 0xe41   :  { %v2280_v22 = vadd.f32 1.0, %v5880_v14  ;;  %v2281_v59 = vmul.f32 0.5, %v2277_v21  ;;  %v2287_v51 = vmul.f32 %v2283_v0, %v2247_v38 }
 0xe42   :  { %v5882_v63 = vpop.eup %5881 }
 0xe43   :  { %v2284_v62 = vmul.f32 0.5, %v2280_v22  ;;  %v2278_v60 = vadd.f32 1.0, %v5882_v63  ;;  %v2285_v13 = vmul.f32 %v2281_v59, %v2239_v41 }
 0xe45   :  { %v2282_v7 = vmul.f32 0.5, %v2278_v60  ;;  %v2288_v12 = vmul.f32 %v2284_v62, %v2250_v45  ;;  %v4992_v62 = vld [vmem:[%s7210_s13] ss:$0 sm:$0xff] }
 0xe47   :  { %v2286_v50 = vmul.f32 %v2282_v7, %v2242_v42  ;;  %v2290_v23 = vpack.c.bf16 %v2288_v12, %v2287_v51 }
 0xe49   :  { %v2289_v52 = vpack.c.bf16 %v2286_v50, %v2285_v13  ;;  %v4993_v50 = vld [vmem:[%s7211_s14] ss:$0 sm:$0xff] }
 0xe4b   :  { %5466 = vmatprep.mubr.msk.bf16.mxu1 %vm2330_vm6, %v2289_v52 }
 0xe4c   :  { %5467 = vmatmul.mubr.msk.bf16.vlgmr.msra.gmra.mxu1 %vm2330_vm6, %v2290_v23 }
 0xe4d   :  { %5486 = vmatprep.mubr.msk.bf16.mxu1 %vm6061_vm1, %v6060_v9 }
 0xf0c   :  { %v5468_v55 = vpop.f32.mrf.mxu1 }
 0xf0d   :  { %v2380_v4 = vadd.f32 %v5468_v55, %v4985_v5 }
 0xf0e   :  { %v2371_v57 = vpop.f32.mrf.mxu1 }
 0xf0f   :  { %v2372_v58 = vadd.f32 %v4985_v5, %v2371_v57  ;;  %v2388_v35 = vadd.f32 %v2380_v4, %v6641_v28 }
 0xf10   :  { %v5469_v26 = vpop.f32.mrf.mxu1 }
 0xf11   :  { %v2386_v27 = vadd.f32 %v2372_v58, %v6635_v24  ;;  %v2383_v32 = vadd.f32 %v5469_v26, %v4985_v5  ;;  %v2398_v38 = vsel %vm110_vm0, %v2388_v35, 0.0 }
 0xf12   :  { %v2374_v30 = vpop.f32.mrf.mxu1 }
 0xf13   :  { %v2375_v33 = vadd.f32 %v4985_v5, %v2374_v30  ;;  %v2392_v34 = vsel %vm110_vm0, %v2386_v27, 0.0  ;;  %v2389_v39 = vadd.f32 %v2383_v32, %v6643_v29 }
 0xf14   :  { %2393 = vadd.xlane.f32.xlu1 %v2392_v34 }
 0xf15   :  { %v2387_v36 = vadd.f32 %v2375_v33, %v6637_v25  ;;  %v2401_v24 = vsel %vm110_vm0, %v2389_v39, 0.0  ;;  %v4999_v33 = vld [vmem:[%s7201_s4 + $0x1] ss:$0 sm:$0xff] }
 0xf17   :  { %v2395_v37 = vsel %vm110_vm0, %v2387_v36, 0.0 }
 0xf18   :  { %2396 = vadd.xlane.f32.xlu0 %v2395_v37  ;;  %2399 = vadd.xlane.f32.xlu1 %v2398_v38 }
 0xf1c   :  { %2402 = vadd.xlane.f32.xlu0 %v2401_v24 }
 0xf9d   :  { %v2394_v40 = vpop.xlane.xlu1 %2393 }
 0xf9e   :  { %v2404_v41 = vmul.f32 0.03125, %v2394_v40 }
 0xfa0   :  { %v2408_v43 = vsub.f32 %v2386_v27, %v2404_v41 }
 0xfa1   :  { %v2397_v31 = vpop.xlane.xlu0 %2396  ;;  %v2400_v44 = vpop.xlane.xlu1 %2399 }
 0xfa2   :  { %v2405_v28 = vmul.f32 0.03125, %v2397_v31  ;;  %v2406_v45 = vmul.f32 0.03125, %v2400_v44  ;;  %v2412_v46 = vmul.f32 %v2408_v43, %v2408_v43 }
 0xfa4   :  { %v2409_v25 = vsub.f32 %v2387_v36, %v2405_v28  ;;  %v2410_v47 = vsub.f32 %v2388_v35, %v2406_v45  ;;  %v2416_v48 = vsel %vm110_vm0, %v2412_v46, 0.0 }
 0xfa5   :  { %v2403_v53 = vpop.xlane.xlu0 %2402  ;;  %2417 = vadd.xlane.f32.xlu1 %v2416_v48 }
 0xfa6   :  { %v2407_v29 = vmul.f32 0.03125, %v2403_v53  ;;  %v2413_v42 = vmul.f32 %v2409_v25, %v2409_v25  ;;  %v2414_v49 = vmul.f32 %v2410_v47, %v2410_v47 }
 0xfa8   :  { %v2411_v54 = vsub.f32 %v2389_v39, %v2407_v29  ;;  %v2419_v56 = vsel %vm110_vm0, %v2413_v42, 0.0  ;;  %v2422_v61 = vsel %vm110_vm0, %v2414_v49, 0.0  ;;  %v6759_v42 = vld [vmem:[%s7234_s2] ss:$0 sm:$0xff] }
 0xfa9   :  { %2420 = vadd.xlane.f32.xlu0 %v2419_v56  ;;  %2423 = vadd.xlane.f32.xlu1 %v2422_v61 }
 0xfaa   :  { %v2415_v17 = vmul.f32 %v2411_v54, %v2411_v54 }
 0xfac   :  { %v2425_v1 = vsel %vm110_vm0, %v2415_v17, 0.0 }
 0xfad   :  { %2426 = vadd.xlane.f32.xlu0 %v2425_v1  ;;  %v6766_v1 = vld [vmem:[%s7234_s2 + $0x1] ss:$0 sm:$0xff] }
0x102e   :  { %v2418_v6 = vpop.xlane.xlu1 %2417 }
0x102f   :  { %v2428_v8 = vmul.f32 0.03125, %v2418_v6 }
0x1031   :  { %v2432_v10 = vadd.f32 1e-12, %v2428_v8 }
0x1032   :  { %v2421_v11 = vpop.xlane.xlu0 %2420  ;;  %v2424_v15 = vpop.xlane.xlu1 %2423 }
0x1033   :  { %5883 = vrsqrt.f32 %v2432_v10  ;;  %v2429_v16 = vmul.f32 0.03125, %v2421_v11  ;;  %v2430_v18 = vmul.f32 0.03125, %v2424_v15  ;;  %v6773_v15 = vld [vmem:[%s7234_s2 + $0x2] ss:$0 sm:$0xff] }
0x1035   :  { %v2433_v19 = vadd.f32 1e-12, %v2429_v16  ;;  %v2434_v21 = vadd.f32 1e-12, %v2430_v18 }
0x1036   :  { %v2427_v14 = vpop.xlane.xlu0 %2426 }
0x1037   :  { %5885 = vrsqrt.f32 %v2433_v19  ;;  %v2431_v20 = vmul.f32 0.03125, %v2427_v14 }
0x1038   :  { %5887 = vrsqrt.f32 %v2434_v21 }
0x1039   :  { %v2435_v22 = vadd.f32 1e-12, %v2431_v20 }
0x103b   :  { %5889 = vrsqrt.f32 %v2435_v22  ;;  %v6780_v22 = vld [vmem:[%s7234_s2 + $0x3] ss:$0 sm:$0xff]  ;;  %s7236_s2 = smov 104  }
0x1040   :  { %v5884_v63 = vpop.eup %5883 }
0x1041   :  { %v2440_v59 = vmul.f32 %v5884_v63, %v2408_v43 }
0x1043   :  { %v2450_v12 = vmul.f32 %v4992_v62, %v2440_v59 }
0x1044   :  { %v5886_v60 = vpop.eup %5885 }
0x1045   :  { %v5888_v0 = vpop.eup %5887  ;;  %v2441_v7 = vmul.f32 %v5886_v60, %v2409_v25  ;;  %v6697_v55 = vadd.f32 %v4993_v50, %v2450_v12 }
0x1046   :  { %v2442_v13 = vmul.f32 %v5888_v0, %v2410_v47 }
0x1047   :  { %v2451_v51 = vmul.f32 %v4992_v62, %v2441_v7 }
0x1048   :  { %v5890_v52 = vpop.eup %5889  ;;  %v2452_v57 = vmul.f32 %v4992_v62, %v2442_v13 }
0x1049   :  { %v2443_v23 = vmul.f32 %v5890_v52, %v2411_v54  ;;  %v6699_v5 = vadd.f32 %v4993_v50, %v2451_v51 }
0x104a   :  { %v6704_v26 = vadd.f32 %v4993_v50, %v2452_v57 }
0x104b   :  { %v2464_v4 = vpack.c.bf16 %v6699_v5, %v6697_v55  ;;  %v2453_v58 = vmul.f32 %v4992_v62, %v2443_v23 }
0x104d   :  { %5474 = vmatprep.mubr.msk.bf16.mxu0 %vm110_vm0, %v2464_v4  ;;  %v6706_v27 = vadd.f32 %v4993_v50, %v2453_v58 }
0x104f   :  { %v2465_v30 = vpack.c.bf16 %v6706_v27, %v6704_v26 }
0x1051   :  { %5475 = vmatmul.mubr.msk.bf16.vlgmr.msra.gmra.mxu0 %vm110_vm0, %v2465_v30 }
0x1052   :  { %5480 = vmatprep.mubr.msk.bf16.mxu0 %vm6061_vm1, %v6060_v9 }
0x1111   :  { %v5476_v32 = vpop.f32.mrf.mxu0 }
0x1112   :  { %v2540_v37 = vadd.f32 %v5476_v32, %v4999_v33 }
0x1113   :  { %v2531_v34 = vpop.f32.mrf.mxu0 }
0x1114   :  { %v2532_v35 = vadd.f32 %v4999_v33, %v2531_v34  ;;  %v6720_v40 = vpack.c.bf16 %v2540_v37, %v2540_v37 }
0x1115   :  { %v5477_v36 = vpop.f32.mrf.mxu0 }
0x1116   :  { %v6716_v38 = vpack.c.bf16 %v2532_v35, %v2532_v35  ;;  %v2543_v41 = vadd.f32 %v5477_v36, %v4999_v33 }
0x1117   :  { %v2534_v39 = vpop.f32.mrf.mxu0 }
0x1118   :  { %v2535_v24 = vadd.f32 %v4999_v33, %v2534_v39  ;;  %2551 = vrot.lane.b32.xlu1 %v6716_v38, %s6062_s16  ;;  %v6728_v31 = vpack.c.bf16 %v2543_v41, %v2543_v41 }
0x111a   :  { %v6722_v43 = vpack.c.bf16 %v2535_v24, %v2535_v24 }
0x111c   :  { %2600 = vrot.lane.b32.xlu0 %v6722_v43, %s6062_s16  ;;  %2649 = vrot.lane.b32.xlu1 %v6720_v40, %s6062_s16 }
0x1120   :  { %2698 = vrot.lane.b32.xlu1 %v6728_v31, %s6062_s16 }
0x118a   :  { %v2552_v44 = vpop.permute.xlu1 %2551 }
0x118b   :  { %v2557_v28 = vsel %vm197_vm2, %v2552_v44, 0 }
0x118c   :  { %5479 = vmatpush3.bf16.xpose.msra.mxu0 %v2557_v28 }
0x118d   :  { %5490 = vmatprep.subr.bf16.mxu0 %v6060_v9 }
0x118e   :  { %v2601_v45 = vpop.permute.xlu0 %2600  ;;  %v2650_v46 = vpop.permute.xlu1 %2649 }
0x118f   :  { %v2606_v25 = vsel %vm197_vm2, %v2601_v45, 0  ;;  %v2655_v47 = vsel %vm197_vm2, %v2650_v46, 0 }
0x1190   :  { %5485 = vmatpush3.bf16.xpose.msra.mxu1 %v2606_v25 }
0x1191   :  { %5496 = vmatprep.subr.bf16.mxu1 %v6060_v9 }
0x1192   :  { %v2699_v48 = vpop.permute.xlu1 %2698 }
0x1193   :  { %5481 = vmatmul.mubr.msk.bf16.vlgmr.msra.gmra.mxu0 %vm197_vm2, %v6716_v38  ;;  %v2704_v53 = vsel %vm197_vm2, %v2699_v48, 0 }
0x1194   :  { %5491 = vmatpush3.bf16.xpose.msra.mxu0 %v2655_v47  ;;  %5492 = vmatprep.mubr.msk.bf16.mxu0 %vm6061_vm1, %v6060_v9 }
0x1195   :  { %5502 = vmatprep.subr.bf16.mxu0 %v6060_v9 }
0x1197   :  { %5487 = vmatmul.mubr.msk.bf16.vlgmr.msra.gmra.mxu1 %vm197_vm2, %v6722_v43 }
0x1198   :  { %5497 = vmatpush3.bf16.xpose.msra.mxu1 %v2704_v53  ;;  %5498 = vmatprep.mubr.msk.bf16.mxu1 %vm6061_vm1, %v6060_v9 }
0x1199   :  { %5508 = vmatprep.subr.bf16.mxu1 %v6060_v9 }
0x119b   :  { %5493 = vmatmul.mubr.msk.bf16.vlgmr.msra.gmra.mxu0 %vm197_vm2, %v6720_v40 }
0x119c   :  { %5504 = vmatprep.mubr.msk.bf16.mxu0 %vm6061_vm1, %v6060_v9 }
0x119f   :  { %5499 = vmatmul.mubr.msk.bf16.vlgmr.msra.gmra.mxu1 %vm197_vm2, %v6728_v31 }
0x11a0   :  { %5510 = vmatprep.mubr.msk.bf16.mxu1 %vm6061_vm1, %v6060_v9 }
0x1253   :  { %v2593_v29 = vpop.f32.mrf.mxu0 }
0x1254   :  { %v2594_v49 = vadd.f32 %v6759_v42, %v2593_v29 }
0x1255   :  { %v5482_v54 = vpop.f32.mrf.mxu0 }
0x1256   :  { %v2746_v56 = vsel %vm197_vm2, %v2594_v49, -inf }
0x1257   :  { %v2642_v61 = vpop.f32.mrf.mxu1  ;;  %2747 = vmax.xlane.f32.xlu0 %v2746_v56  ;;  %v2596_v17 = vpop.f32.mrf.mxu0 }
0x1258   :  { %v2643_v2 = vadd.f32 %v6766_v1, %v2642_v61 }
0x1259   :  { %v5483_v3 = vpop.f32.mrf.mxu0  ;;  %v5488_v6 = vpop.f32.mrf.mxu1 }
0x125a   :  { %v2749_v8 = vsel %vm197_vm2, %v2643_v2, -inf }
0x125b   :  { %v2645_v10 = vpop.f32.mrf.mxu1  ;;  %2750 = vmax.xlane.f32.xlu1 %v2749_v8  ;;  %v2691_v11 = vpop.f32.mrf.mxu0 }
0x125c   :  { %v2692_v16 = vadd.f32 %v6773_v15, %v2691_v11 }
0x125d   :  { %v5489_v18 = vpop.f32.mrf.mxu1  ;;  %v5494_v19 = vpop.f32.mrf.mxu0 }
0x125e   :  { %v2752_v21 = vsel %vm197_vm2, %v2692_v16, -inf }
0x125f   :  { %2753 = vmax.xlane.f32.xlu0 %v2752_v21  ;;  %v2694_v14 = vpop.f32.mrf.mxu0  ;;  %v2740_v20 = vpop.f32.mrf.mxu1 }
0x1260   :  { %v2741_v63 = vadd.f32 %v6780_v22, %v2740_v20 }
0x1261   :  { %v5495_v59 = vpop.f32.mrf.mxu0  ;;  %v5500_v62 = vpop.f32.mrf.mxu1 }
0x1262   :  { %v2755_v60 = vsel %vm197_vm2, %v2741_v63, -inf }
0x1263   :  { %2756 = vmax.xlane.f32.xlu0 %v2755_v60  ;;  %v2743_v0 = vpop.f32.mrf.mxu1 }
0x1265   :  { %v5501_v7 = vpop.f32.mrf.mxu1 }
0x126c   :  { %2794 = vrot.lane.b32.xlu1 %v6716_v38, %s6058_s19 }
0x12e0   :  { %v2748_v12 = vpop.xlane.xlu0 %2747 }
0x12e1   :  { %v2758_v13 = vsub.f32 %v2594_v49, %v2748_v12 }
0x12e3   :  { %v2762_v50 = vmul.f32 1.442695, %v2758_v13 }
0x12e4   :  { %v2751_v51 = vpop.xlane.xlu1 %2750 }
0x12e5   :  { %5891 = vpow2.f32 %v2762_v50  ;;  %v2759_v52 = vsub.f32 %v2643_v2, %v2751_v51 }
0x12e7   :  { %v2764_v23 = vmul.f32 1.442695, %v2759_v52 }
0x12e8   :  { %v2795_v57 = vpop.permute.xlu1 %2794  ;;  %v2754_v34 = vpop.xlane.xlu0 %2753 }
0x12e9   :  { %5893 = vpow2.f32 %v2764_v23  ;;  %v2800_v4 = vsel %vm444_vm3, %v2795_v57, 0  ;;  %v2760_v36 = vsub.f32 %v2692_v16, %v2754_v34 }
0x12ea   :  { %5503 = vmatpush3.bf16.msra.mxu0 %v2800_v4 }
0x12eb   :  { %5514 = vmatprep.subr.bf16.mxu0 %v6060_v9  ;;  %v2766_v39 = vmul.f32 1.442695, %v2760_v36 }
0x12ec   :  { %v2757_v35 = vpop.xlane.xlu0 %2756 }
0x12ed   :  { %v2761_v37 = vsub.f32 %v2741_v63, %v2757_v35  ;;  %5895 = vpow2.f32 %v2766_v39 }
0x12ef   :  { %v2768_v24 = vmul.f32 1.442695, %v2761_v37 }
0x12f1   :  { %5897 = vpow2.f32 %v2768_v24 }
0x12f2   :  { %v5892_v58 = vpop.eup %5891 }
0x12f3   :  { %v2770_v30 = vsel %vm197_vm2, %v5892_v58, 0.0 }
0x12f4   :  { %2771 = vadd.xlane.f32.xlu1 %v2770_v30 }
0x12f6   :  { %v5894_v32 = vpop.eup %5893 }
0x12f7   :  { %v2773_v33 = vsel %vm197_vm2, %v5894_v32, 0.0 }
0x12f8   :  { %2774 = vadd.xlane.f32.xlu0 %v2773_v33 }
0x12fa   :  { %v5896_v41 = vpop.eup %5895 }
0x12fb   :  { %v2776_v28 = vsel %vm197_vm2, %v5896_v41, 0.0 }
0x12fe   :  { %v5898_v44 = vpop.eup %5897 }
0x12ff   :  { %v2779_v45 = vsel %vm197_vm2, %v5898_v44, 0.0 }
0x1305   :  { %2890 = vrot.lane.b32.xlu1 %v6720_v40, %s6058_s19 }
0x1309   :  { %2938 = vrot.lane.b32.xlu1 %v6728_v31, %s6058_s19 }
0x130e   :  { %2842 = vrot.lane.b32.xlu0 %v6722_v43, %s6058_s19  ;;  %s7235_s19 = smov 72  }
0x132d   :  { %2777 = vadd.xlane.f32.xlu1 %v2776_v28  ;;  %2780 = vadd.xlane.f32.xlu0 %v2779_v45 }
0x133e   :  { %3038 = vrot.lane.b32.xlu1 %v6722_v43, %s6063_s29 }
0x1342   :  { %3036 = vrot.lane.b32.xlu1 %v6722_v43, %s6064_s30 }
0x1343   :  { %2988 = vrot.lane.b32.xlu0 %v6716_v38, %s6063_s29 }
0x1346   :  { %3138 = vrot.lane.b32.xlu1 %v6728_v31, %s6063_s29 }
0x1347   :  { %2986 = vrot.lane.b32.xlu0 %v6716_v38, %s6064_s30 }
0x134a   :  { %3136 = vrot.lane.b32.xlu1 %v6728_v31, %s6064_s30 }
0x134b   :  { %3088 = vrot.lane.b32.xlu0 %v6720_v40, %s6063_s29  ;;  %s7237_s29 = smov 40  }
0x134f   :  { %3086 = vrot.lane.b32.xlu0 %v6720_v40, %s6064_s30  ;;  %s7238_s30 = smov 8  }
0x137d   :  { %v2772_v46 = vpop.xlane.xlu1 %2771 }
0x137e   :  { %5899 = vrcp.f32 %v2772_v46 }
0x1381   :  { %v2775_v25 = vpop.xlane.xlu0 %2774  ;;  %v2891_v29 = vpop.permute.xlu1 %2890 }
0x1382   :  { %5901 = vrcp.f32 %v2775_v25  ;;  %v2896_v61 = vsel %vm444_vm3, %v2891_v29, 0 }
0x1385   :  { %v2843_v47 = vpop.permute.xlu0 %2842  ;;  %v2939_v2 = vpop.permute.xlu1 %2938 }
0x1386   :  { %v2848_v48 = vsel %vm444_vm3, %v2843_v47, 0  ;;  %v2944_v6 = vsel %vm444_vm3, %v2939_v2, 0 }
0x1387   :  { %5509 = vmatpush3.bf16.msra.mxu1 %v2848_v48 }
0x1388   :  { %5520 = vmatprep.subr.bf16.mxu1 %v6060_v9 }
0x138b   :  { %v5900_v53 = vpop.eup %5899 }
0x138c   :  { %v2786_v49 = vmul.f32 %v5900_v53, %v5892_v58 }
0x138e   :  { %v2790_v54 = vpack.c.bf16 %v2786_v49, %v2786_v49 }
0x138f   :  { %v5902_v56 = vpop.eup %5901 }
0x1390   :  { %5505 = vmatmul.mubr.msk.bf16.vlgmr.msra.gmra.mxu0 %vm197_vm2, %v2790_v54  ;;  %v2787_v17 = vmul.f32 %v5902_v56, %v5894_v32 }
0x1391   :  { %5515 = vmatpush3.bf16.msra.mxu0 %v2896_v61  ;;  %5516 = vmatprep.mubr.msk.bf16.mxu0 %vm6061_vm1, %v6060_v9 }
0x1392   :  { %v2791_v3 = vpack.c.bf16 %v2787_v17, %v2787_v17  ;;  %5526 = vmatprep.subr.bf16.mxu0 %v6060_v9 }
0x1394   :  { %5511 = vmatmul.mubr.msk.bf16.vlgmr.msra.gmra.mxu1 %vm197_vm2, %v2791_v3 }
0x1395   :  { %5521 = vmatpush3.bf16.msra.mxu1 %v2944_v6  ;;  %5522 = vmatprep.mubr.msk.bf16.mxu1 %vm6061_vm1, %v6060_v9 }
0x1396   :  { %5532 = vmatprep.subr.bf16.mxu1 %v6060_v9 }
0x13b6   :  { %v2781_v8 = vpop.xlane.xlu0 %2780  ;;  %v2778_v10 = vpop.xlane.xlu1 %2777 }
0x13b7   :  { %5903 = vrcp.f32 %v2781_v8 }
0x13b8   :  { %5905 = vrcp.f32 %v2778_v10 }
0x13ba   :  { %v3039_v11 = vpop.permute.xlu1 %3038  ;;  %v2989_v16 = vpop.permute.xlu0 %2988 }
0x13bb   :  { %v3044_v62 = vsel %vm197_vm2, %v3039_v11, 0  ;;  %v2994_v0 = vsel %vm197_vm2, %v2989_v16, 0 }
0x13be   :  { %v3037_v63 = vpop.permute.xlu1 %3036  ;;  %v2987_v60 = vpop.permute.xlu0 %2986 }
0x13c2   :  { %v3139_v7 = vpop.permute.xlu1 %3138  ;;  %v3089_v12 = vpop.permute.xlu0 %3088 }
0x13c3   :  { %v3144_v13 = vsel %vm197_vm2, %v3139_v7, 0  ;;  %v3094_v50 = vsel %vm197_vm2, %v3089_v12, 0 }
0x13c4   :  { %v5904_v18 = vpop.eup %5903 }
0x13c5   :  { %v5906_v19 = vpop.eup %5905  ;;  %v2789_v21 = vmul.f32 %v5904_v18, %v5898_v44 }
0x13c6   :  { %v2788_v14 = vmul.f32 %v5906_v19, %v5896_v41  ;;  %v3137_v51 = vpop.permute.xlu1 %3136  ;;  %v3087_v52 = vpop.permute.xlu0 %3086 }
0x13c7   :  { %v2793_v20 = vpack.c.bf16 %v2789_v21, %v2789_v21 }
0x13c8   :  { %v2792_v59 = vpack.c.bf16 %v2788_v14, %v2788_v14 }
0x13c9   :  { %5523 = vmatmul.mubr.msk.bf16.vlgmr.msra.gmra.mxu1 %vm197_vm2, %v2793_v20 }
0x13ca   :  { %5517 = vmatmul.mubr.msk.bf16.vlgmr.msra.gmra.mxu0 %vm197_vm2, %v2792_v59  ;;  %5533 = vmatpush3.bf16.xpose.msra.mxu1 %v3044_v62 }
0x13cb   :  { %5527 = vmatpush3.bf16.xpose.msra.mxu0 %v2994_v0  ;;  %5528 = vmatprep.mubr.msk.bf16.mxu0 %vm6061_vm1, %v6060_v9 }
0x13cc   :  { %5534 = vmatprep.mubr.msk.bf16.mxu1 %vm6061_vm1, %v6060_v9  ;;  %5538 = vmatprep.subr.bf16.mxu0 %v6060_v9 }
0x13cd   :  { %5544 = vmatprep.subr.bf16.mxu1 %v6060_v9 }
0x13d1   :  { %5535 = vmatmul.mubr.msk.bf16.vlgmr.msra.gmra.mxu1 %vm197_vm2, %v3037_v63 }
0x13d2   :  { %5529 = vmatmul.mubr.msk.bf16.vlgmr.msra.gmra.mxu0 %vm197_vm2, %v2987_v60  ;;  %5545 = vmatpush3.bf16.xpose.msra.mxu1 %v3144_v13 }
0x13d3   :  { %5539 = vmatpush3.bf16.xpose.msra.mxu0 %v3094_v50  ;;  %5540 = vmatprep.mubr.msk.bf16.mxu0 %vm6061_vm1, %v6060_v9 }
0x13d4   :  { %5546 = vmatprep.mubr.msk.bf16.mxu1 %vm6061_vm1, %v6060_v9  ;;  %5550 = vmatprep.subr.bf16.mxu0 %v6060_v9 }
0x13d5   :  { %5556 = vmatprep.subr.bf16.mxu1 %v6060_v9 }
0x13d9   :  { %5547 = vmatmul.mubr.msk.bf16.vlgmr.msra.gmra.mxu1 %vm197_vm2, %v3137_v51 }
0x13da   :  { %5541 = vmatmul.mubr.msk.bf16.vlgmr.msra.gmra.mxu0 %vm197_vm2, %v3087_v52  ;;  %5558 = vmatprep.mubr.msk.bf16.mxu1 %vm6061_vm1, %v6060_v9 }
0x13db   :  { %5552 = vmatprep.mubr.msk.bf16.mxu0 %vm6061_vm1, %v6060_v9 }
0x1450   :  { %v6852_v23 = vpop.f32.mrf.mxu0 }
0x1452   :  { %v5506_v57 = vpop.f32.mrf.mxu0 }
0x1454   :  { %v2839_v4 = vpop.f32.mrf.mxu0  ;;  %v6854_v58 = vpop.f32.mrf.mxu1 }
0x1456   :  { %v5507_v30 = vpop.f32.mrf.mxu0  ;;  %v5512_v32 = vpop.f32.mrf.mxu1 }
0x1458   :  { %v2887_v33 = vpop.f32.mrf.mxu1 }
0x145a   :  { %v5513_v34 = vpop.f32.mrf.mxu1 }
0x1489   :  { %v6856_v35 = vpop.f32.mrf.mxu1 }
0x148a   :  { %v6858_v36 = vpop.f32.mrf.mxu0 }
0x148b   :  { %v5524_v37 = vpop.f32.mrf.mxu1 }
0x148c   :  { %v5518_v39 = vpop.f32.mrf.mxu0 }
0x148d   :  { %v2983_v24 = vpop.f32.mrf.mxu1 }
0x148e   :  { %v2935_v41 = vpop.f32.mrf.mxu0 }
0x148f   :  { %v5525_v44 = vpop.f32.mrf.mxu1 }
0x1490   :  { %v5519_v28 = vpop.f32.mrf.mxu0 }
0x1491   :  { %v3080_v45 = vpop.f32.mrf.mxu1 }
0x1492   :  { %v3030_v46 = vpop.f32.mrf.mxu0  ;;  %v3081_v25 = vadd.f32 %v6766_v1, %v3080_v45 }
0x1493   :  { %v3031_v47 = vadd.f32 %v6759_v42, %v3030_v46  ;;  %v5536_v48 = vpop.f32.mrf.mxu1 }
0x1494   :  { %v5530_v53 = vpop.f32.mrf.mxu0  ;;  %v3189_v29 = vsel %vm197_vm2, %v3081_v25, -inf }
0x1495   :  { %v3186_v49 = vsel %vm197_vm2, %v3031_v47, -inf  ;;  %3190 = vmax.xlane.f32.xlu1 %v3189_v29  ;;  %v3083_v54 = vpop.f32.mrf.mxu1 }
0x1496   :  { %3187 = vmax.xlane.f32.xlu0 %v3186_v49  ;;  %v3033_v56 = vpop.f32.mrf.mxu0 }
0x1497   :  { %v5537_v61 = vpop.f32.mrf.mxu1 }
0x1498   :  { %v5531_v17 = vpop.f32.mrf.mxu0 }
0x1499   :  { %v3180_v2 = vpop.f32.mrf.mxu1 }
0x149a   :  { %v3130_v3 = vpop.f32.mrf.mxu0  ;;  %v3181_v11 = vadd.f32 %v6780_v22, %v3180_v2 }
0x149b   :  { %v3131_v6 = vadd.f32 %v6773_v15, %v3130_v3  ;;  %v5548_v8 = vpop.f32.mrf.mxu1 }
0x149c   :  { %v5542_v10 = vpop.f32.mrf.mxu0  ;;  %v3195_v20 = vsel %vm197_vm2, %v3181_v11, -inf }
0x149d   :  { %v3192_v16 = vsel %vm197_vm2, %v3131_v6, -inf  ;;  %v3183_v18 = vpop.f32.mrf.mxu1 }
0x149e   :  { %3193 = vmax.xlane.f32.xlu0 %v3192_v16  ;;  %v3133_v19 = vpop.f32.mrf.mxu0 }
0x149f   :  { %v5549_v21 = vpop.f32.mrf.mxu1 }
0x14a0   :  { %v5543_v14 = vpop.f32.mrf.mxu0 }
0x14a2   :  { %3196 = vmax.xlane.f32.xlu0 %v3195_v20 }
0x14a6   :  { %3234 = vrot.lane.b32.xlu1 %v6716_v38, %s6065_s0 }
0x151e   :  { %v3191_v63 = vpop.xlane.xlu1 %3190 }
0x151f   :  { %v3188_v59 = vpop.xlane.xlu0 %3187  ;;  %v3199_v62 = vsub.f32 %v3081_v25, %v3191_v63 }
0x1520   :  { %v3198_v60 = vsub.f32 %v3031_v47, %v3188_v59 }
0x1521   :  { %v3204_v0 = vmul.f32 1.442695, %v3199_v62 }
0x1522   :  { %v3202_v7 = vmul.f32 1.442695, %v3198_v60  ;;  %v3235_v12 = vpop.permute.xlu1 %3234 }
0x1523   :  { %5907 = vpow2.f32 %v3204_v0  ;;  %v3240_v13 = vsel %vm444_vm3, %v3235_v12, 0 }
0x1524   :  { %5909 = vpow2.f32 %v3202_v7  ;;  %5551 = vmatpush3.bf16.msra.mxu0 %v3240_v13 }
0x1525   :  { %5562 = vmatprep.subr.bf16.mxu0 %v6060_v9 }
0x1527   :  { %v3194_v4 = vpop.xlane.xlu0 %3193 }
0x1528   :  { %v3200_v34 = vsub.f32 %v3131_v6, %v3194_v4 }
0x152a   :  { %v3206_v37 = vmul.f32 1.442695, %v3200_v34 }
0x152b   :  { %v3197_v30 = vpop.xlane.xlu0 %3196 }
0x152c   :  { %v3201_v32 = vsub.f32 %v3181_v11, %v3197_v30 }
0x152e   :  { %v3208_v33 = vmul.f32 1.442695, %v3201_v32 }
0x1530   :  { %v5908_v50 = vpop.eup %5907  ;;  %5911 = vpow2.f32 %v3208_v33 }
0x1531   :  { %v5910_v51 = vpop.eup %5909  ;;  %v3213_v52 = vsel %vm197_vm2, %v5908_v50, 0.0  ;;  %5913 = vpow2.f32 %v3206_v37 }
0x1532   :  { %v3210_v57 = vsel %vm197_vm2, %v5910_v51, 0.0  ;;  %3214 = vadd.xlane.f32.xlu0 %v3213_v52 }
0x1533   :  { %3211 = vadd.xlane.f32.xlu1 %v3210_v57 }
0x153d   :  { %v5912_v39 = vpop.eup %5911 }
0x153e   :  { %v3219_v24 = vsel %vm197_vm2, %v5912_v39, 0.0  ;;  %v5914_v41 = vpop.eup %5913 }
0x153f   :  { %v3216_v44 = vsel %vm197_vm2, %v5914_v41, 0.0 }
0x1544   :  { %3330 = vrot.lane.b32.xlu1 %v6720_v40, %s6065_s0 }
0x1548   :  { %3378 = vrot.lane.b32.xlu1 %v6728_v31, %s6065_s0  ;;  %3282 = vrot.lane.b32.xlu0 %v6722_v43, %s6065_s0  ;;  %s7239_s0 = smov 16  }
0x1567   :  { %3220 = vadd.xlane.f32.xlu0 %v3219_v24 }
0x156c   :  { %3217 = vadd.xlane.f32.xlu1 %v3216_v44 }
0x157d   :  { %3478 = vrot.lane.b32.xlu1 %v6722_v43, %s6066_s1  ;;  %3428 = vrot.lane.b32.xlu0 %v6716_v38, %s6066_s1 }
0x1581   :  { %3476 = vrot.lane.b32.xlu1 %v6722_v43, %s6067_s20  ;;  %3426 = vrot.lane.b32.xlu0 %v6716_v38, %s6067_s20 }
0x1585   :  { %3578 = vrot.lane.b32.xlu1 %v6728_v31, %s6066_s1  ;;  %3528 = vrot.lane.b32.xlu0 %v6720_v40, %s6066_s1 }
0x1589   :  { %3576 = vrot.lane.b32.xlu1 %v6728_v31, %s6067_s20  ;;  %3526 = vrot.lane.b32.xlu0 %v6720_v40, %s6067_s20 }
0x15bb   :  { %v3215_v28 = vpop.xlane.xlu0 %3214 }
0x15bc   :  { %5915 = vrcp.f32 %v3215_v28  ;;  %v3212_v45 = vpop.xlane.xlu1 %3211 }
0x15bd   :  { %5917 = vrcp.f32 %v3212_v45 }
0x15bf   :  { %v3283_v46 = vpop.permute.xlu0 %3282 }
0x15c0   :  { %v3288_v25 = vsel %vm444_vm3, %v3283_v46, 0  ;;  %v3331_v47 = vpop.permute.xlu1 %3330 }
0x15c1   :  { %5557 = vmatpush3.bf16.msra.mxu1 %v3288_v25  ;;  %v3336_v2 = vsel %vm444_vm3, %v3331_v47, 0 }
0x15c2   :  { %5568 = vmatprep.subr.bf16.mxu1 %v6060_v9 }
0x15c4   :  { %v3379_v49 = vpop.permute.xlu1 %3378 }
0x15c5   :  { %v3384_v17 = vsel %vm444_vm3, %v3379_v49, 0 }
0x15c9   :  { %v5916_v48 = vpop.eup %5915 }
0x15ca   :  { %v5918_v53 = vpop.eup %5917  ;;  %v3227_v29 = vmul.f32 %v5916_v48, %v5908_v50 }
0x15cb   :  { %v3226_v54 = vmul.f32 %v5918_v53, %v5910_v51 }
0x15cc   :  { %v3231_v56 = vpack.c.bf16 %v3227_v29, %v3227_v29 }
0x15cd   :  { %v3230_v61 = vpack.c.bf16 %v3226_v54, %v3226_v54 }
0x15ce   :  { %5559 = vmatmul.mubr.msk.bf16.vlgmr.msra.gmra.mxu1 %vm197_vm2, %v3231_v56 }
0x15cf   :  { %5553 = vmatmul.mubr.msk.bf16.vlgmr.msra.gmra.mxu0 %vm197_vm2, %v3230_v61  ;;  %5569 = vmatpush3.bf16.msra.mxu1 %v3384_v17 }
0x15d0   :  { %5563 = vmatpush3.bf16.msra.mxu0 %v3336_v2  ;;  %5570 = vmatprep.mubr.msk.bf16.mxu1 %vm6061_vm1, %v6060_v9 }
0x15d1   :  { %5580 = vmatprep.subr.bf16.mxu1 %v6060_v9  ;;  %5564 = vmatprep.mubr.msk.bf16.mxu0 %vm6061_vm1, %v6060_v9 }
0x15d2   :  { %5574 = vmatprep.subr.bf16.mxu0 %v6060_v9 }
0x15f0   :  { %v3221_v3 = vpop.xlane.xlu0 %3220 }
0x15f1   :  { %5919 = vrcp.f32 %v3221_v3 }
0x15f4   :  { %v3429_v16 = vpop.permute.xlu0 %3428 }
0x15f5   :  { %v3218_v6 = vpop.xlane.xlu1 %3217  ;;  %v3434_v62 = vsel %vm197_vm2, %v3429_v16, 0 }
0x15f6   :  { %5921 = vrcp.f32 %v3218_v6 }
0x15f8   :  { %v3427_v59 = vpop.permute.xlu0 %3426 }
0x15f9   :  { %v3479_v8 = vpop.permute.xlu1 %3478 }
0x15fa   :  { %v3484_v14 = vsel %vm197_vm2, %v3479_v8, 0 }
0x15fc   :  { %v3529_v7 = vpop.permute.xlu0 %3528 }
0x15fd   :  { %v3477_v19 = vpop.permute.xlu1 %3476  ;;  %v3534_v12 = vsel %vm197_vm2, %v3529_v7, 0 }
0x15fe   :  { %v5920_v10 = vpop.eup %5919 }
0x15ff   :  { %v3229_v11 = vmul.f32 %v5920_v10, %v5912_v39 }
0x1600   :  { %v3527_v50 = vpop.permute.xlu0 %3526 }
0x1601   :  { %v3233_v18 = vpack.c.bf16 %v3229_v11, %v3229_v11  ;;  %v3579_v60 = vpop.permute.xlu1 %3578 }
0x1602   :  { %v3584_v0 = vsel %vm197_vm2, %v3579_v60, 0 }
0x1603   :  { %v5922_v21 = vpop.eup %5921  ;;  %5571 = vmatmul.mubr.msk.bf16.vlgmr.msra.gmra.mxu1 %vm197_vm2, %v3233_v18 }
0x1604   :  { %5581 = vmatpush3.bf16.xpose.msra.mxu1 %v3484_v14  ;;  %v3228_v20 = vmul.f32 %v5922_v21, %v5914_v41  ;;  %5582 = vmatprep.mubr.msk.bf16.mxu1 %vm6061_vm1, %v6060_v9 }
0x1605   :  { %5592 = vmatprep.subr.bf16.mxu1 %v6060_v9  ;;  %v3577_v13 = vpop.permute.xlu1 %3576 }
0x1606   :  { %v3232_v63 = vpack.c.bf16 %v3228_v20, %v3228_v20 }
0x1608   :  { %5565 = vmatmul.mubr.msk.bf16.vlgmr.msra.gmra.mxu0 %vm197_vm2, %v3232_v63 }
0x1609   :  { %5575 = vmatpush3.bf16.xpose.msra.mxu0 %v3434_v62  ;;  %5576 = vmatprep.mubr.msk.bf16.mxu0 %vm6061_vm1, %v6060_v9 }
0x160a   :  { %5586 = vmatprep.subr.bf16.mxu0 %v6060_v9 }
0x160b   :  { %5583 = vmatmul.mubr.msk.bf16.vlgmr.msra.gmra.mxu1 %vm197_vm2, %v3477_v19 }
0x160c   :  { %5593 = vmatpush3.bf16.xpose.msra.mxu1 %v3584_v0  ;;  %5594 = vmatprep.mubr.msk.bf16.mxu1 %vm6061_vm1, %v6060_v9 }
0x160d   :  { %5604 = vmatprep.subr.bf16.mxu1 %v6060_v9 }
0x1610   :  { %5577 = vmatmul.mubr.msk.bf16.vlgmr.msra.gmra.mxu0 %vm197_vm2, %v3427_v59 }
0x1611   :  { %5587 = vmatpush3.bf16.xpose.msra.mxu0 %v3534_v12  ;;  %5588 = vmatprep.mubr.msk.bf16.mxu0 %vm6061_vm1, %v6060_v9 }
0x1612   :  { %5598 = vmatprep.subr.bf16.mxu0 %v6060_v9 }
0x1613   :  { %5595 = vmatmul.mubr.msk.bf16.vlgmr.msra.gmra.mxu1 %vm197_vm2, %v3577_v13 }
0x1614   :  { %5606 = vmatprep.mubr.msk.bf16.mxu1 %vm6061_vm1, %v6060_v9 }
0x1618   :  { %5589 = vmatmul.mubr.msk.bf16.vlgmr.msra.gmra.mxu0 %vm197_vm2, %v3527_v50 }
0x1619   :  { %5600 = vmatprep.mubr.msk.bf16.mxu0 %vm6061_vm1, %v6060_v9 }
0x168e   :  { %v6936_v51 = vpop.f32.mrf.mxu1 }
0x168f   :  { %v6938_v52 = vpop.f32.mrf.mxu0 }
0x1690   :  { %v5751_v57 = vpack.i.bf16 %v6936_v51, %v6938_v52  ;;  %v5560_v4 = vpop.f32.mrf.mxu1 }
0x1691   :  { %v5554_v30 = vpop.f32.mrf.mxu0 }
0x1692   :  { %v3327_v32 = vpop.f32.mrf.mxu1 }
0x1693   :  { %v3279_v33 = vpop.f32.mrf.mxu0 }
0x1694   :  { %v5561_v34 = vpop.f32.mrf.mxu1 }
0x1695   :  { %v5555_v37 = vpop.f32.mrf.mxu0 }
0x16c3   :  { %v6942_v39 = vpop.f32.mrf.mxu1 }
0x16c5   :  { %v5572_v24 = vpop.f32.mrf.mxu1 }
0x16c7   :  { %v3423_v41 = vpop.f32.mrf.mxu1 }
0x16c8   :  { %v6944_v44 = vpop.f32.mrf.mxu0 }
0x16c9   :  { %v5756_v28 = vpack.i.bf16 %v6942_v39, %v6944_v44  ;;  %v5573_v45 = vpop.f32.mrf.mxu1 }
0x16ca   :  { %v5566_v46 = vpop.f32.mrf.mxu0 }
0x16cb   :  { %v3520_v25 = vpop.f32.mrf.mxu1 }
0x16cc   :  { %v3375_v47 = vpop.f32.mrf.mxu0  ;;  %v3521_v48 = vadd.f32 %v6766_v1, %v3520_v25 }
0x16cd   :  { %v5584_v53 = vpop.f32.mrf.mxu1 }
0x16ce   :  { %v5567_v29 = vpop.f32.mrf.mxu0  ;;  %v3629_v49 = vsel %vm197_vm2, %v3521_v48, -inf }
0x16cf   :  { %3630 = vmax.xlane.f32.xlu1 %v3629_v49  ;;  %v3523_v54 = vpop.f32.mrf.mxu1 }
0x16d0   :  { %v3470_v56 = vpop.f32.mrf.mxu0 }
0x16d1   :  { %v3471_v61 = vadd.f32 %v6759_v42, %v3470_v56  ;;  %v5585_v17 = vpop.f32.mrf.mxu1 }
0x16d2   :  { %v5578_v2 = vpop.f32.mrf.mxu0 }
0x16d3   :  { %v3626_v3 = vsel %vm197_vm2, %v3471_v61, -inf  ;;  %v3620_v6 = vpop.f32.mrf.mxu1 }
0x16d4   :  { %3627 = vmax.xlane.f32.xlu0 %v3626_v3  ;;  %v3473_v8 = vpop.f32.mrf.mxu0  ;;  %v3621_v20 = vadd.f32 %v6780_v22, %v3620_v6 }
0x16d5   :  { %v5596_v10 = vpop.f32.mrf.mxu1 }
0x16d6   :  { %v5579_v11 = vpop.f32.mrf.mxu0  ;;  %v3635_v60 = vsel %vm197_vm2, %v3621_v20, -inf }
0x16d7   :  { %v3623_v16 = vpop.f32.mrf.mxu1 }
0x16d8   :  { %v3570_v18 = vpop.f32.mrf.mxu0 }
0x16d9   :  { %v3571_v19 = vadd.f32 %v6773_v15, %v3570_v18  ;;  %v5597_v21 = vpop.f32.mrf.mxu1 }
0x16da   :  { %v5590_v14 = vpop.f32.mrf.mxu0 }
0x16db   :  { %v3632_v63 = vsel %vm197_vm2, %v3571_v19, -inf }
0x16dc   :  { %3633 = vmax.xlane.f32.xlu0 %v3632_v63  ;;  %v3573_v59 = vpop.f32.mrf.mxu0 }
0x16de   :  { %v5591_v62 = vpop.f32.mrf.mxu0 }
0x16e0   :  { %3636 = vmax.xlane.f32.xlu0 %v3635_v60  ;;  %3674 = vrot.lane.b32.xlu1 %v6716_v38, %s6068_s21 }
0x1758   :  { %v3631_v0 = vpop.xlane.xlu1 %3630 }
0x1759   :  { %v3639_v7 = vsub.f32 %v3521_v48, %v3631_v0 }
0x175b   :  { %v3644_v12 = vmul.f32 1.442695, %v3639_v7 }
0x175c   :  { %v3675_v13 = vpop.permute.xlu1 %3674 }
0x175d   :  { %5923 = vpow2.f32 %v3644_v12  ;;  %v3628_v50 = vpop.xlane.xlu0 %3627  ;;  %v3680_v4 = vsel %vm444_vm3, %v3675_v13, 0 }
0x175e   :  { %v3638_v30 = vsub.f32 %v3471_v61, %v3628_v50  ;;  %5599 = vmatpush3.bf16.msra.mxu0 %v3680_v4 }
0x175f   :  { %5610 = vmatprep.subr.bf16.mxu0 %v6060_v9 }
0x1760   :  { %v3642_v32 = vmul.f32 1.442695, %v3638_v30 }
0x1762   :  { %5925 = vpow2.f32 %v3642_v32 }
0x1765   :  { %v3634_v41 = vpop.xlane.xlu0 %3633 }
0x1766   :  { %v3640_v47 = vsub.f32 %v3571_v19, %v3634_v41 }
0x1768   :  { %v3646_v48 = vmul.f32 1.442695, %v3640_v47 }
0x1769   :  { %v3637_v45 = vpop.xlane.xlu0 %3636 }
0x176a   :  { %v5924_v33 = vpop.eup %5923  ;;  %v3641_v46 = vsub.f32 %v3621_v20, %v3637_v45 }
0x176b   :  { %v3653_v34 = vsel %vm197_vm2, %v5924_v33, 0.0 }
0x176c   :  { %3654 = vadd.xlane.f32.xlu0 %v3653_v34  ;;  %v3648_v25 = vmul.f32 1.442695, %v3641_v46 }
0x176e   :  { %5927 = vpow2.f32 %v3648_v25 }
0x176f   :  { %v5926_v37 = vpop.eup %5925  ;;  %5929 = vpow2.f32 %v3646_v48 }
0x1770   :  { %v3650_v24 = vsel %vm197_vm2, %v5926_v37, 0.0 }
0x1771   :  { %3651 = vadd.xlane.f32.xlu1 %v3650_v24 }
0x177b   :  { %v5928_v53 = vpop.eup %5927 }
0x177c   :  { %v3659_v29 = vsel %vm197_vm2, %v5928_v53, 0.0  ;;  %v5930_v49 = vpop.eup %5929 }
0x177d   :  { %v3656_v54 = vsel %vm197_vm2, %v5930_v49, 0.0 }
0x1782   :  { %3770 = vrot.lane.b32.xlu1 %v6720_v40, %s6068_s21  ;;  %3722 = vrot.lane.b32.xlu0 %v6722_v43, %s6068_s21 }
0x1786   :  { %3818 = vrot.lane.b32.xlu1 %v6728_v31, %s6068_s21 }
0x17a1   :  { %3660 = vadd.xlane.f32.xlu0 %v3659_v29 }
0x17aa   :  { %3657 = vadd.xlane.f32.xlu1 %v3656_v54 }
0x17b7   :  { %3868 = vrot.lane.b32.xlu0 %v6716_v38, %s7235_s19 }
0x17bb   :  { %3918 = vrot.lane.b32.xlu1 %v6722_v43, %s7235_s19  ;;  %3866 = vrot.lane.b32.xlu0 %v6716_v38, %s7236_s2 }
0x17bf   :  { %3916 = vrot.lane.b32.xlu1 %v6722_v43, %s7236_s2  ;;  %3968 = vrot.lane.b32.xlu0 %v6720_v40, %s7235_s19 }
0x17c3   :  { %4018 = vrot.lane.b32.xlu1 %v6728_v31, %s7235_s19  ;;  %3966 = vrot.lane.b32.xlu0 %v6720_v40, %s7236_s2 }
0x17c7   :  { %4016 = vrot.lane.b32.xlu1 %v6728_v31, %s7236_s2 }
0x17f5   :  { %v3655_v56 = vpop.xlane.xlu0 %3654 }
0x17f6   :  { %5931 = vrcp.f32 %v3655_v56 }
0x17f9   :  { %v3723_v61 = vpop.permute.xlu0 %3722 }
0x17fa   :  { %v3728_v17 = vsel %vm444_vm3, %v3723_v61, 0  ;;  %v3652_v2 = vpop.xlane.xlu1 %3651 }
0x17fb   :  { %5933 = vrcp.f32 %v3652_v2  ;;  %5605 = vmatpush3.bf16.msra.mxu1 %v3728_v17 }
0x17fc   :  { %5616 = vmatprep.subr.bf16.mxu1 %v6060_v9 }
0x17fe   :  { %v3771_v3 = vpop.permute.xlu1 %3770 }
0x17ff   :  { %v3776_v14 = vsel %vm444_vm3, %v3771_v3, 0 }
0x1802   :  { %v3819_v10 = vpop.permute.xlu1 %3818 }
0x1803   :  { %v5932_v6 = vpop.eup %5931  ;;  %v3824_v18 = vsel %vm444_vm3, %v3819_v10, 0 }
0x1804   :  { %v3667_v8 = vmul.f32 %v5932_v6, %v5924_v33 }
0x1806   :  { %v3671_v11 = vpack.c.bf16 %v3667_v8, %v3667_v8 }
0x1808   :  { %v5934_v16 = vpop.eup %5933  ;;  %5607 = vmatmul.mubr.msk.bf16.vlgmr.msra.gmra.mxu1 %vm197_vm2, %v3671_v11 }
0x1809   :  { %v3666_v19 = vmul.f32 %v5934_v16, %v5926_v37  ;;  %5617 = vmatpush3.bf16.msra.mxu1 %v3824_v18  ;;  %5618 = vmatprep.mubr.msk.bf16.mxu1 %vm6061_vm1, %v6060_v9 }
0x180a   :  { %5628 = vmatprep.subr.bf16.mxu1 %v6060_v9 }
0x180b   :  { %v3670_v21 = vpack.c.bf16 %v3666_v19, %v3666_v19 }
0x180d   :  { %5601 = vmatmul.mubr.msk.bf16.vlgmr.msra.gmra.mxu0 %vm197_vm2, %v3670_v21 }
0x180e   :  { %5611 = vmatpush3.bf16.msra.mxu0 %v3776_v14  ;;  %5612 = vmatprep.mubr.msk.bf16.mxu0 %vm6061_vm1, %v6060_v9 }
0x180f   :  { %5622 = vmatprep.subr.bf16.mxu0 %v6060_v9 }
0x182a   :  { %v3661_v20 = vpop.xlane.xlu0 %3660 }
0x182b   :  { %5935 = vrcp.f32 %v3661_v20 }
0x182e   :  { %v3869_v13 = vpop.permute.xlu0 %3868 }
0x182f   :  { %v3874_v37 = vsel %vm197_vm2, %v3869_v13, 0 }
0x1832   :  { %v3867_v33 = vpop.permute.xlu0 %3866 }
0x1833   :  { %v3658_v63 = vpop.xlane.xlu1 %3657 }
0x1834   :  { %5937 = vrcp.f32 %v3658_v63 }
0x1836   :  { %v3969_v24 = vpop.permute.xlu0 %3968 }
0x1837   :  { %v3919_v59 = vpop.permute.xlu1 %3918  ;;  %v3974_v45 = vsel %vm197_vm2, %v3969_v24, 0 }
0x1838   :  { %v5936_v62 = vpop.eup %5935  ;;  %v3924_v12 = vsel %vm197_vm2, %v3919_v59, 0 }
0x1839   :  { %v3669_v60 = vmul.f32 %v5936_v62, %v5928_v53 }
0x183a   :  { %v3967_v46 = vpop.permute.xlu0 %3966 }
0x183b   :  { %v3673_v0 = vpack.c.bf16 %v3669_v60, %v3669_v60  ;;  %v3917_v7 = vpop.permute.xlu1 %3916 }
0x183d   :  { %5619 = vmatmul.mubr.msk.bf16.vlgmr.msra.gmra.mxu1 %vm197_vm2, %v3673_v0 }
0x183e   :  { %5629 = vmatpush3.bf16.xpose.msra.mxu1 %v3924_v12  ;;  %5630 = vmatprep.mubr.msk.bf16.mxu1 %vm6061_vm1, %v6060_v9 }
0x183f   :  { %5640 = vmatprep.subr.bf16.mxu1 %v6060_v9  ;;  %v4019_v30 = vpop.permute.xlu1 %4018 }
0x1840   :  { %v4024_v34 = vsel %vm197_vm2, %v4019_v30, 0 }
0x1841   :  { %v5938_v50 = vpop.eup %5937 }
0x1842   :  { %v3668_v4 = vmul.f32 %v5938_v50, %v5930_v49 }
0x1843   :  { %v4017_v41 = vpop.permute.xlu1 %4016 }
0x1844   :  { %v3672_v32 = vpack.c.bf16 %v3668_v4, %v3668_v4 }
0x1845   :  { %5631 = vmatmul.mubr.msk.bf16.vlgmr.msra.gmra.mxu1 %vm197_vm2, %v3917_v7 }
0x1846   :  { %5613 = vmatmul.mubr.msk.bf16.vlgmr.msra.gmra.mxu0 %vm197_vm2, %v3672_v32  ;;  %5641 = vmatpush3.bf16.xpose.msra.mxu1 %v4024_v34 }
0x1847   :  { %5623 = vmatpush3.bf16.xpose.msra.mxu0 %v3874_v37  ;;  %5624 = vmatprep.mubr.msk.bf16.mxu0 %vm6061_vm1, %v6060_v9 }
0x1848   :  { %5634 = vmatprep.subr.bf16.mxu0 %v6060_v9  ;;  %5642 = vmatprep.mubr.msk.bf16.mxu1 %vm6061_vm1, %v6060_v9 }
0x1849   :  { %5652 = vmatprep.subr.bf16.mxu1 %v6060_v9 }
0x184d   :  { %5643 = vmatmul.mubr.msk.bf16.vlgmr.msra.gmra.mxu1 %vm197_vm2, %v4017_v41 }
0x184e   :  { %5625 = vmatmul.mubr.msk.bf16.vlgmr.msra.gmra.mxu0 %vm197_vm2, %v3867_v33  ;;  %5654 = vmatprep.mubr.msk.bf16.mxu1 %vm6061_vm1, %v6060_v9 }
0x184f   :  { %5635 = vmatpush3.bf16.xpose.msra.mxu0 %v3974_v45  ;;  %5636 = vmatprep.mubr.msk.bf16.mxu0 %vm6061_vm1, %v6060_v9 }
0x1850   :  { %5646 = vmatprep.subr.bf16.mxu0 %v6060_v9 }
0x1856   :  { %5637 = vmatmul.mubr.msk.bf16.vlgmr.msra.gmra.mxu0 %vm197_vm2, %v3967_v46 }
0x1857   :  { %5648 = vmatprep.mubr.msk.bf16.mxu0 %vm6061_vm1, %v6060_v9 }
0x18c8   :  { %v7024_v25 = vpop.f32.mrf.mxu1 }
0x18ca   :  { %v5608_v47 = vpop.f32.mrf.mxu1 }
0x18cc   :  { %v3767_v48 = vpop.f32.mrf.mxu1 }
0x18cd   :  { %v7026_v53 = vpop.f32.mrf.mxu0 }
0x18ce   :  { %v5761_v29 = vpack.i.bf16 %v7024_v25, %v7026_v53  ;;  %v5609_v49 = vpop.f32.mrf.mxu1 }
0x18cf   :  { %v5602_v54 = vpop.f32.mrf.mxu0 }
0x18d1   :  { %v3719_v56 = vpop.f32.mrf.mxu0 }
0x18d3   :  { %v5603_v61 = vpop.f32.mrf.mxu0 }
0x18fd   :  { %v7030_v17 = vpop.f32.mrf.mxu1 }
0x18ff   :  { %v5620_v2 = vpop.f32.mrf.mxu1 }
0x1901   :  { %v3863_v3 = vpop.f32.mrf.mxu1 }
0x1903   :  { %v5621_v6 = vpop.f32.mrf.mxu1 }
0x1905   :  { %v3960_v8 = vpop.f32.mrf.mxu1 }
0x1906   :  { %v7032_v10 = vpop.f32.mrf.mxu0  ;;  %v3961_v11 = vadd.f32 %v6766_v1, %v3960_v8 }
0x1907   :  { %v5766_v16 = vpack.i.bf16 %v7030_v17, %v7032_v10  ;;  %v5632_v18 = vpop.f32.mrf.mxu1 }
0x1908   :  { %v5614_v19 = vpop.f32.mrf.mxu0  ;;  %v4069_v21 = vsel %vm197_vm2, %v3961_v11, -inf }
0x1909   :  { %4070 = vmax.xlane.f32.xlu1 %v4069_v21  ;;  %v3963_v14 = vpop.f32.mrf.mxu1 }
0x190a   :  { %v3815_v20 = vpop.f32.mrf.mxu0 }
0x190b   :  { %v5633_v63 = vpop.f32.mrf.mxu1 }
0x190c   :  { %v5615_v59 = vpop.f32.mrf.mxu0 }
0x190d   :  { %v4060_v62 = vpop.f32.mrf.mxu1 }
0x190e   :  { %v3910_v60 = vpop.f32.mrf.mxu0  ;;  %v4061_v37 = vadd.f32 %v6780_v22, %v4060_v62 }
0x190f   :  { %v3911_v0 = vadd.f32 %v6759_v42, %v3910_v60  ;;  %v5644_v7 = vpop.f32.mrf.mxu1 }
0x1910   :  { %v5626_v12 = vpop.f32.mrf.mxu0  ;;  %v4075_v45 = vsel %vm197_vm2, %v4061_v37, -inf }
0x1911   :  { %v4066_v1 = vsel %vm197_vm2, %v3911_v0, -inf  ;;  %v4063_v13 = vpop.f32.mrf.mxu1 }
0x1912   :  { %4067 = vmax.xlane.f32.xlu0 %v4066_v1  ;;  %v3913_v50 = vpop.f32.mrf.mxu0 }
0x1913   :  { %v5645_v4 = vpop.f32.mrf.mxu1  ;;  %v5795_v50 = vld [vmem:[%s7202_s5 + $0x18] sm:$0xff]  }
0x1914   :  { %v5627_v30 = vpop.f32.mrf.mxu0 }
0x1916   :  { %v4010_v32 = vpop.f32.mrf.mxu0 }
0x1917   :  { %v4011_v33 = vadd.f32 %v6773_v15, %v4010_v32 }
0x1918   :  { %v5638_v34 = vpop.f32.mrf.mxu0 }
0x1919   :  { %v4072_v24 = vsel %vm197_vm2, %v4011_v33, -inf }
0x191a   :  { %4073 = vmax.xlane.f32.xlu0 %v4072_v24  ;;  %v4013_v41 = vpop.f32.mrf.mxu0  ;;  %4114 = vrot.lane.b32.xlu1 %v6716_v38, %s7237_s29 }
0x191c   :  { %v5639_v42 = vpop.f32.mrf.mxu0 }
0x191e   :  { %4076 = vmax.xlane.f32.xlu0 %v4075_v45 }
0x1992   :  { %v4071_v46 = vpop.xlane.xlu1 %4070 }
0x1993   :  { %v4079_v47 = vsub.f32 %v3961_v11, %v4071_v46 }
0x1995   :  { %v4084_v48 = vmul.f32 1.442695, %v4079_v47 }
0x1996   :  { %v4115_v49 = vpop.permute.xlu1 %4114 }
0x1997   :  { %5939 = vpow2.f32 %v4084_v48  ;;  %v4120_v15 = vsel %vm444_vm3, %v4115_v49, 0 }
0x1998   :  { %5647 = vmatpush3.bf16.msra.mxu0 %v4120_v15 }
0x1999   :  { %5658 = vmatprep.subr.bf16.mxu0 %v6060_v9 }
0x199b   :  { %v4068_v22 = vpop.xlane.xlu0 %4067 }
0x199c   :  { %v4078_v54 = vsub.f32 %v3911_v0, %v4068_v22 }
0x199e   :  { %v4082_v56 = vmul.f32 1.442695, %v4078_v54 }
0x19a0   :  { %5941 = vpow2.f32 %v4082_v56 }
0x19a3   :  { %v4074_v61 = vpop.xlane.xlu0 %4073 }
0x19a4   :  { %v5940_v38 = vpop.eup %5939  ;;  %v4080_v2 = vsub.f32 %v4011_v33, %v4074_v61 }
0x19a5   :  { %v4093_v3 = vsel %vm197_vm2, %v5940_v38, 0.0 }
0x19a6   :  { %v4086_v6 = vmul.f32 1.442695, %v4080_v2  ;;  %4094 = vadd.xlane.f32.xlu0 %v4093_v3 }
0x19a7   :  { %v4077_v8 = vpop.xlane.xlu0 %4076 }
0x19a8   :  { %5943 = vpow2.f32 %v4086_v6  ;;  %v4081_v11 = vsub.f32 %v4061_v37, %v4077_v8 }
0x19aa   :  { %v4088_v18 = vmul.f32 1.442695, %v4081_v11 }
0x19ac   :  { %5945 = vpow2.f32 %v4088_v18 }
0x19ad   :  { %v5942_v19 = vpop.eup %5941 }
0x19ae   :  { %v4090_v21 = vsel %vm197_vm2, %v5942_v19, 0.0 }
0x19af   :  { %4091 = vadd.xlane.f32.xlu1 %v4090_v21 }
0x19b5   :  { %v5944_v14 = vpop.eup %5943 }
0x19b6   :  { %v4096_v20 = vsel %vm197_vm2, %v5944_v14, 0.0 }
0x19b7   :  { %4097 = vadd.xlane.f32.xlu1 %v4096_v20 }
0x19b9   :  { %v5946_v63 = vpop.eup %5945 }
0x19ba   :  { %v4099_v59 = vsel %vm197_vm2, %v5946_v63, 0.0 }
0x19bb   :  { %4100 = vadd.xlane.f32.xlu0 %v4099_v59 }
0x19c8   :  { %4210 = vrot.lane.b32.xlu1 %v6720_v40, %s7237_s29 }
0x19cc   :  { %4258 = vrot.lane.b32.xlu1 %v6728_v31, %s7237_s29 }
0x19d0   :  { %5757 = vrot.lane.b32.xlu1 %v5756_v28, %s7238_s30 }
0x19d1   :  { %4162 = vrot.lane.b32.xlu0 %v6722_v43, %s7237_s29 }
0x19d4   :  { %5767 = vrot.lane.b32.xlu1 %v5766_v16, %s7239_s0 }
0x19d5   :  { %5752 = vrot.lane.b32.xlu0 %v5751_v57, %s7238_s30 }
0x19d9   :  { %5762 = vrot.lane.b32.xlu0 %v5761_v29, %s7239_s0 }
0x1a2f   :  { %v4095_v40 = vpop.xlane.xlu0 %4094 }
0x1a30   :  { %5947 = vrcp.f32 %v4095_v40 }
0x1a38   :  { %v4092_v31 = vpop.xlane.xlu1 %4091 }
0x1a39   :  { %5949 = vrcp.f32 %v4092_v31 }
0x1a3d   :  { %v5948_v39 = vpop.eup %5947 }
0x1a3e   :  { %v4107_v10 = vmul.f32 %v5948_v39, %v5940_v38 }
0x1a40   :  { %v4098_v43 = vpop.xlane.xlu1 %4097  ;;  %v4111_v25 = vpack.c.bf16 %v4107_v10, %v4107_v10 }
0x1a41   :  { %5951 = vrcp.f32 %v4098_v43 }
0x1a44   :  { %v4101_v44 = vpop.xlane.xlu0 %4100  ;;  %v4211_v28 = vpop.permute.xlu1 %4210 }
0x1a45   :  { %5953 = vrcp.f32 %v4101_v44  ;;  %v4216_v53 = vsel %vm444_vm3, %v4211_v28, 0 }
0x1a46   :  { %v5950_v17 = vpop.eup %5949 }
0x1a47   :  { %v4106_v16 = vmul.f32 %v5950_v17, %v5942_v19 }
0x1a48   :  { %v4163_v51 = vpop.permute.xlu0 %4162  ;;  %v4259_v62 = vpop.permute.xlu1 %4258 }
0x1a49   :  { %v4110_v52 = vpack.c.bf16 %v4106_v16, %v4106_v16  ;;  %v4168_v57 = vsel %vm444_vm3, %v4163_v51, 0  ;;  %v4264_v29 = vsel %vm444_vm3, %v4259_v62, 0 }
0x1a4a   :  { %5653 = vmatpush3.bf16.msra.mxu1 %v4168_v57 }
0x1a4b   :  { %5649 = vmatmul.mubr.msk.bf16.vlgmr.msra.gmra.mxu0 %vm197_vm2, %v4110_v52  ;;  %5664 = vmatprep.subr.bf16.mxu1 %v6060_v9 }
0x1a4c   :  { %5659 = vmatpush3.bf16.msra.mxu0 %v4216_v53  ;;  %5660 = vmatprep.mubr.msk.bf16.mxu0 %vm6061_vm1, %v6060_v9  ;;  %v5753_v61 = vpop.permute.xlu0 %5752  ;;  %v5758_v11 = vpop.permute.xlu1 %5757 }
0x1a4d   :  { %5655 = vmatmul.mubr.msk.bf16.vlgmr.msra.gmra.mxu1 %vm197_vm2, %v4111_v25  ;;  %5670 = vmatprep.subr.bf16.mxu0 %v5795_v50  ;;  %v5755_v2 = vunpack.i.h.bf16 %v5753_v61  ;;  %v5754_v3 = vunpack.i.l.bf16 %v5753_v61  ;;  %v5760_v44 = vunpack.i.h.bf16 %v5758_v11  ;;  %v5759_v28 = vunpack.i.l.bf16 %v5758_v11  ;;  %v5798_v11 = vld [vmem:[#allocation3 + $0x10] sm:$0xff]  }
0x1a4e   :  { %v5952_v60 = vpop.eup %5951  ;;  %5665 = vmatpush3.bf16.msra.mxu1 %v4264_v29  ;;  %5666 = vmatprep.mubr.msk.bf16.mxu1 %vm6061_vm1, %v6060_v9  ;;  %v5796_v9 = vld [vmem:[%s7202_s5 + $0x10] sm:$0xff]  }
0x1a4f   :  { %v4108_v0 = vmul.f32 %v5952_v60, %v5944_v14  ;;  %v4355_v19 = vsel %vm197_vm2, %v6854_v58, %v5755_v2  ;;  %v4354_v21 = vsel %vm197_vm2, %v6852_v23, %v5754_v3  ;;  %v4357_v23 = vsel %vm197_vm2, %v6856_v35, %v5760_v44  ;;  %v5041_v35 = vld [vmem:[%s7203_s6 + $0x1] ss:$0 sm:$0xff] }
0x1a50   :  { %v5763_v38 = vpop.permute.xlu0 %5762  ;;  %v5768_v39 = vpop.permute.xlu1 %5767  ;;  %v4356_v16 = vsel %vm197_vm2, %v6858_v36, %v5759_v28 }
0x1a51   :  { %v4112_v7 = vpack.c.bf16 %v4108_v0, %v4108_v0  ;;  %v5765_v6 = vunpack.i.h.bf16 %v5763_v38  ;;  %v5764_v8 = vunpack.i.l.bf16 %v5763_v38  ;;  %v5770_v58 = vunpack.i.h.bf16 %v5768_v39 }
0x1a52   :  { %v5954_v12 = vpop.eup %5953  ;;  %v5769_v17 = vunpack.i.l.bf16 %v5768_v39 }
0x1a53   :  { %v4109_v1 = vmul.f32 %v5954_v12, %v5946_v63  ;;  %5661 = vmatmul.mubr.msk.bf16.vlgmr.msra.gmra.mxu0 %vm197_vm2, %v4112_v7  ;;  %v4358_v63 = vsel %vm2004_vm4, %v4354_v21, %v5764_v8  ;;  %v4359_v59 = vsel %vm2004_vm4, %v4355_v19, %v5765_v6  ;;  %v4361_v62 = vsel %vm2004_vm4, %v4357_v23, %v5770_v58  ;;  %v5797_v8 = vld [vmem:[#allocation3 + $0x18] sm:$0xff]  }
0x1a54   :  { %5671 = vmatpush3.bf16.msra.mxu0 %v5795_v50  ;;  %v4360_v57 = vsel %vm2004_vm4, %v4356_v16, %v5769_v17  ;;  %5678 = vmatprep.subr.bf16.mxu1 %v5797_v8  ;;  %v5048_v17 = vld [vmem:[%s7204_s7 + $0x1] ss:$0 sm:$0xff] }
0x1a55   :  { %v4113_v13 = vpack.c.bf16 %v4109_v1, %v4109_v1  ;;  %5672 = vmatprep.subr.bf16.mxu0 %v5796_v9 }
0x1a57   :  { %5667 = vmatmul.mubr.msk.bf16.vlgmr.msra.gmra.mxu1 %vm197_vm2, %v4113_v13 }
0x1a58   :  { %5673 = vmatpush3.bf16.msra.mxu0 %v5796_v9  ;;  %5679 = vmatpush3.bf16.msra.mxu1 %v5797_v8 }
0x1a59   :  { %5680 = vmatprep.subr.bf16.mxu1 %v5798_v11 }
0x1a5c   :  { %5681 = vmatpush3.bf16.msra.mxu1 %v5798_v11 }
0x1b0b   :  { %v4156_v4 = vpop.f32.mrf.mxu0 }
0x1b0d   :  { %v5650_v30 = vpop.f32.mrf.mxu0  ;;  %v4204_v32 = vpop.f32.mrf.mxu1 }
0x1b0e   :  { %v5771_v33 = vpack.i.bf16 %v4204_v32, %v4156_v4 }
0x1b0f   :  { %v4159_v34 = vpop.f32.mrf.mxu0  ;;  %v5656_v37 = vpop.f32.mrf.mxu1 }
0x1b10   :  { %5772 = vrot.lane.b32.xlu0 %v5771_v33, %s7240_s9 }
0x1b11   :  { %v5651_v24 = vpop.f32.mrf.mxu0  ;;  %v4207_v41 = vpop.f32.mrf.mxu1 }
0x1b13   :  { %v5657_v42 = vpop.f32.mrf.mxu1  ;;  %v4252_v45 = vpop.f32.mrf.mxu0 }
0x1b15   :  { %v5662_v46 = vpop.f32.mrf.mxu0 }
0x1b17   :  { %v4255_v47 = vpop.f32.mrf.mxu0  ;;  %v4300_v48 = vpop.f32.mrf.mxu1 }
0x1b18   :  { %v5776_v49 = vpack.i.bf16 %v4300_v48, %v4252_v45 }
0x1b19   :  { %v5663_v15 = vpop.f32.mrf.mxu0  ;;  %v5668_v22 = vpop.f32.mrf.mxu1 }
0x1b1a   :  { %5777 = vrot.lane.b32.xlu1 %v5776_v49, %s7240_s9  ;;  %s4909_s9 = sshll.u32 %s6076_s22, 4  ;;  %s4910_s9 = int_to_ptr.vmem [resolvable:$true] %s4909_s9 }
0x1b1b   :  { %v4303_v54 = vpop.f32.mrf.mxu1  ;;  %s6011_s5 = scalar_lea.vmem %s4910_s9, 64  ;;  %p6016_p6 = scmp.lt.s32.totalorder %s4910_s9, %s4910_s9 }
0x1b1c   :  { %p6012_p5 = scmp.ne.s32.totalorder %s4910_s9, %s6011_s5  ;;  %p6017_p7 = scmp.lt.s32.totalorder %s6011_s5, %s6011_s5 }
0x1b1d   :  { %v5669_v56 = vpop.f32.mrf.mxu1 }
0x1b1e   :  { %p6018_p8 = por %p6017_p7, %p6016_p6 }
0x1b20   :  { %p6019_p9 = pnand %p6018_p8, %p6012_p5 }
0x1b82   :  { %v5773_v18 = vpop.permute.xlu0 %5772 }
0x1b83   :  { %v5775_v14 = vunpack.i.h.bf16 %v5773_v18  ;;  %v5774_v20 = vunpack.i.l.bf16 %v5773_v18 }
0x1b85   :  { %v4363_v40 = vsel %vm2009_vm5, %v4359_v59, %v5775_v14  ;;  %v4362_v31 = vsel %vm2009_vm5, %v4358_v63, %v5774_v20 }
0x1b86   :  { %v4366_v43 = vpack.c.bf16 %v4363_v40, %v4362_v31 }
0x1b88   :  { %5674 = vmatprep.mubr.msk.bf16.mxu0 %vm110_vm0, %v4366_v43 }
0x1b8c   :  { %v5778_v10 = vpop.permute.xlu1 %5777 }
0x1b8d   :  { %v5780_v51 = vunpack.i.h.bf16 %v5778_v10  ;;  %v5779_v52 = vunpack.i.l.bf16 %v5778_v10 }
0x1b8f   :  { %v4364_v25 = vsel %vm2009_vm5, %v4360_v57, %v5779_v52  ;;  %v4365_v53 = vsel %vm2009_vm5, %v4361_v62, %v5780_v51  ;;  %v5049_v57 = vld [vmem:[%s7205_s8 + $0x1] ss:$0 sm:$0xff] }
0x1b90   :  { %v4367_v29 = vpack.c.bf16 %v4365_v53, %v4364_v25 }
0x1b92   :  { %5675 = vmatmul.mubr.msk.bf16.vlgmr.msra.gmra.mxu0 %vm110_vm0, %v4367_v29 }
0x1c52   :  { %v5676_v60 = vpop.f32.mrf.mxu0 }
0x1c53   :  { %v4442_v36 = vadd.f32 %v5676_v60, %v5041_v35 }
0x1c54   :  { %v4433_v0 = vpop.f32.mrf.mxu0 }
0x1c55   :  { %v4434_v7 = vadd.f32 %v5041_v35, %v4433_v0  ;;  %v4450_v50 = vadd.f32 %v4442_v36, %v6704_v26 }
0x1c56   :  { %v5677_v12 = vpop.f32.mrf.mxu0 }
0x1c57   :  { %v4448_v1 = vadd.f32 %v4434_v7, %v6697_v55  ;;  %v4445_v4 = vadd.f32 %v5677_v12, %v5041_v35  ;;  %v4462_v37 = vsel %vm110_vm0, %v4450_v50, 0.0 }
0x1c58   :  { %v4436_v13 = vpop.f32.mrf.mxu0 }
0x1c59   :  { %v4437_v30 = vadd.f32 %v5041_v35, %v4436_v13  ;;  %v4456_v32 = vsel %vm110_vm0, %v4448_v1, 0.0  ;;  %v4451_v33 = vadd.f32 %v4445_v4, %v6706_v27  ;;  %v5799_v13 = vld [vmem:[%s7208_s11 + $0x38] sm:$0xff]   ;;  %v5801_v4 = vld [vmem:[%s7208_s11 + $0x28] sm:$0xff]  }
0x1c5a   :  { %4457 = vadd.xlane.f32.xlu0 %v4456_v32  ;;  %5686 = vmatprep.subr.bf16.mxu0 %v5799_v13  ;;  %v5051_v32 = vld [vmem:[%s7207_s10 + $0x1] ss:$0 sm:$0xff] }
0x1c5b   :  { %v4449_v9 = vadd.f32 %v4437_v30, %v6699_v5  ;;  %v4465_v55 = vsel %vm110_vm0, %v4451_v33, 0.0  ;;  %5687 = vmatpush3.bf16.msra.mxu0 %v5799_v13  ;;  %v5802_v30 = vld [vmem:[%s7208_s11 + $0x20] sm:$0xff]  }
0x1c5d   :  { %v4459_v34 = vsel %vm110_vm0, %v4449_v9, 0.0 }
0x1c5e   :  { %4460 = vadd.xlane.f32.xlu1 %v4459_v34  ;;  %4463 = vadd.xlane.f32.xlu0 %v4462_v37 }
0x1c62   :  { %4466 = vadd.xlane.f32.xlu0 %v4465_v55 }
0x1ce3   :  { %v4458_v24 = vpop.xlane.xlu0 %4457 }
0x1ce4   :  { %v4468_v26 = vmul.f32 0.03125, %v4458_v24 }
0x1ce6   :  { %v4472_v41 = vsub.f32 %v4448_v1, %v4468_v26 }
0x1ce7   :  { %v4461_v42 = vpop.xlane.xlu1 %4460  ;;  %v4464_v45 = vpop.xlane.xlu0 %4463 }
0x1ce8   :  { %v4469_v46 = vmul.f32 0.03125, %v4461_v42  ;;  %v4470_v47 = vmul.f32 0.03125, %v4464_v45  ;;  %v4476_v48 = vmul.f32 %v4472_v41, %v4472_v41 }
0x1cea   :  { %v4473_v5 = vsub.f32 %v4449_v9, %v4469_v46  ;;  %v4474_v49 = vsub.f32 %v4450_v50, %v4470_v47  ;;  %v4480_v27 = vsel %vm110_vm0, %v4476_v48, 0.0  ;;  %v5800_v50 = vld [vmem:[%s7208_s11 + $0x30] sm:$0xff]  }
0x1ceb   :  { %4481 = vadd.xlane.f32.xlu1 %v4480_v27  ;;  %v4467_v15 = vpop.xlane.xlu0 %4466  ;;  %5688 = vmatprep.subr.bf16.mxu0 %v5800_v50 }
0x1cec   :  { %v4471_v22 = vmul.f32 0.03125, %v4467_v15  ;;  %v4477_v54 = vmul.f32 %v4473_v5, %v4473_v5  ;;  %v4478_v56 = vmul.f32 %v4474_v49, %v4474_v49  ;;  %5689 = vmatpush3.bf16.msra.mxu0 %v5800_v50 }
0x1ced   :  { %5690 = vmatprep.subr.bf16.mxu0 %v5801_v4 }
0x1cee   :  { %v4475_v61 = vsub.f32 %v4451_v33, %v4471_v22  ;;  %v4483_v38 = vsel %vm110_vm0, %v4477_v54, 0.0  ;;  %v4486_v2 = vsel %vm110_vm0, %v4478_v56, 0.0 }
0x1cef   :  { %4484 = vadd.xlane.f32.xlu0 %v4483_v38  ;;  %4487 = vadd.xlane.f32.xlu1 %v4486_v2 }
0x1cf0   :  { %v4479_v3 = vmul.f32 %v4475_v61, %v4475_v61  ;;  %5691 = vmatpush3.bf16.msra.mxu0 %v5801_v4 }
0x1cf1   :  { %5692 = vmatprep.subr.bf16.mxu0 %v5802_v30 }
0x1cf2   :  { %v4489_v6 = vsel %vm110_vm0, %v4479_v3, 0.0 }
0x1cf3   :  { %4490 = vadd.xlane.f32.xlu0 %v4489_v6 }
0x1cf4   :  { %5693 = vmatpush3.bf16.msra.mxu0 %v5802_v30 }
0x1d74   :  { %v4482_v18 = vpop.xlane.xlu1 %4481 }
0x1d75   :  { %v4492_v19 = vmul.f32 0.03125, %v4482_v18 }
0x1d77   :  { %v4496_v21 = vadd.f32 1e-12, %v4492_v19 }
0x1d78   :  { %v4488_v14 = vpop.xlane.xlu1 %4487  ;;  %v4485_v20 = vpop.xlane.xlu0 %4484 }
0x1d79   :  { %5955 = vrsqrt.f32 %v4496_v21  ;;  %v4494_v63 = vmul.f32 0.03125, %v4488_v14  ;;  %v4493_v59 = vmul.f32 0.03125, %v4485_v20 }
0x1d7b   :  { %v4498_v40 = vadd.f32 1e-12, %v4494_v63  ;;  %v4497_v31 = vadd.f32 1e-12, %v4493_v59 }
0x1d7c   :  { %v4491_v43 = vpop.xlane.xlu0 %4490 }
0x1d7d   :  { %5957 = vrsqrt.f32 %v4498_v40  ;;  %v4495_v39 = vmul.f32 0.03125, %v4491_v43 }
0x1d7e   :  { %5959 = vrsqrt.f32 %v4497_v31 }
0x1d7f   :  { %v4499_v44 = vadd.f32 1e-12, %v4495_v39 }
0x1d81   :  { %5961 = vrsqrt.f32 %v4499_v44 }
0x1d86   :  { %v5956_v28 = vpop.eup %5955 }
0x1d87   :  { %v4504_v58 = vmul.f32 %v5956_v28, %v4472_v41 }
0x1d89   :  { %v4514_v52 = vmul.f32 %v5048_v17, %v4504_v58 }
0x1d8a   :  { %v5958_v10 = vpop.eup %5957 }
0x1d8b   :  { %v5960_v23 = vpop.eup %5959  ;;  %v4506_v16 = vmul.f32 %v5958_v10, %v4474_v49  ;;  %v7133_v60 = vadd.f32 %v5049_v57, %v4514_v52  ;;  %v5065_v52 = vld [vmem:[%s7209_s12 + $0x1] ss:$0 sm:$0xff] }
0x1d8c   :  { %v4505_v51 = vmul.f32 %v5960_v23, %v4473_v5 }
0x1d8d   :  { %v4516_v29 = vmul.f32 %v5048_v17, %v4506_v16 }
0x1d8e   :  { %v5962_v62 = vpop.eup %5961  ;;  %v4515_v25 = vmul.f32 %v5048_v17, %v4505_v51 }
0x1d8f   :  { %v4507_v53 = vmul.f32 %v5962_v62, %v4475_v61  ;;  %v7139_v7 = vadd.f32 %v5049_v57, %v4516_v29 }
0x1d90   :  { %v7135_v35 = vadd.f32 %v5049_v57, %v4515_v25 }
0x1d91   :  { %v4517_v0 = vmul.f32 %v5048_v17, %v4507_v53 }
0x1d92   :  { %v4528_v36 = vpack.c.bf16 %v7135_v35, %v7133_v60 }
0x1d93   :  { %v7141_v12 = vadd.f32 %v5049_v57, %v4517_v0 }
0x1d94   :  { %5682 = vmatprep.mubr.msk.bf16.mxu1 %vm110_vm0, %v4528_v36 }
0x1d95   :  { %v4529_v1 = vpack.c.bf16 %v7141_v12, %v7139_v7 }
0x1d97   :  { %5683 = vmatmul.mubr.msk.bf16.vlgmr.msra.gmra.mxu1 %vm110_vm0, %v4529_v1 }
0x1e57   :  { %v5684_v9 = vpop.f32.mrf.mxu1 }
0x1e58   :  { %v4604_v33 = vadd.f32 %v5684_v9, %v5051_v32 }
0x1e59   :  { %v4595_v34 = vpop.f32.mrf.mxu1 }
0x1e5a   :  { %v4612_v37 = vmul.f32 %v4604_v33, %v4604_v33  ;;  %v4596_v55 = vadd.f32 %v5051_v32, %v4595_v34 }
0x1e5b   :  { %v5685_v24 = vpop.f32.mrf.mxu1 }
0x1e5c   :  { %v4616_v26 = vmul.f32 %v4612_v37, %v4604_v33  ;;  %v4610_v41 = vmul.f32 %v4596_v55, %v4596_v55  ;;  %v4607_v42 = vadd.f32 %v5685_v24, %v5051_v32 }
0x1e5d   :  { %v4598_v45 = vpop.f32.mrf.mxu1 }
0x1e5e   :  { %v4620_v46 = vmul.f32 0.044715, %v4616_v26  ;;  %v4614_v47 = vmul.f32 %v4610_v41, %v4596_v55  ;;  %v4613_v48 = vmul.f32 %v4607_v42, %v4607_v42  ;;  %v4599_v5 = vadd.f32 %v5051_v32, %v4598_v45 }
0x1e60   :  { %v4624_v49 = vadd.f32 %v4620_v46, %v4604_v33  ;;  %v4618_v27 = vmul.f32 0.044715, %v4614_v47  ;;  %v4617_v15 = vmul.f32 %v4613_v48, %v4607_v42  ;;  %v4611_v22 = vmul.f32 %v4599_v5, %v4599_v5 }
0x1e62   :  { %v4628_v54 = vmul.f32 0.7978846, %v4624_v49  ;;  %v4622_v56 = vadd.f32 %v4618_v27, %v4596_v55  ;;  %v4621_v61 = vmul.f32 0.044715, %v4617_v15  ;;  %v4615_v38 = vmul.f32 %v4611_v22, %v4599_v5 }
0x1e64   :  { %v4626_v2 = vmul.f32 0.7978846, %v4622_v56  ;;  %v4625_v3 = vadd.f32 %v4621_v61, %v4607_v42  ;;  %v4619_v6 = vmul.f32 0.044715, %v4615_v38  ;;  %5963 = vtanh.f32 %v4628_v54 }
0x1e66   :  { %5965 = vtanh.f32 %v4626_v2  ;;  %v4629_v8 = vmul.f32 0.7978846, %v4625_v3  ;;  %v4623_v11 = vadd.f32 %v4619_v6, %v4599_v5 }
0x1e68   :  { %5967 = vtanh.f32 %v4629_v8  ;;  %v4627_v18 = vmul.f32 0.7978846, %v4623_v11 }
0x1e6a   :  { %5969 = vtanh.f32 %v4627_v18 }
0x1e71   :  { %v5964_v19 = vpop.eup %5963 }
0x1e72   :  { %v4636_v63 = vadd.f32 1.0, %v5964_v19 }
0x1e73   :  { %v5966_v21 = vpop.eup %5965 }
0x1e74   :  { %v4634_v14 = vadd.f32 1.0, %v5966_v21  ;;  %v4640_v44 = vmul.f32 0.5, %v4636_v63 }
0x1e75   :  { %v5968_v20 = vpop.eup %5967 }
0x1e76   :  { %v4637_v59 = vadd.f32 1.0, %v5968_v20  ;;  %v4638_v31 = vmul.f32 0.5, %v4634_v14  ;;  %v4644_v23 = vmul.f32 %v4640_v44, %v4604_v33 }
0x1e77   :  { %v5970_v40 = vpop.eup %5969 }
0x1e78   :  { %v4641_v43 = vmul.f32 0.5, %v4637_v59  ;;  %v4635_v39 = vadd.f32 1.0, %v5970_v40  ;;  %v4642_v17 = vmul.f32 %v4638_v31, %v4596_v55  ;;  %v5074_v59 = vld [vmem:[%s7210_s13 + $0x1] ss:$0 sm:$0xff] }
0x1e7a   :  { %v4639_v28 = vmul.f32 0.5, %v4635_v39  ;;  %v4645_v58 = vmul.f32 %v4641_v43, %v4607_v42 }
0x1e7c   :  { %v4643_v10 = vmul.f32 %v4639_v28, %v4599_v5  ;;  %v4647_v51 = vpack.c.bf16 %v4645_v58, %v4644_v23  ;;  %v5075_v28 = vld [vmem:[%s7211_s14 + $0x1] ss:$0 sm:$0xff] }
0x1e7e   :  { %v4646_v16 = vpack.c.bf16 %v4643_v10, %v4642_v17 }
0x1e80   :  { %5694 = vmatprep.mubr.msk.bf16.mxu0 %vm2330_vm6, %v4646_v16 }
0x1e81   :  { %5695 = vmatmul.mubr.msk.bf16.vlgmr.msra.gmra.mxu0 %vm2330_vm6, %v4647_v51 }
0x1f41   :  { %v5696_v57 = vpop.f32.mrf.mxu0 }
0x1f42   :  { %v4738_v62 = vadd.f32 %v5696_v57, %v5065_v52  ;;  %v5076_v57 = vld [vmem:[%s7212_s15] ss:$0 sm:$0xff]  ;;  %s7241_s15 = sld [smem:[#allocation14_spill]] }
0x1f43   :  { %v4729_v25 = vpop.f32.mrf.mxu0 }
0x1f44   :  { %v4746_v53 = vadd.f32 %v4738_v62, %v7139_v7  ;;  %v4730_v13 = vadd.f32 %v5065_v52, %v4729_v25 }
0x1f45   :  { %v5697_v29 = vpop.f32.mrf.mxu0 }
0x1f46   :  { %v4741_v0 = vadd.f32 %v5697_v29, %v5065_v52  ;;  %v4758_v36 = vsel %vm110_vm0, %v4746_v53, 0.0  ;;  %v4744_v9 = vadd.f32 %v4730_v13, %v7133_v60 }
0x1f47   :  { %4759 = vadd.xlane.f32.xlu0 %v4758_v36  ;;  %v4732_v1 = vpop.f32.mrf.mxu0 }
0x1f48   :  { %v4747_v50 = vadd.f32 %v4741_v0, %v7141_v12  ;;  %v4733_v4 = vadd.f32 %v5065_v52, %v4732_v1  ;;  %v4752_v7 = vsel %vm110_vm0, %v4744_v9, 0.0 }
0x1f4a   :  { %v4745_v30 = vadd.f32 %v4733_v4, %v7135_v35  ;;  %v4761_v32 = vsel %vm110_vm0, %v4747_v50, 0.0 }
0x1f4b   :  { %4762 = vadd.xlane.f32.xlu0 %v4761_v32 }
0x1f4c   :  { %v4755_v33 = vsel %vm110_vm0, %v4745_v30, 0.0 }
0x1f4d   :  { %4756 = vadd.xlane.f32.xlu1 %v4755_v33  ;;  %v6075_v33 = vmov 0  }
0x1f4e   :  { %5781 = vset.pattern.permute.xlu1 %v6075_v33  ;;  %5782 = vset.pattern.permute.xlu0 %v6075_v33 }
0x1f51   :  { %4753 = vadd.xlane.f32.xlu1 %v4752_v7  ;;  %v5077_v7 = vld [vmem:[#allocation2] ss:$0 sm:$0xff] }
0x1fd0   :  { %v4760_v34 = vpop.xlane.xlu0 %4759 }
0x1fd1   :  { %v4766_v37 = vmul.f32 0.03125, %v4760_v34 }
0x1fd3   :  { %v4770_v55 = vsub.f32 %v4746_v53, %v4766_v37 }
0x1fd4   :  { %v4763_v24 = vpop.xlane.xlu0 %4762 }
0x1fd5   :  { %v4767_v26 = vmul.f32 0.03125, %v4763_v24  ;;  %v4774_v12 = vmul.f32 %v4770_v55, %v4770_v55 }
0x1fd6   :  { %v4757_v41 = vpop.xlane.xlu1 %4756 }
0x1fd7   :  { %v4771_v42 = vsub.f32 %v4747_v50, %v4767_v26  ;;  %v4765_v35 = vmul.f32 0.03125, %v4757_v41  ;;  %v4782_v45 = vsel %vm110_vm0, %v4774_v12, 0.0 }
0x1fd8   :  { %4783 = vadd.xlane.f32.xlu0 %v4782_v45 }
0x1fd9   :  { %v4769_v46 = vsub.f32 %v4745_v30, %v4765_v35  ;;  %v4775_v60 = vmul.f32 %v4771_v42, %v4771_v42  ;;  %v4861_v35 = vld [vmem:[%s7241_s15] sm:$0xf] }
0x1fda   :  { %v4754_v47 = vpop.xlane.xlu1 %4753  ;;  %vm4879_vm12 = vcmp.eq.f32.partialorder %v4861_v35, -1.0 }
0x1fdb   :  { %v4764_v48 = vmul.f32 0.03125, %v4754_v47  ;;  %v4785_v5 = vsel %vm110_vm0, %v4775_v60, 0.0  ;;  %v4773_v49 = vmul.f32 %v4769_v46, %v4769_v46 }
0x1fdc   :  { %4786 = vadd.xlane.f32.xlu0 %v4785_v5 }
0x1fdd   :  { %v4768_v27 = vsub.f32 %v4744_v9, %v4764_v48  ;;  %v4779_v15 = vsel %vm110_vm0, %v4773_v49, 0.0 }
0x1fde   :  { %4780 = vadd.xlane.f32.xlu1 %v4779_v15 }
0x1fdf   :  { %v4772_v22 = vmul.f32 %v4768_v27, %v4768_v27 }
0x1fe1   :  { %v4776_v54 = vsel %vm110_vm0, %v4772_v22, 0.0 }
0x1fe2   :  { %4777 = vadd.xlane.f32.xlu1 %v4776_v54 }
0x2061   :  { %v4784_v56 = vpop.xlane.xlu0 %4783 }
0x2062   :  { %v4790_v61 = vmul.f32 0.03125, %v4784_v56 }
0x2064   :  { %v4794_v38 = vadd.f32 1e-12, %v4790_v61 }
0x2065   :  { %v4787_v2 = vpop.xlane.xlu0 %4786 }
0x2066   :  { %5971 = vrsqrt.f32 %v4794_v38  ;;  %v4791_v3 = vmul.f32 0.03125, %v4787_v2 }
0x2067   :  { %v4781_v6 = vpop.xlane.xlu1 %4780 }
0x2068   :  { %v4795_v8 = vadd.f32 1e-12, %v4791_v3  ;;  %v4789_v11 = vmul.f32 0.03125, %v4781_v6 }
0x206a   :  { %5973 = vrsqrt.f32 %v4795_v8  ;;  %v4793_v18 = vadd.f32 1e-12, %v4789_v11 }
0x206b   :  { %v4778_v19 = vpop.xlane.xlu1 %4777 }
0x206c   :  { %5975 = vrsqrt.f32 %v4793_v18  ;;  %v4788_v21 = vmul.f32 0.03125, %v4778_v19 }
0x206e   :  { %v4792_v14 = vadd.f32 1e-12, %v4788_v21 }
0x2070   :  { %5977 = vrsqrt.f32 %v4792_v14 }
0x2073   :  { %v5972_v20 = vpop.eup %5971 }
0x2074   :  { %v4802_v63 = vmul.f32 %v5972_v20, %v4770_v55 }
0x2076   :  { %v4812_v39 = vmul.f32 %v5074_v59, %v4802_v63 }
0x2077   :  { %v5974_v40 = vpop.eup %5973 }
0x2078   :  { %v4803_v31 = vmul.f32 %v5974_v40, %v4771_v42  ;;  %v4822_v23 = vadd.f32 %v5075_v28, %v4812_v39 }
0x2079   :  { %v5976_v43 = vpop.eup %5975 }
0x207a   :  { %v4801_v44 = vmul.f32 %v5976_v43, %v4769_v46  ;;  %v4813_v58 = vmul.f32 %v5074_v59, %v4803_v31  ;;  %v4833_v53 = vmul.f32 %v5076_v57, %v4822_v23 }
0x207c   :  { %v4811_v17 = vmul.f32 %v5074_v59, %v4801_v44  ;;  %v4823_v52 = vadd.f32 %v5075_v28, %v4813_v58  ;;  %v4842_v13 = vrot.slane %v4833_v53, 6 }
0x207d   :  { %v5978_v10 = vpop.eup %5977 }
0x207e   :  { %v4800_v16 = vmul.f32 %v5978_v10, %v4768_v27  ;;  %v4821_v51 = vadd.f32 %v5075_v28, %v4811_v17  ;;  %v4834_v0 = vmul.f32 %v5076_v57, %v4823_v52 }
0x2080   :  { %v4810_v62 = vmul.f32 %v5074_v59, %v4800_v16  ;;  %v4832_v25 = vmul.f32 %v5076_v57, %v4821_v51  ;;  %v4845_v4 = vrot.slane %v4834_v0, 5 }
0x2082   :  { %v4820_v29 = vadd.f32 %v5075_v28, %v4810_v62  ;;  %v4839_v1 = vrot.slane %v4832_v25, 7 }
0x2084   :  { %v4831_v36 = vmul.f32 %v5076_v57, %v4820_v29 }
0x2086   :  { %v4841_v50 = vsel %vm4840_vm7, %v4839_v1, %v4831_v36 }
0x2087   :  { %v4844_v30 = vsel %vm4843_vm8, %v4842_v13, %v4841_v50 }
0x2088   :  { %v4847_v32 = vsel %vm4846_vm9, %v4845_v4, %v4844_v30 }
0x2089   :  { %v4850_v9 = vsel %vm4849_vm10, %v4847_v32, 0.0 }
0x208a   :  { %4851 = vadd.xlane.f32.xlu1 %v4850_v9 }
0x2113   :  { %v4852_v34 = vpop.xlane.xlu1 %4851 }
0x2114   :  { %v4860_v37 = vadd.f32 %v5077_v7, %v4852_v34 }
0x2116   :  { %v4865_v55 = vand.u32 2147483647, %v4860_v37  ;;  %4897 = vperm.xlu1 %5781, %v4860_v37   ;;  %v4862_v46 = vmax.f32 %v4860_v37, 0.0  ;;  %v4863_v60 = vmul.f32 %v4861_v35, %v4860_v37 }
0x2118   :  { %v4866_v24 = vsub.f32 0.0, %v4865_v55  ;;  %v4864_v27 = vsub.f32 %v4862_v46, %v4863_v60 }
0x211a   :  { %v4867_v26 = vmul.f32 1.442695, %v4866_v24 }
0x211c   :  { %5979 = vpow2.f32 %v4867_v26 }
0x2129   :  { %v5980_v12 = vpop.eup %5979 }
0x212a   :  { %v4869_v41 = vadd.f32 1.0, %v5980_v12  ;;  %v4872_v42 = vmul.f32 -0.5, %v5980_v12  ;;  %v4875_v47 = vand.u32 2147483647, %v5980_v12 }
0x212c   :  { %5981 = vlog2.f32 %v4869_v41  ;;  %v4873_v45 = vadd.f32 1.0, %v4872_v42  ;;  %vm4876_vm11 = vcmp.lt.f32.partialorder %v4875_v47, 0.0004427343 }
0x212e   :  { %v4874_v49 = vmul.f32 %v5980_v12, %v4873_v45 }
0x2139   :  { %v5982_v48 = vpop.eup %5981 }
0x213a   :  { %v4871_v5 = vmul.f32 0.6931472, %v5982_v48 }
0x213c   :  { %v4877_v15 = vsel %vm4876_vm11, %v4874_v49, %v4871_v5 }
0x213d   :  { %v4878_v22 = vadd.f32 %v4877_v15, %v4864_v27 }
0x213f   :  { %v4880_v54 = vsel %vm4879_vm12, 0.0, %v4878_v22 }
0x2140   :  { %v4882_v56 = vsel %vm4881_vm13, %v4880_v54, 0.0 }
0x2141   :  { %4883 = vadd.xlane.f32.xlu0 %v4882_v56 }
0x2191   :  { %v4898_v61 = vpop.permute.xlu1 %4897 }
0x2192   :  { %4900 = vst [vmem:[#allocation6] sm:$0xf] %v4898_v61 }
0x2193   :  { %6022 = shalt.err (!%p6019_p9)
}
0x2194   :  { %4912 = dma.vmem_to_hbm [thread:$0]  %s4910_s9, 64, %s7214_s17, [#allocation5]  }
0x2195   :  { %s6077_s4 = smov [#allocation7]  }
0x2196   :  { %s4919_s16 = sshll.u32 %s6077_s4, 4  ;;  %s4920_s16 = int_to_ptr.vmem [resolvable:$true] %s4919_s16 }
0x2197   :  { %s6031_s8 = scalar_lea.vmem %s4920_s16, 16  ;;  %s6035_s24 = scalar_lea.vmem %s4920_s16, 32 }
0x2198   :  { %p6032_p10 = scmp.ne.s32.totalorder %s4920_s16, %s6031_s8  ;;  %p6036_p11 = scmp.lt.s32.totalorder %s4920_s16, %s4920_s16 }
0x2199   :  { %p6037_p12 = scmp.lt.s32.totalorder %s6035_s24, %s6031_s8 }
0x219b   :  { %p6038_p13 = por %p6037_p12, %p6036_p11 }
0x219d   :  { %p6039_p0 = pnand %p6038_p13, %p6032_p10 }
0x21ca   :  { %v4884_v38 = vpop.xlane.xlu0 %4883 }
0x21cb   :  { %v4885_v2 = vrot.slane %v4884_v38, 4 }
0x21cd   :  { %v4886_v3 = vadd.f32 %v4885_v2, %v4884_v38 }
0x21cf   :  { %v4887_v6 = vrot.slane %v4886_v3, 2 }
0x21d1   :  { %v4888_v8 = vadd.f32 %v4887_v6, %v4886_v3 }
0x21d3   :  { %v4889_v11 = vrot.slane %v4888_v8, 1 }
0x21d5   :  { %v4890_v18 = vadd.f32 %v4889_v11, %v4888_v8 }
0x21d7   :  { %5698 = vpush %v4890_v18 }
0x2208   :  { %s5699_s23 = spop %5698 }
0x2209   :  { %s4894_s7 = smul.f32 0.25, %s5699_s23 }
0x220b   :  { %v4901_v19 = vstv %s4894_s7 }
0x220c   :  { %4902 = vst [vmem:[#allocation7] sm:$0x1] %v4901_v19 }
0x220d   :  { %6042 = shalt.err (!%p6039_p0)
}
0x220e   :  { %4922 = dma.vmem_to_hbm [thread:$0]  %s4920_s16, 16, %s7215_s18, [#allocation8]  }
0x220f   :  { %6053 = dma.done.wait [#allocation5], 64  }
0x2210   :  { %6054 = vsyncadd [#allocation5], 4294967232 }
0x2211   :  { %6055 = dma.done.wait [#allocation8], 16  }
0x2212   :  { %6056 = vsyncadd [#allocation8], 4294967280 }
0x2213   :  { %4929 = vsyncpa [#allocation4], 1 }
0x2214   :  { %4930 = vsyncpa [#allocation5], 1 }
0x2215   :  { %4931 = vsyncpa [#allocation8], 1 }

</bundles_post_ra>
